<compile_context>
chip_gen: v7x
topology: tpu7x:2x2x1
jax: 0.10.0
libtpu: 0.0.40
codegen_flags: <defaults>
</compile_context>

<pallas_src>
import functools

import jax
import jax.numpy as jnp
from jax import lax
from jax.experimental import pallas as pl
from jax.experimental.pallas import tpu as pltpu


def _row_win(row0, kh, tile_h, stride):
    if stride == 1:
        return pl.ds(row0 + kh, tile_h)
    return pl.ds(row0 + kh, tile_h, stride=stride)


def _col_win(kw, w_out, stride):
    if stride == 1:
        return pl.ds(kw, w_out)
    return pl.ds(kw, w_out, stride=stride)


def _conv_kernel_folded(x_ref, w_ref, o_ref, patch_ref, *, kh_sz, kw_sz, stride,
                        tile_h, w_out, c_in, tile_co):
    # x_ref:     (H_in_tot, W_pad, C_in)        padded per-batch NHWC image
    # w_ref:     (KH*KW*C_in, tile_co)          im2col-folded weight tile
    # o_ref:     (tile_h, W_out, tile_co)       output row tile
    # patch_ref: (tile_h*W_out, KH*KW*C_in)     VMEM im2col slab (compute dtype)
    ht = pl.program_id(2)
    row0 = pl.multiple_of(ht * (tile_h * stride), tile_h * stride)
    m = tile_h * w_out

    if kh_sz == 1 and kw_sz == 1:
        # 1x1 conv: no assembly needed, straight matmul.
        patch = x_ref[_row_win(row0, 0, tile_h, stride),
                      _col_win(0, w_out, stride), :].reshape(m, c_in)
    else:
        # im2col in VMEM: each shifted-window tap lands in its K-slice of the
        # patch slab; a single MXU contraction of K = KH*KW*C_in then replaces
        # KH*KW tiny K=C_in matmuls + per-tap f32 accumulator RMW traffic.
        t = 0
        for kh in range(kh_sz):
            rows = _row_win(row0, kh, tile_h, stride)
            for kw in range(kw_sz):
                piece = x_ref[rows, _col_win(kw, w_out, stride), :]
                patch_ref[:, pl.ds(t * c_in, c_in)] = piece.reshape(m, c_in)
                t += 1
        patch = patch_ref[...]

    out = jnp.dot(patch, w_ref[...], preferred_element_type=jnp.float32)
    o_ref[...] = out.reshape(tile_h, w_out, tile_co).astype(o_ref.dtype)


def _conv_kernel_taps(x_ref, w_ref, o_ref, acc_ref, *, kh_sz, kw_sz, stride,
                      tile_h, w_out, c_in, tile_co):
    # x_ref:   (H_in_tot, W_pad, C_in)          padded per-batch NHWC image
    # w_ref:   (KH, KW, C_in, tile_co)
    # o_ref:   (tile_h, W_out, tile_co)
    # acc_ref: (tile_h*W_out, tile_co) f32      one RMW per kernel ROW, not per tap
    ht = pl.program_id(2)
    row0 = pl.multiple_of(ht * (tile_h * stride), tile_h * stride)
    m = tile_h * w_out

    def kh_partial(kh):
        # KW tap dots accumulated as a register-resident f32 value (MRB-chained
        # on v7x); the VMEM accumulator is only touched once per kh.
        rows = _row_win(row0, kh, tile_h, stride)
        part = None
        for kw in range(kw_sz):
            patch = x_ref[rows, _col_win(kw, w_out, stride), :].reshape(m, c_in)
            d = jnp.dot(patch, w_ref[kh, kw], preferred_element_type=jnp.float32)
            part = d if part is None else part + d
        return part

    if kh_sz == 1:
        o_ref[...] = kh_partial(0).reshape(tile_h, w_out, tile_co).astype(o_ref.dtype)
        return

    if kh_sz <= 3:
        # Unrolled: MXU pushes stay back-to-back; first row assigns (no zero pass).
        acc_ref[...] = kh_partial(0)
        for kh in range(1, kh_sz):
            acc_ref[...] += kh_partial(kh)
    else:
        acc_ref[...] = jnp.zeros_like(acc_ref)

        @pl.loop(0, kh_sz)
        def _(kh):
            acc_ref[...] += kh_partial(kh)

    o_ref[...] = acc_ref[...].reshape(tile_h, w_out, tile_co).astype(o_ref.dtype)


def conv2d_pallas_nhwc(x_nhwc, w_hwio, *, stride=1, padding=0,
                       compute_dtype=jnp.bfloat16, out_dtype=None):
    """NHWC/HWIO conv (bias=False).  Returns NHWC output of shape
    (N, H_out, W_out, C_out)."""
    n, h, w, c_in = x_nhwc.shape
    kh_sz, kw_sz, c_in_w, c_out = w_hwio.shape
    assert c_in == c_in_w
    if out_dtype is None:
        out_dtype = x_nhwc.dtype

    h_out = (h + 2 * padding - kh_sz) // stride + 1
    w_out = (w + 2 * padding - kw_sz) // stride + 1

    # ---- C_out tiling --------------------------------------------------------
    if c_out < 128:
        # Small C_out: masked stores beat a padded (16x) HBM writeback.
        tile_co, c_out_p = c_out, c_out
    else:
        tile_co = 256 if (c_out % 256 == 0 or c_out >= 512) else 128
        c_out_p = pl.cdiv(c_out, tile_co) * tile_co
    n_co = c_out_p // tile_co

    # ---- row (M) tiling ------------------------------------------------------
    # Keep the per-step f32 accumulator / matmul-output tile <= ~256 KiB so the
    # per-kh register accumulation stays vreg-friendly, while still giving a
    # large MXU M dim and amortizing per-grid-step overhead.
    target_m = min(512, max(64, (256 * 1024) // (4 * tile_co)))
    tile_h = max(1, min(target_m // max(w_out, 1), h_out))
    n_ht = pl.cdiv(h_out, tile_h)
    h_out_p = n_ht * tile_h
    m_rows = tile_h * w_out

    # ---- layout glue (plain JAX, runs once) ----------------------------------
    x_c = x_nhwc.astype(compute_dtype)
    h_in_needed = (h_out_p - 1) * stride + kh_sz      # rows read by the row tiles
    pad_bottom = max(padding, h_in_needed - (h + padding))
    x_pad = jnp.pad(
        x_c, ((0, 0), (padding, pad_bottom), (padding, padding), (0, 0)))
    h_in_tot = h + padding + pad_bottom
    w_pad = w + 2 * padding

    w_c = w_hwio.astype(compute_dtype)
    if c_out_p != c_out:
        w_c = jnp.pad(w_c, ((0, 0), (0, 0), (0, 0), (0, c_out_p - c_out)))

    # ---- kernel-path selection -----------------------------------------------
    k_fold = kh_sz * kw_sz * c_in
    use_fold = k_fold <= 512          # small C_in: fold taps into the MXU K dim

    if use_fold:
        w_arr = w_c.reshape(k_fold, c_out_p)          # (kh, kw, c)-major K order
        w_block = (k_fold, tile_co)
        w_index = lambda b, co, ht: (0, co)
        kernel = functools.partial(
            _conv_kernel_folded, kh_sz=kh_sz, kw_sz=kw_sz, stride=stride,
            tile_h=tile_h, w_out=w_out, c_in=c_in, tile_co=tile_co)
        scratch = [pltpu.VMEM((m_rows, k_fold), compute_dtype)]
    else:
        w_arr = w_c
        w_block = (kh_sz, kw_sz, c_in, tile_co)
        w_index = lambda b, co, ht: (0, 0, 0, co)
        kernel = functools.partial(
            _conv_kernel_taps, kh_sz=kh_sz, kw_sz=kw_sz, stride=stride,
            tile_h=tile_h, w_out=w_out, c_in=c_in, tile_co=tile_co)
        scratch = [pltpu.VMEM((m_rows, tile_co), jnp.float32)]

    # ---- VMEM budget & weight buffering ---------------------------------------
    cd = jnp.dtype(compute_dtype).itemsize
    ob = jnp.dtype(out_dtype).itemsize
    w_block_bytes = (k_fold if use_fold else kh_sz * kw_sz * c_in) * tile_co * cd
    w_spec_kwargs = {}
    w_buffers = 2
    if n_co == 1 and w_block_bytes > (2 << 20):
        # Weight block index is constant across the whole grid -> single buffer.
        w_spec_kwargs["pipeline_mode"] = pl.Buffered(1)
        w_buffers = 1

    in_block_bytes = h_in_tot * w_pad * c_in * cd
    out_block_bytes = m_rows * tile_co * ob
    scratch_bytes = (m_rows * k_fold * cd) if use_fold else (m_rows * tile_co * 4)
    transient_bytes = m_rows * tile_co * 4           # matmul output / partials
    vmem_est = (2 * in_block_bytes + w_buffers * w_block_bytes
                + 2 * out_block_bytes + scratch_bytes + transient_bytes)
    try:
        vmem_cap = int(pltpu.get_tpu_info().vmem_capacity_bytes)
    except Exception:                                 # conservative v7x fallback
        vmem_cap = 64 * 2 ** 20
    vmem_limit = int(min(max(int(vmem_est * 1.3), 32 * 2 ** 20),
                         int(vmem_cap * 0.85)))

    cost = pl.CostEstimate(
        flops=2 * n * h_out * w_out * c_out * c_in * kh_sz * kw_sz,
        transcendentals=0,
        bytes_accessed=(x_pad.size * cd + w_arr.size * cd
                        + n * h_out * w_out * c_out * ob),
    )

    out = pl.pallas_call(
        kernel,
        out_shape=jax.ShapeDtypeStruct((n, h_out_p, w_out, c_out_p), out_dtype),
        grid_spec=pltpu.PrefetchScalarGridSpec(
            num_scalar_prefetch=0,
            # b outer (input re-fetch only per batch), co middle (weight tile
            # re-fetch only when it changes), h tiles inner.
            grid=(n, n_co, n_ht),
            in_specs=[
                pl.BlockSpec((None, h_in_tot, w_pad, c_in),
                             lambda b, co, ht: (b, 0, 0, 0)),
                pl.BlockSpec(w_block, w_index, **w_spec_kwargs),
            ],
            out_specs=pl.BlockSpec((None, tile_h, w_out, tile_co),
                                   lambda b, co, ht: (b, ht, 0, co)),
            scratch_shapes=scratch,
        ),
        compiler_params=pltpu.CompilerParams(
            dimension_semantics=("parallel", "parallel", "parallel"),
            vmem_limit_bytes=vmem_limit),
        cost_estimate=cost,
    )(x_pad, w_arr)

    if h_out_p != h_out or c_out_p != c_out:
        out = out[:, :h_out, :, :c_out]
    return out


def conv2d_pallas(x_nchw, weight_oihw, *, stride=1, padding=0,
                  compute_dtype=jnp.bfloat16, out_dtype=None):
    """Forward of the Conv2d module (bias=False), PyTorch NCHW/OIHW semantics.

    x_nchw:      (N, C_in, H, W)
    weight_oihw: (C_out, C_in, KH, KW)
    returns:     (N, C_out, H_out, W_out), dtype of x (unless out_dtype given).
    """
    x_nhwc = jnp.transpose(x_nchw, (0, 2, 3, 1))
    w_hwio = jnp.transpose(weight_oihw, (2, 3, 1, 0))
    out_nhwc = conv2d_pallas_nhwc(
        x_nhwc, w_hwio, stride=stride, padding=padding,
        compute_dtype=compute_dtype,
        out_dtype=out_dtype if out_dtype is not None else x_nchw.dtype)
    return jnp.transpose(out_nhwc, (0, 3, 1, 2))


def _reference_conv(x_nchw, weight_oihw, *, stride=1, padding=0):
    return lax.conv_general_dilated(
        x_nchw, weight_oihw,
        window_strides=(stride, stride),
        padding=[(padding, padding), (padding, padding)],
        dimension_numbers=("NCHW", "OIHW", "NCHW"),
    )


if __name__ == "__main__":
    # Small shapes consistent with the module: Conv2d(in=4, out=8, k=3, s=1, p=1)
    key = jax.random.PRNGKey(0)
    kx, kw = jax.random.split(key)

    N, C_IN, H, W = 2, 4, 16, 16
    C_OUT, K, STRIDE, PAD = 8, 3, 1, 1

    x = jax.random.normal(kx, (N, C_IN, H, W), dtype=jnp.float32)
    # Deterministic weight init (PyTorch-like fan-in scaling), no checkpoint load.
    fan_in = C_IN * K * K
    weight = jax.random.uniform(
        kw, (C_OUT, C_IN, K, K), dtype=jnp.float32,
        minval=-1.0, maxval=1.0) * (1.0 / (fan_in ** 0.5))

    y = conv2d_pallas(x, weight, stride=STRIDE, padding=PAD)
    y = jax.block_until_ready(y)

    y_ref = _reference_conv(x, weight, stride=STRIDE, padding=PAD)
    assert y.shape == (N, C_OUT, H, W), y.shape
    # bf16 MXU inputs (f32 accumulation) -> slightly looser tolerance vs f32 ref.
    assert jnp.allclose(y, y_ref, atol=3e-2, rtol=3e-2), "mismatch vs reference"

    print("KERNEL_OK")
</pallas_src>

<mosaic_0001>
module attributes {stable_mosaic.version = 11 : i64} {
  func.func @_conv_kernel_folded(%arg0: i32, %arg1: i32, %arg2: i32, %arg3: memref<1x18x18x4xbf16, #tpu.memory_space<vmem>>, %arg4: memref<36x8xbf16, #tpu.memory_space<vmem>>, %arg5: memref<1x16x16x8xf32, #tpu.memory_space<vmem>>, %arg6: memref<256x36xbf16, #tpu.memory_space<vmem>>) attributes {dimension_semantics = [#tpu.dimension_semantics<parallel>, #tpu.dimension_semantics<parallel>, #tpu.dimension_semantics<parallel>], iteration_bounds = array<i64: 2, 1, 1>, scalar_prefetch = 0 : i64, scratch_operands = 1 : i64, tpu.core_type = #tpu.core_type<tc>, window_params = [{transform_indices = @transform_0, window_bounds = array<i64: 1, 18, 18, 4>}, {transform_indices = @transform_1, window_bounds = array<i64: 36, 8>}, {transform_indices = @transform_2, window_bounds = array<i64: 1, 16, 16, 8>}]} {
    %c16_i32 = arith.constant 16 : i32
    %0 = arith.muli %arg2, %c16_i32 : i32
    %1 = tpu.assume_multiple %0, 16 : i32
    %c0_i32 = arith.constant 0 : i32
    %2 = arith.addi %1, %c0_i32 : i32
    %c0 = arith.constant 0 : index
    %3 = arith.index_cast %2 : i32 to index
    %c0_0 = arith.constant 0 : index
    %c0_1 = arith.constant 0 : index
    %4 = vector.load %arg3[%c0, %3, %c0_0, %c0_1] : memref<1x18x18x4xbf16, #tpu.memory_space<vmem>>, vector<1x16x16x4xbf16>
    %5 = vector.shape_cast %4 : vector<1x16x16x4xbf16> to vector<16x16x4xbf16>
    %6 = vector.shape_cast %5 : vector<16x16x4xbf16> to vector<256x4xbf16>
    %c0_2 = arith.constant 0 : index
    %c0_3 = arith.constant 0 : index
    %7 = vector.load %arg6[%c0_2, %c0_3] : memref<256x36xbf16, #tpu.memory_space<vmem>>, vector<256x4xbf16>
    tpu.vector_store %arg6[%c0_2, %c0_3], %6 {strides = array<i32>} : memref<256x36xbf16, #tpu.memory_space<vmem>>, vector<256x4xbf16>,
    %c0_4 = arith.constant 0 : index
    %8 = arith.index_cast %2 : i32 to index
    %c1 = arith.constant 1 : index
    %c0_5 = arith.constant 0 : index
    %9 = vector.load %arg3[%c0_4, %8, %c1, %c0_5] : memref<1x18x18x4xbf16, #tpu.memory_space<vmem>>, vector<1x16x16x4xbf16>
    %10 = vector.shape_cast %9 : vector<1x16x16x4xbf16> to vector<16x16x4xbf16>
    %11 = vector.shape_cast %10 : vector<16x16x4xbf16> to vector<256x4xbf16>
    %c0_6 = arith.constant 0 : index
    %c4 = arith.constant 4 : index
    %12 = vector.load %arg6[%c0_6, %c4] : memref<256x36xbf16, #tpu.memory_space<vmem>>, vector<256x4xbf16>
    tpu.vector_store %arg6[%c0_6, %c4], %11 {strides = array<i32>} : memref<256x36xbf16, #tpu.memory_space<vmem>>, vector<256x4xbf16>,
    %c0_7 = arith.constant 0 : index
    %13 = arith.index_cast %2 : i32 to index
    %c2 = arith.constant 2 : index
    %c0_8 = arith.constant 0 : index
    %14 = vector.load %arg3[%c0_7, %13, %c2, %c0_8] : memref<1x18x18x4xbf16, #tpu.memory_space<vmem>>, vector<1x16x16x4xbf16>
    %15 = vector.shape_cast %14 : vector<1x16x16x4xbf16> to vector<16x16x4xbf16>
    %16 = vector.shape_cast %15 : vector<16x16x4xbf16> to vector<256x4xbf16>
    %c0_9 = arith.constant 0 : index
    %c8 = arith.constant 8 : index
    %17 = vector.load %arg6[%c0_9, %c8] : memref<256x36xbf16, #tpu.memory_space<vmem>>, vector<256x4xbf16>
    tpu.vector_store %arg6[%c0_9, %c8], %16 {strides = array<i32>} : memref<256x36xbf16, #tpu.memory_space<vmem>>, vector<256x4xbf16>,
    %c1_i32 = arith.constant 1 : i32
    %18 = arith.addi %1, %c1_i32 : i32
    %c0_10 = arith.constant 0 : index
    %19 = arith.index_cast %18 : i32 to index
    %c0_11 = arith.constant 0 : index
    %c0_12 = arith.constant 0 : index
    %20 = vector.load %arg3[%c0_10, %19, %c0_11, %c0_12] : memref<1x18x18x4xbf16, #tpu.memory_space<vmem>>, vector<1x16x16x4xbf16>
    %21 = vector.shape_cast %20 : vector<1x16x16x4xbf16> to vector<16x16x4xbf16>
    %22 = vector.shape_cast %21 : vector<16x16x4xbf16> to vector<256x4xbf16>
    %c0_13 = arith.constant 0 : index
    %c12 = arith.constant 12 : index
    %23 = vector.load %arg6[%c0_13, %c12] : memref<256x36xbf16, #tpu.memory_space<vmem>>, vector<256x4xbf16>
    tpu.vector_store %arg6[%c0_13, %c12], %22 {strides = array<i32>} : memref<256x36xbf16, #tpu.memory_space<vmem>>, vector<256x4xbf16>,
    %c0_14 = arith.constant 0 : index
    %24 = arith.index_cast %18 : i32 to index
    %c1_15 = arith.constant 1 : index
    %c0_16 = arith.constant 0 : index
    %25 = vector.load %arg3[%c0_14, %24, %c1_15, %c0_16] : memref<1x18x18x4xbf16, #tpu.memory_space<vmem>>, vector<1x16x16x4xbf16>
    %26 = vector.shape_cast %25 : vector<1x16x16x4xbf16> to vector<16x16x4xbf16>
    %27 = vector.shape_cast %26 : vector<16x16x4xbf16> to vector<256x4xbf16>
    %c0_17 = arith.constant 0 : index
    %c16 = arith.constant 16 : index
    %28 = vector.load %arg6[%c0_17, %c16] : memref<256x36xbf16, #tpu.memory_space<vmem>>, vector<256x4xbf16>
    tpu.vector_store %arg6[%c0_17, %c16], %27 {strides = array<i32>} : memref<256x36xbf16, #tpu.memory_space<vmem>>, vector<256x4xbf16>,
    %c0_18 = arith.constant 0 : index
    %29 = arith.index_cast %18 : i32 to index
    %c2_19 = arith.constant 2 : index
    %c0_20 = arith.constant 0 : index
    %30 = vector.load %arg3[%c0_18, %29, %c2_19, %c0_20] : memref<1x18x18x4xbf16, #tpu.memory_space<vmem>>, vector<1x16x16x4xbf16>
    %31 = vector.shape_cast %30 : vector<1x16x16x4xbf16> to vector<16x16x4xbf16>
    %32 = vector.shape_cast %31 : vector<16x16x4xbf16> to vector<256x4xbf16>
    %c0_21 = arith.constant 0 : index
    %c20 = arith.constant 20 : index
    %33 = vector.load %arg6[%c0_21, %c20] : memref<256x36xbf16, #tpu.memory_space<vmem>>, vector<256x4xbf16>
    tpu.vector_store %arg6[%c0_21, %c20], %32 {strides = array<i32>} : memref<256x36xbf16, #tpu.memory_space<vmem>>, vector<256x4xbf16>,
    %c2_i32 = arith.constant 2 : i32
    %34 = arith.addi %1, %c2_i32 : i32
    %c0_22 = arith.constant 0 : index
    %35 = arith.index_cast %34 : i32 to index
    %c0_23 = arith.constant 0 : index
    %c0_24 = arith.constant 0 : index
    %36 = vector.load %arg3[%c0_22, %35, %c0_23, %c0_24] : memref<1x18x18x4xbf16, #tpu.memory_space<vmem>>, vector<1x16x16x4xbf16>
    %37 = vector.shape_cast %36 : vector<1x16x16x4xbf16> to vector<16x16x4xbf16>
    %38 = vector.shape_cast %37 : vector<16x16x4xbf16> to vector<256x4xbf16>
    %c0_25 = arith.constant 0 : index
    %c24 = arith.constant 24 : index
    %39 = vector.load %arg6[%c0_25, %c24] : memref<256x36xbf16, #tpu.memory_space<vmem>>, vector<256x4xbf16>
    tpu.vector_store %arg6[%c0_25, %c24], %38 {strides = array<i32>} : memref<256x36xbf16, #tpu.memory_space<vmem>>, vector<256x4xbf16>,
    %c0_26 = arith.constant 0 : index
    %40 = arith.index_cast %34 : i32 to index
    %c1_27 = arith.constant 1 : index
    %c0_28 = arith.constant 0 : index
    %41 = vector.load %arg3[%c0_26, %40, %c1_27, %c0_28] : memref<1x18x18x4xbf16, #tpu.memory_space<vmem>>, vector<1x16x16x4xbf16>
    %42 = vector.shape_cast %41 : vector<1x16x16x4xbf16> to vector<16x16x4xbf16>
    %43 = vector.shape_cast %42 : vector<16x16x4xbf16> to vector<256x4xbf16>
    %c0_29 = arith.constant 0 : index
    %c28 = arith.constant 28 : index
    %44 = vector.load %arg6[%c0_29, %c28] : memref<256x36xbf16, #tpu.memory_space<vmem>>, vector<256x4xbf16>
    tpu.vector_store %arg6[%c0_29, %c28], %43 {strides = array<i32>} : memref<256x36xbf16, #tpu.memory_space<vmem>>, vector<256x4xbf16>,
    %c0_30 = arith.constant 0 : index
    %45 = arith.index_cast %34 : i32 to index
    %c2_31 = arith.constant 2 : index
    %c0_32 = arith.constant 0 : index
    %46 = vector.load %arg3[%c0_30, %45, %c2_31, %c0_32] : memref<1x18x18x4xbf16, #tpu.memory_space<vmem>>, vector<1x16x16x4xbf16>
    %47 = vector.shape_cast %46 : vector<1x16x16x4xbf16> to vector<16x16x4xbf16>
    %48 = vector.shape_cast %47 : vector<16x16x4xbf16> to vector<256x4xbf16>
    %c0_33 = arith.constant 0 : index
    %c32 = arith.constant 32 : index
    %49 = vector.load %arg6[%c0_33, %c32] : memref<256x36xbf16, #tpu.memory_space<vmem>>, vector<256x4xbf16>
    tpu.vector_store %arg6[%c0_33, %c32], %48 {strides = array<i32>} : memref<256x36xbf16, #tpu.memory_space<vmem>>, vector<256x4xbf16>,
    %c0_34 = arith.constant 0 : index
    %c0_35 = arith.constant 0 : index
    %50 = vector.load %arg6[%c0_34, %c0_35] : memref<256x36xbf16, #tpu.memory_space<vmem>>, vector<256x36xbf16>
    %c0_36 = arith.constant 0 : index
    %c0_37 = arith.constant 0 : index
    %51 = vector.load %arg4[%c0_36, %c0_37] : memref<36x8xbf16, #tpu.memory_space<vmem>>, vector<36x8xbf16>
    %cst = arith.constant dense<0.000000e+00> : vector<256x8xf32>
    %52 = tpu.matmul %50, %51, %cst {dimension_numbers = #tpu.dot_dimension_numbers<[1], [0], [0], [1], [0, 0, 1, 1], [], []>} : vector<256x36xbf16>, vector<36x8xbf16>, vector<256x8xf32> -> vector<256x8xf32>
    %53 = vector.shape_cast %52 : vector<256x8xf32> to vector<16x16x8xf32>
    %c0_38 = arith.constant 0 : index
    %c0_39 = arith.constant 0 : index
    %c0_40 = arith.constant 0 : index
    %c0_41 = arith.constant 0 : index
    %54 = vector.load %arg5[%c0_38, %c0_39, %c0_40, %c0_41] : memref<1x16x16x8xf32, #tpu.memory_space<vmem>>, vector<1x16x16x8xf32>
    %55 = vector.shape_cast %54 : vector<1x16x16x8xf32> to vector<16x16x8xf32>
    %56 = vector.shape_cast %53 : vector<16x16x8xf32> to vector<1x16x16x8xf32>
    tpu.vector_store %arg5[%c0_38, %c0_39, %c0_40, %c0_41], %56 {strides = array<i32>} : memref<1x16x16x8xf32, #tpu.memory_space<vmem>>, vector<1x16x16x8xf32>,
    return
  }
  func.func @transform_0(%arg0: i32, %arg1: i32, %arg2: i32) -> (i32, i32, i32, i32) {
    %c0_i32 = arith.constant 0 : i32
    %c0_i32_0 = arith.constant 0 : i32
    %c0_i32_1 = arith.constant 0 : i32
    %c0_i32_2 = arith.constant 0 : i32
    return %arg0, %c0_i32, %c0_i32_0, %c0_i32_1 : i32, i32, i32, i32
  }
  func.func @transform_1(%arg0: i32, %arg1: i32, %arg2: i32) -> (i32, i32) {
    %c0_i32 = arith.constant 0 : i32
    %c0_i32_0 = arith.constant 0 : i32
    return %c0_i32, %arg1 : i32, i32
  }
  func.func @transform_2(%arg0: i32, %arg1: i32, %arg2: i32) -> (i32, i32, i32, i32) {
    %c0_i32 = arith.constant 0 : i32
    %c0_i32_0 = arith.constant 0 : i32
    return %arg0, %arg2, %c0_i32, %arg1 : i32, i32, i32, i32
  }
}

</mosaic_0001>

<bundles_post_ra>
// kernel: tpu_custom_call.1
= control target key start
LH: loop header
LB: loop body
LE: loop exit
PB: predicated region body
PF: predicated region fallthrough
CT: control target
= control target key end

     0   :  { %s4400_s9 = smov 0   ;;  %s4402_s10 = smov 0   ;;  %s5602_s0 = inlined_call_operand.vmem [shape: bf16[2,18,18,4], index: 0, kind: input, shape index: {}]   ;;  %s5603_s1 = inlined_call_operand.vmem [shape: bf16[36,8], index: 1, kind: input, shape index: {}]   ;;  %s5604_s2 = inlined_call_operand.vmem [shape: f32[2,16,16,8], index: 2, kind: output, shape index: {}]  }
   0x1   :  { %s4404_s11 = smov 0  }
   0x2 LB: > { %s31_s12 = sadd.s32 1, %s4371_s10  ;;  %p3730_p0 = scmp.ge.s32.totalorder %s4375_s11, 1  ;;  %s4375_s11 = sphi %s4404_s11, %s12_s11   ;;  %s4371_s10 = sphi %s4402_s10, %s5610_s10   ;;  %s4367_s9 = sphi %s4400_s9, %s5609_s9  }
   0x3   : > { %p33_p1 = scmp.ge.s32.totalorder %s31_s12, 2  ;;  %p144_p2 = scmp.lt.s32.totalorder %s4375_s11, 3 }
   0x5   : > { %s5612_s12 = smov (%p33_p1, %s31_s12), 0  ;;  %p145_p3 = pnand %p3730_p0, %p144_p2 }
   0x6   : > { %p178_p4 = scmp.lt.s32.totalorder (!%p145_p3), %s4367_s9, 1  ;;  %vm995_vm0 = vcmask (!%p145_p3), 1042432   ;;  %vm996_vm1 = vcmask (!%p145_p3), 1046532   ;;  %s4377_s17 = smov (!%p145_p3), 12   ;;  %vm399_vm3 = vsmask.f32 (!%p145_p3), 3328 }
   0x7   : > { %148 = sbr.rel (%p145_p3) target bundleno = 657 (0x291), region = 28  ;;  %vm4426_vm2 = vmor (!%p145_p3), %vm995_vm0, %vm996_vm1  ;;  %vm400_vm4 = vsmask.f32 (!%p145_p3), 7440  ;;  %s4378_s18 = smov (!%p145_p3), 8   ;;  %vm334_vm6 = vcmask (!%p145_p3), 31744   ;;  %vm882_vm7 = vcmask (!%p145_p3), 64544  }
   0x8   : > { %vm4476_vm5 = vmor (!%p145_p3), %vm399_vm3, %vm400_vm4  ;;  %s4379_s19 = smov (!%p145_p3), 4   ;;  %s4380_s20 = smov (!%p145_p3), 16   ;;  %vm1206_vm8 = vcmask (!%p145_p3), 97344   ;;  %vm1387_vm9 = vcmask (!%p145_p3), 130144   ;;  %vm1932_vm10 = vcmask (!%p145_p3), 162944   ;;  %vm2253_vm11 = vcmask (!%p145_p3), 195744  }
   0x9   : > { %s4381_s21 = smov (!%p145_p3), 20   ;;  %s4382_s22 = smov (!%p145_p3), 24   ;;  %vm2434_vm12 = vcmask (!%p145_p3), 228544   ;;  %vm2979_vm13 = vcmask (!%p145_p3), 261344   ;;  %vm3300_vm14 = vcmask (!%p145_p3), 294144   ;;  %vm3353_vm15 = vcmask (!%p145_p3), 293888  }
   0xa   : > { %s4383_s23 = smov (!%p145_p3), 28   ;;  %s4384_s24 = smov (!%p145_p3), 32   ;;  %vm3402_vm0 = vcmask (!%p145_p3), 1041408   ;;  %vm3567_vm1 = vcmask (!%p145_p3), 64512  }
   0xe   : > { %s5614_s9 = smov (!%p178_p4, %s4367_s9), 1 }
   0xf   : > { %s4269_s13 = smul.u32 216, %s5614_s9  ;;  %s4203_s3 = sshll.u32 %s5614_s9, 8 }
  0x10   : > { %s5527_s6 = scalar_lea.vmem %s5604_s2, %s4203_s3 }
  0x11   : > { %s4424_s16 = scalar_lea.vmem %s5602_s0, %s4269_s13 }
  0x12   : > { %v4302_v1 = vld [vmem:[%s4424_s16 + $0x6c] sm:$0xff]   ;;  %v923_v3 = vld [vmem:[%s4424_s16 + $0x60] sm:$0xe]  ;;  %v924_v4 = vld [vmem:[%s4424_s16 + $0x64] sm:$0xf] }
  0x13   : > { %v4303_v2 = vld [vmem:[%s4424_s16 + $0xc] sm:$0xff]   ;;  %1355 = vrot.lane.b32.xlu1 %v4302_v1, %s4377_s17  ;;  %v925_v5 = vld [vmem:[%s4424_s16 + $0x68] sm:$0x1]  ;;  %v3774_v6 = vrot.slane %v923_v3, 9  ;;  %v1056_v7 = vrot.slane %v924_v4, 5 }
  0x14   : > { %1339 = vrot.lane.b32.xlu0 %v4303_v2, %s4377_s17  ;;  %v1059_v8 = vrot.slane %v925_v5, 5  ;;  %v899_v9 = vld [vmem:[%s4424_s16] sm:$0xe]  ;;  %v900_v10 = vld [vmem:[%s4424_s16 + $0x4] sm:$0xf] }
  0x15   : > { %v901_v11 = vld [vmem:[%s4424_s16 + $0x8] sm:$0x1]  ;;  %v3766_v12 = vrot.slane %v899_v9, 9  ;;  %v1057_v13 = vsel %vm4426_vm2, %v3774_v6, %v1056_v7  ;;  %v1058_v14 = vrot.slane %v1056_v7, 4  ;;  %v1000_v15 = vrot.slane %v900_v10, 5 }
  0x16   : > { %v1003_v16 = vrot.slane %v901_v11, 5  ;;  %v926_v17 = vld [vmem:[%s4424_s16 + $0x6c] sm:$0xe]  ;;  %v927_v18 = vld [vmem:[%s4424_s16 + $0x70] sm:$0xf] }
  0x17   : > { %v928_v19 = vld [vmem:[%s4424_s16 + $0x74] sm:$0x1]  ;;  %v3775_v20 = vrot.slane %v926_v17, 9  ;;  %v1060_v21 = vsel %vm4426_vm2, %v1058_v14, %v1059_v8  ;;  %v1001_v22 = vsel %vm4426_vm2, %v3766_v12, %v1000_v15  ;;  %v1002_v23 = vrot.slane %v1000_v15, 4  ;;  %v902_v25 = vld [vmem:[%s4424_s16 + $0xc] sm:$0xe] }
  0x18   : > { %v1063_v24 = vrot.slane %v927_v18, 5  ;;  %v903_v26 = vld [vmem:[%s4424_s16 + $0x10] sm:$0xf]  ;;  %v3790_v27 = vcombine.low %v1057_v13, %v1060_v21  ;;  %v1066_v28 = vrot.slane %v928_v19, 5  ;;  %v904_v29 = vld [vmem:[%s4424_s16 + $0x14] sm:$0x1] }
  0x19   : > { %v3767_v30 = vrot.slane %v902_v25, 9  ;;  %v1007_v31 = vrot.slane %v903_v26, 5  ;;  %v1004_v32 = vsel %vm4426_vm2, %v1002_v23, %v1003_v16  ;;  %v1010_v35 = vrot.slane %v904_v29, 5  ;;  %v354_v36 = vld [vmem:[%s4424_s16 + $0xc] sm:$0xf] }
  0x1a   : > { %v1064_v33 = vsel %vm4426_vm2, %v3775_v20, %v1063_v24  ;;  %v1065_v34 = vrot.slane %v1063_v24, 4  ;;  %v355_v37 = vld [vmem:[%s4424_s16 + $0x10] sm:$0xf]  ;;  %1174 = vrot.lane.b32.xlu1 %v3790_v27, %s4378_s18  ;;  %v3782_v38 = vcombine.low %v1001_v22, %v1004_v32  ;;  %v356_v41 = vld [vmem:[%s4424_s16 + $0x14] sm:$0x1]  ;;  %v427_v42 = vshrl.u32 %v354_v36, 16 }
  0x1b   : > { %v1008_v39 = vsel %vm4426_vm2, %v3767_v30, %v1007_v31  ;;  %v1009_v40 = vrot.slane %v1007_v31, 4  ;;  %v351_v43 = vld [vmem:[%s4424_s16] sm:$0xf]  ;;  %v430_v45 = vshll.u32 %v354_v36, 16  ;;  %v436_v46 = vshll.u32 %v355_v37, 16 }
  0x1c   : > { %v1067_v44 = vsel %vm4426_vm2, %v1065_v34, %v1066_v28  ;;  %v440_v47 = vshrl.u32 %v355_v37, 16  ;;  %v352_v48 = vld [vmem:[%s4424_s16 + $0x4] sm:$0xf]  ;;  %1158 = vrot.lane.b32.xlu0 %v3782_v38, %s4378_s18  ;;  %v429_v51 = vrot.slane %v427_v42, 4  ;;  %v446_v52 = vshll.u32 %v356_v41, 16 }
  0x1d   : > { %v3791_v49 = vcombine.low %v1064_v33, %v1067_v44  ;;  %v1011_v50 = vsel %vm4426_vm2, %v1009_v40, %v1010_v35  ;;  %v353_v53 = vld [vmem:[%s4424_s16 + $0x8] sm:$0x1]  ;;  %v432_v55 = vrot.slane %v430_v45, 5  ;;  %v438_v56 = vrot.slane %v436_v46, 5  ;;  %v378_v58 = vld [vmem:[%s4424_s16 + $0x6c] sm:$0xf] }
  0x1e   : > { %v3783_v54 = vcombine.low %v1008_v39, %v1011_v50  ;;  %v442_v57 = vrot.slane %v440_v47, 4  ;;  %v448_v59 = vrot.slane %v446_v52, 5  ;;  %v403_v60 = vshrl.u32 %v351_v43, 16  ;;  %v379_v4 = vld [vmem:[%s4424_s16 + $0x70] sm:$0xf] }
  0x1f   : > { %1176 = vrot.lane.b32.xlu1 %v3791_v49, %s4378_s18  ;;  %v406_v61 = vshll.u32 %v351_v43, 16  ;;  %v412_v62 = vshll.u32 %v352_v48, 16  ;;  %v433_v63 = vor.u32 %v432_v55, %v429_v51  ;;  %v416_v2 = vshrl.u32 %v352_v48, 16  ;;  %v380_v9 = vld [vmem:[%s4424_s16 + $0x74] sm:$0x1] }
  0x20   : > { %v443_v1 = vor.u32 %v442_v57, %v438_v56  ;;  %v422_v3 = vshll.u32 %v353_v53, 16  ;;  %1160 = vrot.lane.b32.xlu0 %v3783_v54, %s4378_s18  ;;  %v405_v6 = vrot.slane %v403_v60, 4  ;;  %v619_v10 = vshrl.u32 %v378_v58, 16  ;;  %v375_v11 = vld [vmem:[%s4424_s16 + $0x60] sm:$0xf] }
  0x21   : > { %v408_v7 = vrot.slane %v406_v61, 5  ;;  %v414_v8 = vrot.slane %v412_v62, 5  ;;  %v434_v12 = vrot.slane %v433_v63, 4  ;;  %v418_v14 = vrot.slane %v416_v2, 4  ;;  %v376_v16 = vld [vmem:[%s4424_s16 + $0x64] sm:$0xf] }
  0x22   : > { %v444_v13 = vrot.slane %v443_v1, 4  ;;  %v424_v15 = vrot.slane %v422_v3, 5  ;;  %v621_v18 = vrot.slane %v619_v10, 4  ;;  %v622_v19 = vshll.u32 %v378_v58, 16  ;;  %v377_v35 = vld [vmem:[%s4424_s16 + $0x68] sm:$0x1] }
  0x23   : > { %v409_v17 = vor.u32 %v408_v7, %v405_v6  ;;  %v628_v20 = vshll.u32 %v379_v4, 16  ;;  %v439_v21 = vsel %vm4476_vm5, %v434_v12, %v438_v56  ;;  %v419_v23 = vor.u32 %v418_v14, %v414_v8  ;;  %v3870_v38 = vld [vmem:[%s4424_s16 + $0x6c] sm:$0xf]  ;;  %v3871_v43 = vld [vmem:[%s4424_s16 + $0x70] sm:$0xf]  ;;  %v4304_v6 = vld [vmem:[%s4424_s16 + $0x78] sm:$0xff]  }
  0x24   : > { %v449_v22 = vsel %vm4476_vm5, %v444_v13, %v448_v59  ;;  %v632_v24 = vshrl.u32 %v379_v4, 16  ;;  %v624_v27 = vrot.slane %v622_v19, 5  ;;  %v638_v31 = vshll.u32 %v380_v9, 16  ;;  %v3872_v54 = vld [vmem:[%s4424_s16 + $0x74] sm:$0x1] }
  0x25   : > { %v3751_v25 = vcombine.low %v439_v21, %v449_v22  ;;  %v410_v26 = vrot.slane %v409_v17, 4  ;;  %v630_v28 = vrot.slane %v628_v20, 5  ;;  %v420_v29 = vrot.slane %v419_v23, 4  ;;  %v3846_v57 = vld [vmem:[%s4424_s16 + $0xc] sm:$0xf] }
  0x26   : > { %v634_v30 = vrot.slane %v632_v24, 4  ;;  %v595_v32 = vshrl.u32 %v375_v11, 16  ;;  %v625_v34 = vor.u32 %v624_v27, %v621_v18  ;;  %v598_v36 = vshll.u32 %v375_v11, 16  ;;  %v3847_v62 = vld [vmem:[%s4424_s16 + $0x10] sm:$0xf] }
  0x27   : > { %836 = vrot.lane.b32.xlu1 %v3751_v25, %s4379_s19  ;;  %v415_v33 = vsel %vm4476_vm5, %v410_v26, %v414_v8  ;;  %v604_v37 = vshll.u32 %v376_v16, 16  ;;  %v425_v39 = vsel %vm4476_vm5, %v420_v29, %v424_v15  ;;  %v640_v41 = vrot.slane %v638_v31, 5  ;;  %v3848_v12 = vld [vmem:[%s4424_s16 + $0x14] sm:$0x1]  ;;  %v3873_v15 = vld [vmem:[%s4424_s16 + $0x78] sm:$0xf] }
  0x28   : > { %v635_v40 = vor.u32 %v634_v30, %v630_v28  ;;  %v597_v42 = vrot.slane %v595_v32, 4  ;;  %v3750_v44 = vcombine.low %v415_v33, %v425_v39  ;;  %v626_v45 = vrot.slane %v625_v34, 4  ;;  %v3874_v27 = vld [vmem:[%s4424_s16 + $0x7c] sm:$0xf]  ;;  %v3875_v33 = vld [vmem:[%s4424_s16 + $0x80] sm:$0x1] }
  0x29   : > { %v600_v46 = vrot.slane %v598_v36, 5  ;;  %v606_v47 = vrot.slane %v604_v37, 5  ;;  %v608_v49 = vshrl.u32 %v376_v16, 16  ;;  %v614_v50 = vshll.u32 %v377_v35, 16  ;;  %v3849_v34 = vld [vmem:[%s4424_s16 + $0x18] sm:$0xf] }
  0x2a   : > { %v636_v48 = vrot.slane %v635_v40, 4  ;;  %v1645_v51 = vshrl.u32 %v3870_v38, 16  ;;  %834 = vrot.lane.b32.xlu0 %v3750_v44, %s4379_s19  ;;  %v631_v52 = vsel %vm4476_vm5, %v626_v45, %v630_v28  ;;  %v1648_v55 = vshll.u32 %v3870_v38, 16  ;;  %v3850_v39 = vld [vmem:[%s4424_s16 + $0x1c] sm:$0xf] }
  0x2b   : > { %v601_v53 = vor.u32 %v600_v46, %v597_v42  ;;  %v1654_v56 = vshll.u32 %v3871_v43, 16  ;;  %v610_v59 = vrot.slane %v608_v49, 4  ;;  %v616_v60 = vrot.slane %v614_v50, 5  ;;  %v4305_v40 = vld [vmem:[%s4424_s16 + $0x18] sm:$0xff]   ;;  %v3851_v45 = vld [vmem:[%s4424_s16 + $0x20] sm:$0x1] }
  0x2c   : > { %v641_v58 = vsel %vm4476_vm5, %v636_v48, %v640_v41  ;;  %v1647_v61 = vrot.slane %v1645_v51, 4  ;;  %v1650_v2 = vrot.slane %v1648_v55, 5  ;;  %v1658_v7 = vshrl.u32 %v3871_v43, 16  ;;  %v3934_v50 = vld [vmem:[%s4424_s16 + $0x6c] sm:$0xe] }
  0x2d   : > { %v3759_v63 = vcombine.low %v631_v52, %v641_v58  ;;  %v602_v1 = vrot.slane %v601_v53, 4  ;;  %v1656_v3 = vrot.slane %v1654_v56, 5  ;;  %v611_v4 = vor.u32 %v610_v59, %v606_v47  ;;  %v3935_v55 = vld [vmem:[%s4424_s16 + $0x70] sm:$0xf] }
  0x2e   : > { %v1664_v8 = vshll.u32 %v3872_v54, 16  ;;  %v1453_v9 = vshrl.u32 %v3846_v57, 16  ;;  %v1651_v11 = vor.u32 %v1650_v2, %v1647_v61  ;;  %v1456_v13 = vshll.u32 %v3846_v57, 16  ;;  %v3910_v61 = vld [vmem:[%s4424_s16 + $0xc] sm:$0xe] }
  0x2f   : > { %852 = vrot.lane.b32.xlu1 %v3759_v63, %s4379_s19  ;;  %v607_v10 = vsel %vm4476_vm5, %v602_v1, %v606_v47  ;;  %v1462_v14 = vshll.u32 %v3847_v62, 16  ;;  %v612_v16 = vrot.slane %v611_v4, 4  ;;  %v1660_v17 = vrot.slane %v1658_v7, 4 }
  0x30   : > { %v1666_v18 = vrot.slane %v1664_v8, 5  ;;  %v1455_v19 = vrot.slane %v1453_v9, 4  ;;  %v1652_v20 = vrot.slane %v1651_v11, 4  ;;  %v1458_v21 = vrot.slane %v1456_v13, 5  ;;  %v3912_v9 = vld [vmem:[%s4424_s16 + $0x14] sm:$0x1] }
  0x31   : > { %v1464_v22 = vrot.slane %v1462_v14, 5  ;;  %v1466_v23 = vshrl.u32 %v3847_v62, 16  ;;  %v617_v24 = vsel %vm4476_vm5, %v612_v16, %v616_v60  ;;  %v1661_v25 = vor.u32 %v1660_v17, %v1656_v3  ;;  %v3936_v60 = vld [vmem:[%s4424_s16 + $0x74] sm:$0x1] }
  0x32   : > { %v1472_v26 = vshll.u32 %v3848_v12, 16  ;;  %v1669_v28 = vshrl.u32 %v3873_v15, 16  ;;  %v3758_v29 = vcombine.low %v607_v10, %v617_v24  ;;  %v1657_v30 = vsel %vm4476_vm5, %v1652_v20, %v1656_v3  ;;  %v3911_v3 = vld [vmem:[%s4424_s16 + $0x10] sm:$0xf] }
  0x33   : > { %1357 = vrot.lane.b32.xlu1 %v4304_v6, %s4377_s17  ;;  %v1459_v31 = vor.u32 %v1458_v21, %v1455_v19  ;;  %v1468_v32 = vrot.slane %v1466_v23, 4  ;;  %v1662_v35 = vrot.slane %v1661_v25, 4  ;;  %v1672_v38 = vshll.u32 %v3873_v15, 16 }
  0x34   : > { %v1474_v36 = vrot.slane %v1472_v26, 5  ;;  %v1671_v37 = vrot.slane %v1669_v28, 4  ;;  %850 = vrot.lane.b32.xlu0 %v3758_v29, %s4379_s19  ;;  %v1678_v43 = vshll.u32 %v3874_v27, 16  ;;  %v1682_v44 = vshrl.u32 %v3874_v27, 16  ;;  %v3938_v27 = vld [vmem:[%s4424_s16 + $0x7c] sm:$0xf] }
  0x35   : > { %v1460_v41 = vrot.slane %v1459_v31, 4  ;;  %v1469_v42 = vor.u32 %v1468_v32, %v1464_v22  ;;  %v1667_v46 = vsel %vm4476_vm5, %v1662_v35, %v1666_v18  ;;  %v1674_v47 = vrot.slane %v1672_v38, 5  ;;  %v3939_v28 = vld [vmem:[%s4424_s16 + $0x80] sm:$0x1]  ;;  %v3914_v38 = vld [vmem:[%s4424_s16 + $0x1c] sm:$0xf] }
  0x36   : > { %v1688_v48 = vshll.u32 %v3875_v33, 16  ;;  %v1477_v49 = vshrl.u32 %v3849_v34, 16  ;;  %v3902_v51 = vcombine.low %v1657_v30, %v1667_v46  ;;  %v1680_v54 = vrot.slane %v1678_v43, 5  ;;  %v3913_v33 = vld [vmem:[%s4424_s16 + $0x18] sm:$0xe] }
  0x37   : > { %v1465_v52 = vsel %vm4476_vm5, %v1460_v41, %v1464_v22  ;;  %v1470_v53 = vrot.slane %v1469_v42, 4  ;;  %v1675_v56 = vor.u32 %v1674_v47, %v1671_v37  ;;  %v1684_v57 = vrot.slane %v1682_v44, 4  ;;  %v3937_v22 = vld [vmem:[%s4424_s16 + $0x78] sm:$0xe] }
  0x38   : > { %v1690_v58 = vrot.slane %v1688_v48, 5  ;;  %v1479_v59 = vrot.slane %v1477_v49, 4  ;;  %1341 = vrot.lane.b32.xlu0 %v4305_v40, %s4377_s17  ;;  %1900 = vrot.lane.b32.xlu1 %v3902_v51, %s4380_s20  ;;  %v1480_v63 = vshll.u32 %v3849_v34, 16  ;;  %v1486_v1 = vshll.u32 %v3850_v39, 16  ;;  %v4062_v44 = vld [vmem:[%s4424_s16 + $0x78] sm:$0xf] }
  0x39   : > { %v1475_v62 = vsel %vm4476_vm5, %v1470_v53, %v1474_v36  ;;  %v1490_v2 = vshrl.u32 %v3850_v39, 16  ;;  %v1676_v6 = vrot.slane %v1675_v56, 4  ;;  %v1685_v7 = vor.u32 %v1684_v57, %v1680_v54  ;;  %v3915_v39 = vld [vmem:[%s4424_s16 + $0x20] sm:$0x1] }
  0x3a   : > { %v3894_v4 = vcombine.low %v1465_v52, %v1475_v62  ;;  %v1496_v8 = vshll.u32 %v3851_v45, 16  ;;  %v1482_v10 = vrot.slane %v1480_v63, 5  ;;  %v1488_v11 = vrot.slane %v1486_v1, 5  ;;  %v4063_v45 = vld [vmem:[%s4424_s16 + $0x7c] sm:$0xf] }
  0x3b   : > { %v1492_v12 = vrot.slane %v1490_v2, 4  ;;  %v3966_v13 = vrot.slane %v3934_v50, 9  ;;  %v1681_v14 = vsel %vm4476_vm5, %v1676_v6, %v1680_v54  ;;  %v1686_v15 = vrot.slane %v1685_v7, 4  ;;  %v4064_v54 = vld [vmem:[%s4424_s16 + $0x80] sm:$0x1] }
  0x3c   : > { %v1498_v16 = vrot.slane %v1496_v8, 5  ;;  %v2103_v17 = vrot.slane %v3935_v55, 5  ;;  %1884 = vrot.lane.b32.xlu0 %v3894_v4, %s4380_s20  ;;  %v1483_v18 = vor.u32 %v1482_v10, %v1479_v59  ;;  %v2106_v20 = vrot.slane %v3936_v60, 5  ;;  %v4038_v59 = vld [vmem:[%s4424_s16 + $0x18] sm:$0xf] }
  0x3d   : > { %v1493_v19 = vor.u32 %v1492_v12, %v1488_v11  ;;  %v3958_v21 = vrot.slane %v3910_v61, 9  ;;  %v1691_v23 = vsel %vm4476_vm5, %v1686_v15, %v1690_v58  ;;  %v2047_v26 = vrot.slane %v3911_v3, 5  ;;  %v4039_v1 = vld [vmem:[%s4424_s16 + $0x1c] sm:$0xf]  ;;  %v4040_v10 = vld [vmem:[%s4424_s16 + $0x20] sm:$0x1] }
  0x3e   : > { %v2104_v24 = vsel %vm4426_vm2, %v3966_v13, %v2103_v17  ;;  %v2105_v25 = vrot.slane %v2103_v17, 4  ;;  %v3903_v29 = vcombine.low %v1681_v14, %v1691_v23  ;;  %v1484_v30 = vrot.slane %v1483_v18, 4  ;;  %v4306_v17 = vld [vmem:[%s4424_s16 + $0x78] sm:$0xff]  }
  0x3f   : > { %v1494_v31 = vrot.slane %v1493_v19, 4  ;;  %v2050_v32 = vrot.slane %v3912_v9, 5  ;;  %v2048_v35 = vsel %vm4426_vm2, %v3958_v21, %v2047_v26  ;;  %v2049_v36 = vrot.slane %v2047_v26, 4 }
  0x40   : > { %v2107_v34 = vsel %vm4426_vm2, %v2105_v25, %v2106_v20  ;;  %v3967_v37 = vrot.slane %v3937_v22, 9  ;;  %1902 = vrot.lane.b32.xlu1 %v3903_v29, %s4380_s20  ;;  %v1489_v40 = vsel %vm4476_vm5, %v1484_v30, %v1488_v11  ;;  %v2110_v43 = vrot.slane %v3938_v27, 5  ;;  %v4066_v22 = vld [vmem:[%s4424_s16 + $0x88] sm:$0xf]  ;;  %v4307_v27 = vld [vmem:[%s4424_s16 + $0x18] sm:$0xff]  }
  0x41   : > { %v1499_v41 = vsel %vm4476_vm5, %v1494_v31, %v1498_v16  ;;  %v3982_v42 = vcombine.low %v2104_v24, %v2107_v34  ;;  %v2051_v47 = vsel %vm4426_vm2, %v2049_v36, %v2050_v32  ;;  %v2113_v48 = vrot.slane %v3939_v28, 5  ;;  %v4065_v16 = vld [vmem:[%s4424_s16 + $0x84] sm:$0xf] }
  0x42   : > { %v3895_v46 = vcombine.low %v1489_v40, %v1499_v41  ;;  %v3959_v49 = vrot.slane %v3913_v33, 9  ;;  %v3974_v50 = vcombine.low %v2048_v35, %v2051_v47  ;;  %v2111_v51 = vsel %vm4426_vm2, %v3967_v37, %v2110_v43  ;;  %v4067_v35 = vld [vmem:[%s4424_s16 + $0x8c] sm:$0x1]  ;;  %v4041_v37 = vld [vmem:[%s4424_s16 + $0x24] sm:$0xf] }
  0x43   : > { %v2112_v52 = vrot.slane %v2110_v43, 4  ;;  %v2054_v53 = vrot.slane %v3914_v38, 5  ;;  %v2057_v55 = vrot.slane %v3915_v39, 5  ;;  %v2692_v56 = vshrl.u32 %v4062_v44, 16  ;;  %v4308_v38 = vld [vmem:[%s4424_s16 + $0x84] sm:$0xff]  }
  0x44   : > { %1886 = vrot.lane.b32.xlu0 %v3895_v46, %s4380_s20  ;;  %v2695_v57 = vshll.u32 %v4062_v44, 16  ;;  %v2701_v58 = vshll.u32 %v4063_v45, 16  ;;  %2221 = vrot.lane.b32.xlu1 %v3982_v42, %s4381_s21  ;;  %v2705_v63 = vshrl.u32 %v4063_v45, 16  ;;  %v2711_v9 = vshll.u32 %v4064_v54, 16  ;;  %v4042_v43 = vld [vmem:[%s4424_s16 + $0x28] sm:$0xf] }
  0x45   : > { %v2114_v60 = vsel %vm4426_vm2, %v2112_v52, %v2113_v48  ;;  %v2055_v61 = vsel %vm4426_vm2, %v3959_v49, %v2054_v53  ;;  %v2056_v62 = vrot.slane %v2054_v53, 4  ;;  %v2694_v3 = vrot.slane %v2692_v56, 4  ;;  %v4043_v48 = vld [vmem:[%s4424_s16 + $0x2c] sm:$0x1]  ;;  %v4126_v53 = vld [vmem:[%s4424_s16 + $0x78] sm:$0xe] }
  0x46   : > { %v3983_v2 = vcombine.low %v2111_v51, %v2114_v60  ;;  %v2697_v4 = vrot.slane %v2695_v57, 5  ;;  %v2703_v6 = vrot.slane %v2701_v58, 5  ;;  %v2707_v8 = vrot.slane %v2705_v63, 4  ;;  %v4309_v54 = vld [vmem:[%s4424_s16 + $0x24] sm:$0xff]  }
  0x47   : > { %v2058_v7 = vsel %vm4426_vm2, %v2056_v62, %v2057_v55  ;;  %v2500_v11 = vshrl.u32 %v4038_v59, 16  ;;  %v2503_v14 = vshll.u32 %v4038_v59, 16  ;;  %v2509_v15 = vshll.u32 %v4039_v1, 16  ;;  %v4127_v59 = vld [vmem:[%s4424_s16 + $0x7c] sm:$0xf] }
  0x48   : > { %2205 = vrot.lane.b32.xlu0 %v3974_v50, %s4381_s21  ;;  %v3975_v12 = vcombine.low %v2055_v61, %v2058_v7  ;;  %v2698_v13 = vor.u32 %v2697_v4, %v2694_v3  ;;  %2223 = vrot.lane.b32.xlu1 %v3983_v2, %s4381_s21  ;;  %v2708_v18 = vor.u32 %v2707_v8, %v2703_v6  ;;  %v2713_v19 = vrot.slane %v2711_v9, 5  ;;  %v4102_v7 = vld [vmem:[%s4424_s16 + $0x18] sm:$0xe]  ;;  %v4103_v8 = vld [vmem:[%s4424_s16 + $0x1c] sm:$0xf] }
  0x49   : > { %v2502_v20 = vrot.slane %v2500_v11, 4  ;;  %v2513_v21 = vshrl.u32 %v4039_v1, 16  ;;  %v2505_v24 = vrot.slane %v2503_v14, 5  ;;  %v2511_v25 = vrot.slane %v2509_v15, 5  ;;  %v4128_v1 = vld [vmem:[%s4424_s16 + $0x80] sm:$0x1] }
  0x4a   : > { %v2699_v23 = vrot.slane %v2698_v13, 4  ;;  %v2519_v26 = vshll.u32 %v4040_v10, 16  ;;  %v2709_v28 = vrot.slane %v2708_v18, 4  ;;  %v2716_v30 = vshrl.u32 %v4065_v16, 16 }
  0x4b   : > { %v2515_v29 = vrot.slane %v2513_v21, 4  ;;  %v2719_v31 = vshll.u32 %v4065_v16, 16  ;;  %v2506_v33 = vor.u32 %v2505_v24, %v2502_v20  ;;  %v2725_v36 = vshll.u32 %v4066_v22, 16 }
  0x4c   : > { %2207 = vrot.lane.b32.xlu0 %v3975_v12, %s4381_s21  ;;  %v2704_v32 = vsel %vm4476_vm5, %v2699_v23, %v2703_v6  ;;  %v2521_v34 = vrot.slane %v2519_v26, 5  ;;  %2402 = vrot.lane.b32.xlu1 %v4306_v17, %s4382_s22  ;;  %v2714_v39 = vsel %vm4476_vm5, %v2709_v28, %v2713_v19  ;;  %v2718_v41 = vrot.slane %v2716_v30, 4  ;;  %v4104_v17 = vld [vmem:[%s4424_s16 + $0x20] sm:$0x1] }
  0x4d   : > { %v2516_v40 = vor.u32 %v2515_v29, %v2511_v25  ;;  %v2721_v42 = vrot.slane %v2719_v31, 5  ;;  %v4094_v44 = vcombine.low %v2704_v32, %v2714_v39  ;;  %v2507_v45 = vrot.slane %v2506_v33, 4  ;;  %v383_v32 = vld [vmem:[%s4424_s16 + $0x80] sm:$0x1] }
  0x4e   : > { %v2727_v46 = vrot.slane %v2725_v36, 5  ;;  %v2729_v47 = vshrl.u32 %v4066_v22, 16  ;;  %v2735_v51 = vshll.u32 %v4067_v35, 16  ;;  %v2524_v52 = vshrl.u32 %v4041_v37, 16  ;;  %v381_v22 = vld [vmem:[%s4424_s16 + $0x78] sm:$0xf] }
  0x4f   : > { %v2517_v49 = vrot.slane %v2516_v40, 4  ;;  %v2722_v50 = vor.u32 %v2721_v42, %v2718_v41  ;;  %v2512_v55 = vsel %vm4476_vm5, %v2507_v45, %v2511_v25  ;;  %v2527_v57 = vshll.u32 %v4041_v37, 16  ;;  %v357_v37 = vld [vmem:[%s4424_s16 + $0x18] sm:$0xf] }
  0x50   : > { %2386 = vrot.lane.b32.xlu0 %v4307_v27, %s4382_s22  ;;  %v2731_v56 = vrot.slane %v2729_v47, 4  ;;  %v2533_v58 = vshll.u32 %v4042_v43, 16  ;;  %2404 = vrot.lane.b32.xlu1 %v4308_v38, %s4382_s22  ;;  %v2737_v62 = vrot.slane %v2735_v51, 5  ;;  %v2526_v63 = vrot.slane %v2524_v52, 4  ;;  %v382_v27 = vld [vmem:[%s4424_s16 + $0x7c] sm:$0xf] }
  0x51   : > { %v2522_v60 = vsel %vm4476_vm5, %v2517_v49, %v2521_v34  ;;  %v2723_v61 = vrot.slane %v2722_v50, 4  ;;  %v2529_v4 = vrot.slane %v2527_v57, 5  ;;  %v2537_v10 = vshrl.u32 %v4042_v43, 16  ;;  %v358_v38 = vld [vmem:[%s4424_s16 + $0x1c] sm:$0xf] }
  0x52   : > { %v4086_v2 = vcombine.low %v2512_v55, %v2522_v60  ;;  %v2732_v3 = vor.u32 %v2731_v56, %v2727_v46  ;;  %v2535_v6 = vrot.slane %v2533_v58, 5  ;;  %v2543_v11 = vshll.u32 %v4043_v48, 16  ;;  %v359_v43 = vld [vmem:[%s4424_s16 + $0x20] sm:$0x1]  ;;  %v4129_v48 = vld [vmem:[%s4424_s16 + $0x84] sm:$0xe] }
  0x53   : > { %v2728_v9 = vsel %vm4476_vm5, %v2723_v61, %v2727_v46  ;;  %v4158_v12 = vrot.slane %v4126_v53, 9  ;;  %v2530_v14 = vor.u32 %v2529_v4, %v2526_v63  ;;  %v3150_v15 = vrot.slane %v4127_v59, 5  ;;  %v4130_v53 = vld [vmem:[%s4424_s16 + $0x88] sm:$0xf]  ;;  %v4105_v59 = vld [vmem:[%s4424_s16 + $0x24] sm:$0xe] }
  0x54   : > { %2388 = vrot.lane.b32.xlu0 %v4309_v54, %s4382_s22  ;;  %v2733_v13 = vrot.slane %v2732_v3, 4  ;;  %v3153_v16 = vrot.slane %v4128_v1, 5  ;;  %2947 = vrot.lane.b32.xlu1 %v4094_v44, %s4383_s23  ;;  %v2539_v18 = vrot.slane %v2537_v10, 4  ;;  %v2545_v19 = vrot.slane %v2543_v11, 5  ;;  %v4131_v54 = vld [vmem:[%s4424_s16 + $0x8c] sm:$0x1] }
  0x55   : > { %v4150_v20 = vrot.slane %v4102_v7, 9  ;;  %v3094_v21 = vrot.slane %v4103_v8, 5  ;;  %v2531_v24 = vrot.slane %v2530_v14, 4  ;;  %v3151_v25 = vsel %vm4426_vm2, %v4158_v12, %v3150_v15  ;;  %v4106_v1 = vld [vmem:[%s4424_s16 + $0x28] sm:$0xf] }
  0x56   : > { %v2738_v23 = vsel %vm4476_vm5, %v2733_v13, %v2737_v62  ;;  %v3152_v26 = vrot.slane %v3150_v15, 4  ;;  %v2540_v29 = vor.u32 %v2539_v18, %v2535_v6  ;;  %v3097_v35 = vrot.slane %v4104_v17, 5  ;;  %v4107_v7 = vld [vmem:[%s4424_s16 + $0x2c] sm:$0x1]  ;;  %v384_v12 = vld [vmem:[%s4424_s16 + $0x84] sm:$0xf] }
  0x57   : > { %v4095_v28 = vcombine.low %v2728_v9, %v2738_v23  ;;  %v3095_v30 = vsel %vm4426_vm2, %v4150_v20, %v3094_v21  ;;  %v3096_v31 = vrot.slane %v3094_v21, 4  ;;  %v2536_v33 = vsel %vm4476_vm5, %v2531_v24, %v2535_v6  ;;  %v385_v21 = vld [vmem:[%s4424_s16 + $0x88] sm:$0xf] }
  0x58   : > { %2931 = vrot.lane.b32.xlu0 %v4086_v2, %s4383_s23  ;;  %v3154_v34 = vsel %vm4426_vm2, %v3152_v26, %v3153_v16  ;;  %v643_v36 = vshrl.u32 %v381_v22, 16  ;;  %v2541_v39 = vrot.slane %v2540_v29, 4  ;;  %v646_v41 = vshll.u32 %v381_v22, 16 }
  0x59   : > { %2949 = vrot.lane.b32.xlu1 %v4095_v28, %s4383_s23  ;;  %v4174_v40 = vcombine.low %v3151_v25, %v3154_v34  ;;  %v652_v42 = vshll.u32 %v382_v27, 16  ;;  %v3098_v44 = vsel %vm4426_vm2, %v3096_v31, %v3097_v35  ;;  %v656_v46 = vshrl.u32 %v382_v27, 16 }
  0x5a   : > { %v645_v45 = vrot.slane %v643_v36, 4  ;;  %v662_v47 = vshll.u32 %v383_v32, 16  ;;  %v2546_v49 = vsel %vm4476_vm5, %v2541_v39, %v2545_v19  ;;  %v4166_v50 = vcombine.low %v3095_v30, %v3098_v44  ;;  %v360_v39 = vld [vmem:[%s4424_s16 + $0x24] sm:$0xf] }
  0x5b   : > { %v648_v51 = vrot.slane %v646_v41, 5  ;;  %v654_v52 = vrot.slane %v652_v42, 5  ;;  %v4087_v55 = vcombine.low %v2536_v33, %v2546_v49  ;;  %v658_v56 = vrot.slane %v656_v46, 4  ;;  %v386_v33 = vld [vmem:[%s4424_s16 + $0x8c] sm:$0x1] }
  0x5c   : > { %v664_v57 = vrot.slane %v662_v47, 5  ;;  %v451_v58 = vshrl.u32 %v357_v37, 16  ;;  %v454_v61 = vshll.u32 %v357_v37, 16  ;;  %v460_v62 = vshll.u32 %v358_v38, 16  ;;  %v929_v46 = vld [vmem:[%s4424_s16 + $0x78] sm:$0xe] }
  0x5d   : > { %3268 = vrot.lane.b32.xlu1 %v4174_v40, %s4384_s24  ;;  %v649_v60 = vor.u32 %v648_v51, %v645_v45  ;;  %v464_v63 = vshrl.u32 %v358_v38, 16  ;;  %2933 = vrot.lane.b32.xlu0 %v4087_v55, %s4383_s23  ;;  %v659_v2 = vor.u32 %v658_v56, %v654_v52  ;;  %v470_v4 = vshll.u32 %v359_v43, 16  ;;  %v361_v40 = vld [vmem:[%s4424_s16 + $0x28] sm:$0xf]  ;;  %v362_v45 = vld [vmem:[%s4424_s16 + $0x2c] sm:$0x1] }
  0x5e   : > { %v453_v3 = vrot.slane %v451_v58, 4  ;;  %v4159_v6 = vrot.slane %v4129_v48, 9  ;;  %v456_v9 = vrot.slane %v454_v61, 5  ;;  %v462_v10 = vrot.slane %v460_v62, 5  ;;  %v930_v51 = vld [vmem:[%s4424_s16 + $0x7c] sm:$0xf] }
  0x5f   : > { %v650_v8 = vrot.slane %v649_v60, 4  ;;  %v466_v11 = vrot.slane %v464_v63, 4  ;;  %v660_v13 = vrot.slane %v659_v2, 4  ;;  %v472_v14 = vrot.slane %v470_v4, 5  ;;  %v931_v56 = vld [vmem:[%s4424_s16 + $0x80] sm:$0x1] }
  0x60   : > { %v3157_v15 = vrot.slane %v4130_v53, 5  ;;  %v3160_v16 = vrot.slane %v4131_v54, 5  ;;  %v457_v18 = vor.u32 %v456_v9, %v453_v3  ;;  %v4151_v20 = vrot.slane %v4105_v59, 9  ;;  %v905_v61 = vld [vmem:[%s4424_s16 + $0x18] sm:$0xe] }
  0x61   : > { %v655_v17 = vsel %vm4476_vm5, %v650_v8, %v654_v52  ;;  %v467_v19 = vor.u32 %v466_v11, %v462_v10  ;;  %3252 = vrot.lane.b32.xlu0 %v4166_v50, %s4384_s24  ;;  %v665_v22 = vsel %vm4476_vm5, %v660_v13, %v664_v57  ;;  %v3101_v25 = vrot.slane %v4106_v1, 5  ;;  %v906_v3 = vld [vmem:[%s4424_s16 + $0x1c] sm:$0xf]  ;;  %v907_v9 = vld [vmem:[%s4424_s16 + $0x20] sm:$0x1] }
  0x62   : > { %v3158_v23 = vsel %vm4426_vm2, %v4159_v6, %v3157_v15  ;;  %v3159_v24 = vrot.slane %v3157_v15, 4  ;;  %v3760_v26 = vcombine.low %v655_v17, %v665_v22  ;;  %v458_v27 = vrot.slane %v457_v18, 4  ;;  %v4332_v15 = vld [vmem:[%s5603_s1] sm:$0xff]  }
  0x63   : > { %v468_v28 = vrot.slane %v467_v19, 4  ;;  %v3104_v29 = vrot.slane %v4107_v7, 5  ;;  %v3102_v31 = vsel %vm4426_vm2, %v4151_v20, %v3101_v25  ;;  %v3103_v32 = vrot.slane %v3101_v25, 4  ;;  %v933_v20 = vld [vmem:[%s4424_s16 + $0x88] sm:$0xf]  ;;  %4223 = vmatprep.subr.bf16.mxu0 %v4332_v15  ;;  %4261 = vmatprep.subr.bf16.mxu1 %v4332_v15 }
  0x64   : > { %v3161_v30 = vsel %vm4426_vm2, %v3159_v24, %v3160_v16  ;;  %v667_v34 = vshrl.u32 %v384_v12, 16  ;;  %854 = vrot.lane.b32.xlu1 %v3760_v26, %s4379_s19  ;;  %v463_v35 = vsel %vm4476_vm5, %v458_v27, %v462_v10  ;;  %v670_v38 = vshll.u32 %v384_v12, 16  ;;  %v908_v26 = vld [vmem:[%s4424_s16 + $0x24] sm:$0xe]  ;;  %v4333_v27 = vld [vmem:[%s5603_s1 + $0x8] sm:$0xff]   ;;  %4224 = vmatpush3.bf16.msra.mxu0 %v4332_v15 }
  0x65   : > { %v473_v36 = vsel %vm4476_vm5, %v468_v28, %v472_v14  ;;  %v4175_v37 = vcombine.low %v3158_v23, %v3161_v30  ;;  %v3105_v42 = vsel %vm4426_vm2, %v3103_v32, %v3104_v29  ;;  %v676_v44 = vshll.u32 %v385_v21, 16  ;;  %v932_v14 = vld [vmem:[%s4424_s16 + $0x84] sm:$0xe]  ;;  %v909_v32 = vld [vmem:[%s4424_s16 + $0x28] sm:$0xf]  ;;  %4264 = vmatpush3.bf16.msra.mxu1 %v4332_v15  ;;  %4225 = vmatprep.subr.bf16.mxu0 %v4333_v27 }
  0x66   : > { %v3752_v41 = vcombine.low %v463_v35, %v473_v36  ;;  %v669_v43 = vrot.slane %v667_v34, 4  ;;  %v4167_v47 = vcombine.low %v3102_v31, %v3105_v42  ;;  %v672_v48 = vrot.slane %v670_v38, 5  ;;  %v3876_v42 = vld [vmem:[%s4424_s16 + $0x84] sm:$0xf]  ;;  %4262 = vmatprep.subr.bf16.mxu1 %v4333_v27 }
  0x67   : > { %v680_v49 = vshrl.u32 %v385_v21, 16  ;;  %v686_v50 = vshll.u32 %v386_v33, 16  ;;  %v678_v52 = vrot.slane %v676_v44, 5  ;;  %v475_v53 = vshrl.u32 %v360_v39, 16  ;;  %v934_v21 = vld [vmem:[%s4424_s16 + $0x8c] sm:$0x1] }
  0x68   : > { %838 = vrot.lane.b32.xlu0 %v3752_v41, %s4379_s19  ;;  %v478_v54 = vshll.u32 %v360_v39, 16  ;;  %v484_v55 = vshll.u32 %v361_v40, 16  ;;  %3270 = vrot.lane.b32.xlu1 %v4175_v37, %s4384_s24  ;;  %v673_v57 = vor.u32 %v672_v48, %v669_v43  ;;  %v488_v60 = vshrl.u32 %v361_v40, 16  ;;  %v910_v37 = vld [vmem:[%s4424_s16 + $0x2c] sm:$0x1] }
  0x69   : > { %v682_v58 = vrot.slane %v680_v49, 4  ;;  %v688_v59 = vrot.slane %v686_v50, 5  ;;  %v477_v62 = vrot.slane %v475_v53, 4  ;;  %v494_v2 = vshll.u32 %v362_v45, 16  ;;  %v3877_v43 = vld [vmem:[%s4424_s16 + $0x88] sm:$0xf]  ;;  %4226 = vmatpush3.bf16.msra.mxu0 %v4333_v27  ;;  %4265 = vmatpush3.bf16.msra.mxu1 %v4333_v27 }
  0x6a   : > { %v480_v63 = vrot.slane %v478_v54, 5  ;;  %v486_v1 = vrot.slane %v484_v55, 5  ;;  %v674_v4 = vrot.slane %v673_v57, 4  ;;  %v490_v7 = vrot.slane %v488_v60, 4  ;;  %v3878_v48 = vld [vmem:[%s4424_s16 + $0x8c] sm:$0x1] }
  0x6b   : > { %v683_v6 = vor.u32 %v682_v58, %v678_v52  ;;  %v3776_v8 = vrot.slane %v929_v46, 9  ;;  %v496_v11 = vrot.slane %v494_v2, 5  ;;  %v1070_v12 = vrot.slane %v930_v51, 5  ;;  %v3852_v53 = vld [vmem:[%s4424_s16 + $0x24] sm:$0xf] }
  0x6c   : > { %3254 = vrot.lane.b32.xlu0 %v4167_v47, %s4384_s24  ;;  %v481_v10 = vor.u32 %v480_v63, %v477_v62  ;;  %v1073_v13 = vrot.slane %v931_v56, 5  ;;  %v679_v16 = vsel %vm4476_vm5, %v674_v4, %v678_v52  ;;  %v491_v18 = vor.u32 %v490_v7, %v486_v1  ;;  %v3853_v54 = vld [vmem:[%s4424_s16 + $0x28] sm:$0xf] }
  0x6d   : > { %v684_v17 = vrot.slane %v683_v6, 4  ;;  %v3768_v19 = vrot.slane %v905_v61, 9  ;;  %v1071_v23 = vsel %vm4426_vm2, %v3776_v8, %v1070_v12  ;;  %v1072_v24 = vrot.slane %v1070_v12, 4 }
  0x6e   : > { %v482_v22 = vrot.slane %v481_v10, 4  ;;  %v1014_v25 = vrot.slane %v906_v3, 5  ;;  %v492_v29 = vrot.slane %v491_v18, 4  ;;  %v1017_v30 = vrot.slane %v907_v9, 5 }
  0x6f   : > { %v689_v28 = vsel %vm4476_vm5, %v684_v17, %v688_v59  ;;  %v3777_v31 = vrot.slane %v932_v14, 9  ;;  %v1074_v35 = vsel %vm4426_vm2, %v1072_v24, %v1073_v13  ;;  %v1077_v41 = vrot.slane %v933_v20, 5  ;;  %v3854_v59 = vld [vmem:[%s4424_s16 + $0x2c] sm:$0x1]  ;;  %v4310_v20 = vld [vmem:[%s4424_s16 + $0x84] sm:$0xff]  }
  0x70   : > { %v3761_v33 = vcombine.low %v679_v16, %v689_v28  ;;  %v487_v34 = vsel %vm4476_vm5, %v482_v22, %v486_v1  ;;  %v1015_v36 = vsel %vm4426_vm2, %v3768_v19, %v1014_v25  ;;  %v497_v38 = vsel %vm4476_vm5, %v492_v29, %v496_v11  ;;  %v3879_v1 = vld [vmem:[%s4424_s16 + $0x90] sm:$0xf]  ;;  %v3880_v19 = vld [vmem:[%s4424_s16 + $0x94] sm:$0xf]  ;;  %v3881_v29 = vld [vmem:[%s4424_s16 + $0x98] sm:$0x1] }
  0x71   : > { %v3792_v39 = vcombine.low %v1071_v23, %v1074_v35  ;;  %v1016_v40 = vrot.slane %v1014_v25, 4  ;;  %v3753_v44 = vcombine.low %v487_v34, %v497_v38  ;;  %v1080_v45 = vrot.slane %v934_v21, 5  ;;  %v3855_v35 = vld [vmem:[%s4424_s16 + $0x30] sm:$0xf] }
  0x72   : > { %856 = vrot.lane.b32.xlu1 %v3761_v33, %s4379_s19  ;;  %v3769_v46 = vrot.slane %v908_v26, 9  ;;  %v1021_v47 = vrot.slane %v909_v32, 5  ;;  %v1078_v50 = vsel %vm4426_vm2, %v3777_v31, %v1077_v41  ;;  %v1079_v51 = vrot.slane %v1077_v41, 4  ;;  %v4312_v41 = vld [vmem:[%s4424_s16 + $0x90] sm:$0xff]  }
  0x73   : > { %v1018_v49 = vsel %vm4426_vm2, %v1016_v40, %v1017_v30  ;;  %v1024_v52 = vrot.slane %v910_v37, 5  ;;  %840 = vrot.lane.b32.xlu0 %v3753_v44, %s4379_s19  ;;  %v1693_v58 = vshrl.u32 %v3876_v42, 16  ;;  %v1696_v61 = vshll.u32 %v3876_v42, 16  ;;  %v4311_v30 = vld [vmem:[%s4424_s16 + $0x24] sm:$0xff]   ;;  %v3856_v40 = vld [vmem:[%s4424_s16 + $0x34] sm:$0xf] }
  0x74   : > { %v3784_v55 = vcombine.low %v1015_v36, %v1018_v49  ;;  %v1022_v56 = vsel %vm4426_vm2, %v3769_v46, %v1021_v47  ;;  %v1023_v57 = vrot.slane %v1021_v47, 4  ;;  %v1081_v60 = vsel %vm4426_vm2, %v1079_v51, %v1080_v45  ;;  %v4313_v42 = vld [vmem:[%s4424_s16 + $0x30] sm:$0xff]  }
  0x75   : > { %v1702_v62 = vshll.u32 %v3877_v43, 16  ;;  %v1706_v63 = vshrl.u32 %v3877_v43, 16  ;;  %v3793_v2 = vcombine.low %v1078_v50, %v1081_v60  ;;  %v1695_v4 = vrot.slane %v1693_v58, 4  ;;  %v3857_v50 = vld [vmem:[%s4424_s16 + $0x38] sm:$0x1] }
  0x76   : > { %1178 = vrot.lane.b32.xlu1 %v3792_v39, %s4378_s18  ;;  %v1025_v3 = vsel %vm4426_vm2, %v1023_v57, %v1024_v52  ;;  %v1712_v6 = vshll.u32 %v3878_v48, 16  ;;  %v1698_v8 = vrot.slane %v1696_v61, 5  ;;  %v1501_v12 = vshrl.u32 %v3852_v53, 16  ;;  %v3941_v57 = vld [vmem:[%s4424_s16 + $0x88] sm:$0xf] }
  0x77   : > { %v3785_v7 = vcombine.low %v1022_v56, %v1025_v3  ;;  %v1704_v9 = vrot.slane %v1702_v62, 5  ;;  %v1708_v10 = vrot.slane %v1706_v63, 4  ;;  %1162 = vrot.lane.b32.xlu0 %v3784_v55, %s4378_s18  ;;  %v1504_v13 = vshll.u32 %v3852_v53, 16  ;;  %v3940_v56 = vld [vmem:[%s4424_s16 + $0x84] sm:$0xe] }
  0x78   : > { %v1714_v11 = vrot.slane %v1712_v6, 5  ;;  %v1510_v14 = vshll.u32 %v3853_v54, 16  ;;  %v1699_v15 = vor.u32 %v1698_v8, %v1695_v4  ;;  %v1514_v17 = vshrl.u32 %v3853_v54, 16  ;;  %v3942_v62 = vld [vmem:[%s4424_s16 + $0x8c] sm:$0x1] }
  0x79   : > { %v1709_v16 = vor.u32 %v1708_v10, %v1704_v9  ;;  %v1520_v18 = vshll.u32 %v3854_v59, 16  ;;  %v1503_v21 = vrot.slane %v1501_v12, 4  ;;  %v1506_v22 = vrot.slane %v1504_v13, 5  ;;  %v3916_v63 = vld [vmem:[%s4424_s16 + $0x24] sm:$0xe] }
  0x7a   : > { %1180 = vrot.lane.b32.xlu1 %v3793_v2, %s4378_s18  ;;  %v1512_v23 = vrot.slane %v1510_v14, 5  ;;  %v1717_v24 = vshrl.u32 %v3879_v1, 16  ;;  %v1700_v25 = vrot.slane %v1699_v15, 4  ;;  %v1516_v27 = vrot.slane %v1514_v17, 4  ;;  %v3917_v6 = vld [vmem:[%s4424_s16 + $0x28] sm:$0xf] }
  0x7b   : > { %v1710_v26 = vrot.slane %v1709_v16, 4  ;;  %v1522_v28 = vrot.slane %v1520_v18, 5  ;;  %1164 = vrot.lane.b32.xlu0 %v3785_v7, %s4378_s18  ;;  %v1507_v31 = vor.u32 %v1506_v22, %v1503_v21  ;;  %v1720_v33 = vshll.u32 %v3879_v1, 16  ;;  %v3943_v16 = vld [vmem:[%s4424_s16 + $0x90] sm:$0xe] }
  0x7c   : > { %v1719_v32 = vrot.slane %v1717_v24, 4  ;;  %v1726_v34 = vshll.u32 %v3880_v19, 16  ;;  %v1705_v36 = vsel %vm4476_vm5, %v1700_v25, %v1704_v9  ;;  %v1517_v38 = vor.u32 %v1516_v27, %v1512_v23  ;;  %v3944_v17 = vld [vmem:[%s4424_s16 + $0x94] sm:$0xf]  ;;  %v3945_v22 = vld [vmem:[%s4424_s16 + $0x98] sm:$0x1] }
  0x7d   : > { %v1715_v37 = vsel %vm4476_vm5, %v1710_v26, %v1714_v11  ;;  %v1730_v39 = vshrl.u32 %v3880_v19, 16  ;;  %v1508_v44 = vrot.slane %v1507_v31, 4  ;;  %v1722_v45 = vrot.slane %v1720_v33, 5  ;;  %v3918_v11 = vld [vmem:[%s4424_s16 + $0x2c] sm:$0x1] }
  0x7e   : > { %1359 = vrot.lane.b32.xlu1 %v4310_v20, %s4377_s17  ;;  %v3904_v43 = vcombine.low %v1705_v36, %v1715_v37  ;;  %v1728_v46 = vrot.slane %v1726_v34, 5  ;;  %v1518_v47 = vrot.slane %v1517_v38, 4  ;;  %v1736_v49 = vshll.u32 %v3881_v29, 16  ;;  %v3919_v27 = vld [vmem:[%s4424_s16 + $0x30] sm:$0xe] }
  0x7f   : > { %v1732_v48 = vrot.slane %v1730_v39, 4  ;;  %v1525_v51 = vshrl.u32 %v3855_v35, 16  ;;  %1343 = vrot.lane.b32.xlu0 %v4311_v30, %s4377_s17  ;;  %v1513_v52 = vsel %vm4476_vm5, %v1508_v44, %v1512_v23  ;;  %v1723_v53 = vor.u32 %v1722_v45, %v1719_v32  ;;  %v3920_v32 = vld [vmem:[%s4424_s16 + $0x34] sm:$0xf]  ;;  %v3921_v37 = vld [vmem:[%s4424_s16 + $0x38] sm:$0x1] }
  0x80   : > { %v1528_v54 = vshll.u32 %v3855_v35, 16  ;;  %v1534_v55 = vshll.u32 %v3856_v40, 16  ;;  %v1523_v58 = vsel %vm4476_vm5, %v1518_v47, %v1522_v28  ;;  %v1738_v60 = vrot.slane %v1736_v49, 5  ;;  %v4068_v38 = vld [vmem:[%s4424_s16 + $0x90] sm:$0xf] }
  0x81   : > { %v1733_v59 = vor.u32 %v1732_v48, %v1728_v46  ;;  %v1527_v61 = vrot.slane %v1525_v51, 4  ;;  %v3896_v1 = vcombine.low %v1513_v52, %v1523_v58  ;;  %v1724_v2 = vrot.slane %v1723_v53, 4  ;;  %v4070_v44 = vld [vmem:[%s4424_s16 + $0x98] sm:$0x1]  ;;  %v4044_v45 = vld [vmem:[%s4424_s16 + $0x30] sm:$0xf] }
  0x82   : > { %1361 = vrot.lane.b32.xlu1 %v4312_v41, %s4377_s17  ;;  %v1530_v3 = vrot.slane %v1528_v54, 5  ;;  %v1536_v4 = vrot.slane %v1534_v55, 5  ;;  %v1538_v8 = vshrl.u32 %v3856_v40, 16  ;;  %v1544_v9 = vshll.u32 %v3857_v50, 16 }
  0x83   : > { %v1734_v7 = vrot.slane %v1733_v59, 4  ;;  %v3968_v10 = vrot.slane %v3940_v56, 9  ;;  %1345 = vrot.lane.b32.xlu0 %v4313_v42, %s4377_s17  ;;  %v1729_v12 = vsel %vm4476_vm5, %v1724_v2, %v1728_v46  ;;  %v2117_v14 = vrot.slane %v3941_v57, 5  ;;  %v4045_v59 = vld [vmem:[%s4424_s16 + $0x34] sm:$0xf] }
  0x84   : > { %v1531_v13 = vor.u32 %v1530_v3, %v1527_v61  ;;  %v2120_v15 = vrot.slane %v3942_v62, 5  ;;  %v1540_v19 = vrot.slane %v1538_v8, 4  ;;  %v1546_v20 = vrot.slane %v1544_v9, 5 }
  0x85   : > { %v1739_v18 = vsel %vm4476_vm5, %v1734_v7, %v1738_v60  ;;  %v3960_v21 = vrot.slane %v3916_v63, 9  ;;  %v2118_v25 = vsel %vm4426_vm2, %v3968_v10, %v2117_v14  ;;  %v2119_v26 = vrot.slane %v2117_v14, 4  ;;  %v4772_v46 = vpop.permute.xlu1 %1355 }
  0x86   : > { %1904 = vrot.lane.b32.xlu1 %v3904_v43, %s4380_s20  ;;  %v3905_v23 = vcombine.low %v1729_v12, %v1739_v18  ;;  %v1532_v24 = vrot.slane %v1531_v13, 4  ;;  %v1541_v28 = vor.u32 %v1540_v19, %v1536_v4  ;;  %v2061_v29 = vrot.slane %v3917_v6, 5  ;;  %v4069_v43 = vld [vmem:[%s4424_s16 + $0x94] sm:$0xf]  ;;  %v4071_v12 = vld [vmem:[%s4424_s16 + $0x9c] sm:$0xf] }
  0x87   : > { %v2064_v30 = vrot.slane %v3918_v11, 5  ;;  %v3969_v31 = vrot.slane %v3943_v16, 9  ;;  %1888 = vrot.lane.b32.xlu0 %v3896_v1, %s4380_s20  ;;  %v2121_v34 = vsel %vm4426_vm2, %v2119_v26, %v2120_v15  ;;  %v2124_v35 = vrot.slane %v3944_v17, 5  ;;  %v4791_v11 = vpop.permute.xlu0 %1339  ;;  %v4072_v18 = vld [vmem:[%s4424_s16 + $0xa0] sm:$0xf] }
  0x88   : > { %v1537_v33 = vsel %vm4476_vm5, %v1532_v24, %v1536_v4  ;;  %v2127_v36 = vrot.slane %v3945_v22, 5  ;;  %v1542_v39 = vrot.slane %v1541_v28, 4  ;;  %v3984_v40 = vcombine.low %v2118_v25, %v2121_v34  ;;  %v4046_v4 = vld [vmem:[%s4424_s16 + $0x38] sm:$0x1]  ;;  %v4314_v24 = vld [vmem:[%s4424_s16 + $0x90] sm:$0xff]  }
  0x89   : > { %v2062_v41 = vsel %vm4426_vm2, %v3960_v21, %v2061_v29  ;;  %v2063_v42 = vrot.slane %v2061_v29, 4  ;;  %v2125_v47 = vsel %vm4426_vm2, %v3969_v31, %v2124_v35  ;;  %v2126_v48 = vrot.slane %v2124_v35, 4  ;;  %v4047_v29 = vld [vmem:[%s4424_s16 + $0x3c] sm:$0xf] }
  0x8a   : > { %1906 = vrot.lane.b32.xlu1 %v3905_v23, %s4380_s20  ;;  %v3961_v49 = vrot.slane %v3919_v27, 9  ;;  %v2068_v50 = vrot.slane %v3920_v32, 5  ;;  %v1547_v51 = vsel %vm4476_vm5, %v1542_v39, %v1546_v20  ;;  %v2071_v53 = vrot.slane %v3921_v37, 5  ;;  %v4073_v23 = vld [vmem:[%s4424_s16 + $0xa4] sm:$0x1] }
  0x8b   : > { %v2065_v52 = vsel %vm4426_vm2, %v2063_v42, %v2064_v30  ;;  %v2740_v54 = vshrl.u32 %v4068_v38, 16  ;;  %v3897_v55 = vcombine.low %v1537_v33, %v1547_v51  ;;  %v2128_v57 = vsel %vm4426_vm2, %v2126_v48, %v2127_v36  ;;  %v4048_v51 = vld [vmem:[%s4424_s16 + $0x40] sm:$0xf] }
  0x8c   : > { %v3976_v56 = vcombine.low %v2062_v41, %v2065_v52  ;;  %v2069_v58 = vsel %vm4426_vm2, %v3961_v49, %v2068_v50  ;;  %v3985_v60 = vcombine.low %v2125_v47, %v2128_v57  ;;  %v2070_v61 = vrot.slane %v2068_v50, 4  ;;  %v4794_v13 = vpop.permute.xlu1 %1174  ;;  %v4317_v57 = vld [vmem:[%s4424_s16 + $0x3c] sm:$0xff]  }
  0x8d   : > { %v2742_v62 = vrot.slane %v2740_v54, 4  ;;  %v2743_v63 = vshll.u32 %v4068_v38, 16  ;;  %1890 = vrot.lane.b32.xlu0 %v3897_v55, %s4380_s20  ;;  %v2749_v1 = vshll.u32 %v4069_v43, 16  ;;  %v2753_v2 = vshrl.u32 %v4069_v43, 16  ;;  %v4315_v38 = vld [vmem:[%s4424_s16 + $0x30] sm:$0xff]  }
  0x8e   : > { %2225 = vrot.lane.b32.xlu1 %v3984_v40, %s4381_s21  ;;  %v2759_v3 = vshll.u32 %v4070_v44, 16  ;;  %v2548_v6 = vshrl.u32 %v4044_v45, 16  ;;  %v2072_v7 = vsel %vm4426_vm2, %v2070_v61, %v2071_v53  ;;  %v2551_v9 = vshll.u32 %v4044_v45, 16  ;;  %v4805_v43 = vpop.permute.xlu0 %1158  ;;  %v4316_v45 = vld [vmem:[%s4424_s16 + $0x9c] sm:$0xff]   ;;  %v4049_v55 = vld [vmem:[%s4424_s16 + $0x44] sm:$0x1] }
  0x8f   : > { %v2745_v8 = vrot.slane %v2743_v63, 5  ;;  %v2557_v10 = vshll.u32 %v4045_v59, 16  ;;  %v3977_v14 = vcombine.low %v2069_v58, %v2072_v7  ;;  %v2751_v15 = vrot.slane %v2749_v1, 5 }
  0x90   : > { %v2755_v16 = vrot.slane %v2753_v2, 4  ;;  %v2761_v17 = vrot.slane %v2759_v3, 5  ;;  %v2550_v20 = vrot.slane %v2548_v6, 4  ;;  %v2553_v21 = vrot.slane %v2551_v9, 5 }
  0x91   : > { %v2746_v19 = vor.u32 %v2745_v8, %v2742_v62  ;;  %v2559_v22 = vrot.slane %v2557_v10, 5  ;;  %2209 = vrot.lane.b32.xlu0 %v3976_v56, %s4381_s21  ;;  %v2561_v26 = vshrl.u32 %v4045_v59, 16  ;;  %v2567_v27 = vshll.u32 %v4046_v4, 16  ;;  %v4807_v44 = vpop.permute.xlu1 %1176  ;;  %v4132_v62 = vld [vmem:[%s4424_s16 + $0x90] sm:$0xe] }
  0x92   : > { %2227 = vrot.lane.b32.xlu1 %v3985_v60, %s4381_s21  ;;  %v2756_v25 = vor.u32 %v2755_v16, %v2751_v15  ;;  %v2764_v28 = vshrl.u32 %v4071_v12, 16  ;;  %v2554_v31 = vor.u32 %v2553_v21, %v2550_v20  ;;  %v2767_v32 = vshll.u32 %v4071_v12, 16  ;;  %v4133_v4 = vld [vmem:[%s4424_s16 + $0x94] sm:$0xf]  ;;  %v4134_v10 = vld [vmem:[%s4424_s16 + $0x98] sm:$0x1]  ;;  %v4831_v20 = vpop.permute.xlu0 %1160 }
  0x93   : > { %v2747_v30 = vrot.slane %v2746_v19, 4  ;;  %v2773_v33 = vshll.u32 %v4072_v18, 16  ;;  %v2563_v35 = vrot.slane %v2561_v26, 4  ;;  %v2569_v36 = vrot.slane %v2567_v27, 5  ;;  %v4108_v12 = vld [vmem:[%s4424_s16 + $0x30] sm:$0xe] }
  0x94   : > { %v2757_v34 = vrot.slane %v2756_v25, 4  ;;  %v2766_v37 = vrot.slane %v2764_v28, 4  ;;  %v2555_v40 = vrot.slane %v2554_v31, 4  ;;  %v2769_v41 = vrot.slane %v2767_v32, 5  ;;  %v4110_v19 = vld [vmem:[%s4424_s16 + $0x38] sm:$0x1] }
  0x95   : > { %v2752_v39 = vsel %vm4476_vm5, %v2747_v30, %v2751_v15  ;;  %v2775_v42 = vrot.slane %v2773_v33, 5  ;;  %2211 = vrot.lane.b32.xlu0 %v3977_v14, %s4381_s21  ;;  %v2564_v48 = vor.u32 %v2563_v35, %v2559_v22  ;;  %v2777_v49 = vshrl.u32 %v4072_v18, 16  ;;  %v4109_v18 = vld [vmem:[%s4424_s16 + $0x34] sm:$0xf]  ;;  %v387_v30 = vld [vmem:[%s4424_s16 + $0x90] sm:$0xf] }
  0x96   : > { %2406 = vrot.lane.b32.xlu1 %v4314_v24, %s4382_s22  ;;  %v2762_v47 = vsel %vm4476_vm5, %v2757_v34, %v2761_v17  ;;  %v2783_v50 = vshll.u32 %v4073_v23, 16  ;;  %v2560_v53 = vsel %vm4476_vm5, %v2555_v40, %v2559_v22  ;;  %v2770_v54 = vor.u32 %v2769_v41, %v2766_v37  ;;  %v388_v35 = vld [vmem:[%s4424_s16 + $0x94] sm:$0xf]  ;;  %v389_v40 = vld [vmem:[%s4424_s16 + $0x98] sm:$0x1] }
  0x97   : > { %v4096_v52 = vcombine.low %v2752_v39, %v2762_v47  ;;  %v2572_v56 = vshrl.u32 %v4047_v29, 16  ;;  %v2565_v58 = vrot.slane %v2564_v48, 4  ;;  %v2779_v59 = vrot.slane %v2777_v49, 4  ;;  %v363_v41 = vld [vmem:[%s4424_s16 + $0x30] sm:$0xf] }
  0x98   : > { %v2785_v60 = vrot.slane %v2783_v50, 5  ;;  %v2575_v61 = vshll.u32 %v4047_v29, 16  ;;  %v2771_v63 = vrot.slane %v2770_v54, 4  ;;  %v2581_v2 = vshll.u32 %v4048_v51, 16  ;;  %v364_v49 = vld [vmem:[%s4424_s16 + $0x34] sm:$0xf] }
  0x99   : > { %v2574_v1 = vrot.slane %v2572_v56, 4  ;;  %v2585_v3 = vshrl.u32 %v4048_v51, 16  ;;  %2390 = vrot.lane.b32.xlu0 %v4315_v38, %s4382_s22  ;;  %v2570_v6 = vsel %vm4476_vm5, %v2565_v58, %v2569_v36  ;;  %v2780_v7 = vor.u32 %v2779_v59, %v2775_v42  ;;  %v4833_v21 = vpop.permute.xlu1 %836  ;;  %v365_v50 = vld [vmem:[%s4424_s16 + $0x38] sm:$0x1] }
  0x9a   : > { %2408 = vrot.lane.b32.xlu1 %v4316_v45, %s4382_s22  ;;  %v2577_v8 = vrot.slane %v2575_v61, 5  ;;  %v2591_v9 = vshll.u32 %v4049_v55, 16  ;;  %v4088_v14 = vcombine.low %v2560_v53, %v2570_v6  ;;  %v2776_v15 = vsel %vm4476_vm5, %v2771_v63, %v2775_v42  ;;  %v4321_v6 = vld [vmem:[%s4424_s16 + $0x60] sm:$0xff]  }
  0x9b   : > { %v2583_v16 = vrot.slane %v2581_v2, 5  ;;  %v2587_v17 = vrot.slane %v2585_v3, 4  ;;  %v2781_v22 = vrot.slane %v2780_v7, 4  ;;  %v4160_v25 = vrot.slane %v4132_v62, 9  ;;  %v4318_v2 = vld [vmem:[%s4424_s16 + $0xc] sm:$0xff]   ;;  %v4319_v3 = vld [vmem:[%s4424_s16] sm:$0xff]  }
  0x9c   : > { %v2578_v23 = vor.u32 %v2577_v8, %v2574_v1  ;;  %v2593_v24 = vrot.slane %v2591_v9, 5  ;;  %v3164_v27 = vrot.slane %v4133_v4, 5  ;;  %v3167_v28 = vrot.slane %v4134_v10, 5  ;;  %v4857_v55 = vpop.permute.xlu0 %834  ;;  %v4320_v4 = vld [vmem:[%s4424_s16 + $0x6c] sm:$0xff]   ;;  %v4330_v7 = vld [vmem:[%s4424_s16 + $0x78] sm:$0xff]   ;;  %v4334_v9 = vld [vmem:[%s4424_s16 + $0x84] sm:$0xff]  }
  0x9d   : > { %v2588_v26 = vor.u32 %v2587_v17, %v2583_v16  ;;  %v4152_v29 = vrot.slane %v4108_v12, 9  ;;  %2392 = vrot.lane.b32.xlu0 %v4317_v57, %s4382_s22  ;;  %v2786_v31 = vsel %vm4476_vm5, %v2781_v22, %v2785_v60  ;;  %v3108_v33 = vrot.slane %v4109_v18, 5  ;;  %v4331_v8 = vld [vmem:[%s4424_s16 + $0x18] sm:$0xff]   ;;  %336 = vst.msk [vmem:[#allocation2 + $0x8] sm:$0xff] %vm334_vm6, %v4318_v2  ;;  %335 = vst.msk [vmem:[#allocation2] sm:$0xff] %vm334_vm6, %v4319_v3 }
  0x9e   : > { %2951 = vrot.lane.b32.xlu1 %v4096_v52, %s4383_s23  ;;  %v2579_v32 = vrot.slane %v2578_v23, 4  ;;  %v3111_v34 = vrot.slane %v4110_v19, 5  ;;  %v4097_v36 = vcombine.low %v2776_v15, %v2786_v31  ;;  %v3165_v38 = vsel %vm4426_vm2, %v4160_v25, %v3164_v27  ;;  %v4136_v23 = vld [vmem:[%s4424_s16 + $0xa0] sm:$0xf]  ;;  %v4111_v25 = vld [vmem:[%s4424_s16 + $0x3c] sm:$0xe] }
  0x9f   : > { %v2589_v37 = vrot.slane %v2588_v26, 4  ;;  %v3166_v39 = vrot.slane %v3164_v27, 4  ;;  %v4849_v45 = vsel %vm4426_vm2, %v4152_v29, %v3108_v33  ;;  %v3110_v47 = vrot.slane %v3108_v33, 4  ;;  %v4335_v26 = vld [vmem:[%s4424_s16 + $0x24] sm:$0xff]   ;;  %344 = vst.msk [vmem:[#allocation2 + $0x48] sm:$0xff] %vm334_vm6, %v4320_v4  ;;  %343 = vst.msk [vmem:[#allocation2 + $0x40] sm:$0xff] %vm334_vm6, %v4321_v6 }
  0xa0   : > { %v2584_v42 = vsel %vm4476_vm5, %v2579_v32, %v2583_v16  ;;  %v691_v48 = vshrl.u32 %v387_v30, 16  ;;  %v694_v53 = vshll.u32 %v387_v30, 16  ;;  %v700_v54 = vshll.u32 %v388_v35, 16  ;;  %v4876_v16 = vld [vmem:[%s4424_s16 + $0x9c] sm:$0xe]  ;;  %345 = vst.msk [vmem:[#allocation2 + $0x50] sm:$0xff] %vm334_vm6, %v4330_v7 }
  0xa1   : > { %v2594_v51 = vsel %vm4476_vm5, %v2589_v37, %v2593_v24  ;;  %v3168_v52 = vsel %vm4426_vm2, %v3166_v39, %v3167_v28  ;;  %v4859_v56 = vpop.permute.xlu1 %852  ;;  %2935 = vrot.lane.b32.xlu0 %v4088_v14, %s4383_s23  ;;  %v3112_v59 = vsel %vm4426_vm2, %v3110_v47, %v3111_v34  ;;  %v704_v1 = vshrl.u32 %v388_v35, 16  ;;  %v4880_v24 = vld [vmem:[%s4424_s16 + $0xa4] sm:$0x1]  ;;  %v4112_v35 = vld [vmem:[%s4424_s16 + $0x40] sm:$0xf]  ;;  %337 = vst.msk [vmem:[#allocation2 + $0x10] sm:$0xff] %vm334_vm6, %v4331_v8 }
  0xa2   : > { %2953 = vrot.lane.b32.xlu1 %v4097_v36, %s4383_s23  ;;  %v4089_v57 = vcombine.low %v2584_v42, %v2594_v51  ;;  %v4176_v58 = vcombine.low %v3165_v38, %v3168_v52  ;;  %v693_v60 = vrot.slane %v691_v48, 4  ;;  %v4168_v61 = vcombine.low %v4849_v45, %v3112_v59  ;;  %v4113_v39 = vld [vmem:[%s4424_s16 + $0x44] sm:$0x1]  ;;  %346 = vst.msk [vmem:[#allocation2 + $0x58] sm:$0xff] %vm334_vm6, %v4334_v9  ;;  %v390_v51 = vld [vmem:[%s4424_s16 + $0x9c] sm:$0xf] }
  0xa3   : > { %v696_v62 = vrot.slane %v694_v53, 5  ;;  %v4866_v63 = vrot.slane %v700_v54, 5  ;;  %v710_v10 = vshll.u32 %v389_v40, 16  ;;  %v499_v12 = vshrl.u32 %v363_v41, 16  ;;  %338 = vst.msk [vmem:[#allocation2 + $0x18] sm:$0xff] %vm334_vm6, %v4335_v26 }
  0xa4   : > { %v502_v14 = vshll.u32 %v363_v41, 16  ;;  %v508_v15 = vshll.u32 %v364_v49, 16  ;;  %v706_v18 = vrot.slane %v704_v1, 4  ;;  %v512_v19 = vshrl.u32 %v364_v49, 16  ;;  %884 = vst.msk [vmem:[#allocation2 + $0x8] sm:$0xff] %vm882_vm7, %v4833_v21  ;;  %883 = vst.msk [vmem:[#allocation2] sm:$0xff] %vm882_vm7, %v4857_v55 }
  0xa5   : > { %v697_v17 = vor.u32 %v696_v62, %v693_v60  ;;  %v518_v22 = vshll.u32 %v365_v50, 16  ;;  %2937 = vrot.lane.b32.xlu0 %v4089_v57, %s4383_s23  ;;  %v712_v27 = vrot.slane %v710_v10, 5  ;;  %v501_v28 = vrot.slane %v499_v12, 4  ;;  %v4888_v37 = vpop.permute.xlu1 %1357  ;;  %892 = vst.msk [vmem:[#allocation2 + $0x48] sm:$0xff] %vm882_vm7, %v4859_v56  ;;  %v391_v55 = vld [vmem:[%s4424_s16 + $0xa0] sm:$0xf] }
  0xa6   : > { %3272 = vrot.lane.b32.xlu1 %v4176_v58, %s4384_s24  ;;  %v504_v29 = vrot.slane %v502_v14, 5  ;;  %v510_v30 = vrot.slane %v508_v15, 5  ;;  %v707_v32 = vor.u32 %v706_v18, %v4866_v63  ;;  %v514_v33 = vrot.slane %v512_v19, 4  ;;  %v851_v36 = vpop.permute.xlu0 %850  ;;  %1207 = vst.msk [vmem:[#allocation2] sm:$0xff] %vm1206_vm8, %v4805_v43  ;;  %1208 = vst.msk [vmem:[#allocation2 + $0x8] sm:$0xff] %vm1206_vm8, %v4831_v20 }
  0xa7   : > { %v698_v31 = vrot.slane %v697_v17, 4  ;;  %v520_v34 = vrot.slane %v518_v22, 5  ;;  %v4161_v45 = vrot.slane %v4876_v16, 9  ;;  %v3171_v48 = vrot.slane %v4136_v23, 5  ;;  %891 = vst.msk [vmem:[#allocation2 + $0x40] sm:$0xff] %vm882_vm7, %v851_v36 }
  0xa8   : > { %v505_v38 = vor.u32 %v504_v29, %v501_v28  ;;  %v708_v41 = vrot.slane %v707_v32, 4  ;;  %v515_v42 = vor.u32 %v514_v33, %v510_v30  ;;  %v3174_v49 = vrot.slane %v4880_v24, 5  ;;  %1216 = vst.msk [vmem:[#allocation2 + $0x48] sm:$0xff] %vm1206_vm8, %v4807_v44  ;;  %1215 = vst.msk [vmem:[#allocation2 + $0x40] sm:$0xff] %vm1206_vm8, %v4794_v13  ;;  %v392_v60 = vld [vmem:[%s4424_s16 + $0xa4] sm:$0x1] }
  0xa9   : > { %v703_v40 = vsel %vm4476_vm5, %v698_v31, %v4866_v63  ;;  %3256 = vrot.lane.b32.xlu0 %v4168_v61, %s4384_s24  ;;  %v4153_v50 = vrot.slane %v4111_v25, 9  ;;  %v3115_v21 = vrot.slane %v4112_v35, 5  ;;  %v3118_v54 = vrot.slane %v4113_v39, 5  ;;  %v366_v4 = vld [vmem:[%s4424_s16 + $0x3c] sm:$0xf]  ;;  %1397 = vst.msk [vmem:[#allocation2 + $0x48] sm:$0xff] %vm1387_vm9, %v4888_v37 }
  0xaa   : > { %v506_v47 = vrot.slane %v505_v38, 4  ;;  %v713_v52 = vsel %vm4476_vm5, %v708_v41, %v712_v27  ;;  %v516_v53 = vrot.slane %v515_v42, 4  ;;  %v1342_v56 = vpop.permute.xlu0 %1341  ;;  %v3172_v43 = vsel %vm4426_vm2, %v4161_v45, %v3171_v48  ;;  %v4933_v62 = vpop.permute.xlu1 %1900  ;;  %v367_v6 = vld [vmem:[%s4424_s16 + $0x40] sm:$0xf]  ;;  %v368_v12 = vld [vmem:[%s4424_s16 + $0x44] sm:$0x1] }
  0xab   : > { %v3762_v57 = vcombine.low %v703_v40, %v713_v52  ;;  %v3173_v20 = vrot.slane %v3171_v48, 4  ;;  %v3116_v44 = vsel %vm4426_vm2, %v4153_v50, %v3115_v21  ;;  %v3117_v13 = vrot.slane %v3115_v21, 4  ;;  %v935_v18 = vld [vmem:[%s4424_s16 + $0x90] sm:$0xe]  ;;  %v936_v19 = vld [vmem:[%s4424_s16 + $0x94] sm:$0xf] }
  0xac   : > { %v511_v58 = vsel %vm4476_vm5, %v506_v47, %v510_v30  ;;  %v521_v59 = vsel %vm4476_vm5, %v516_v53, %v520_v34  ;;  %v715_v61 = vshrl.u32 %v390_v51, 16  ;;  %v718_v2 = vshll.u32 %v390_v51, 16  ;;  %v937_v27 = vld [vmem:[%s4424_s16 + $0x98] sm:$0x1]  ;;  %v911_v32 = vld [vmem:[%s4424_s16 + $0x30] sm:$0xe] }
  0xad   : > { %858 = vrot.lane.b32.xlu1 %v3762_v57, %s4379_s19  ;;  %v3754_v63 = vcombine.low %v511_v58, %v521_v59  ;;  %v3175_v1 = vsel %vm4426_vm2, %v3173_v20, %v3174_v49  ;;  %v724_v3 = vshll.u32 %v391_v55, 16  ;;  %v3119_v8 = vsel %vm4426_vm2, %v3117_v13, %v3118_v54  ;;  %v912_v38 = vld [vmem:[%s4424_s16 + $0x34] sm:$0xf]  ;;  %v913_v47 = vld [vmem:[%s4424_s16 + $0x38] sm:$0x1]  ;;  %1388 = vst.msk [vmem:[#allocation2] sm:$0xff] %vm1387_vm9, %v4791_v11 }
  0xae   : > { %v4177_v7 = vcombine.low %v3172_v43, %v3175_v1  ;;  %v717_v9 = vrot.slane %v715_v61, 4  ;;  %v728_v10 = vshrl.u32 %v391_v55, 16  ;;  %v4169_v14 = vcombine.low %v3116_v44, %v3119_v8  ;;  %v4946_v22 = vpop.permute.xlu0 %1884  ;;  %v4345_v40 = vld [vmem:[%s4424_s16 + $0x90] sm:$0xff]   ;;  %1396 = vst.msk [vmem:[#allocation2 + $0x40] sm:$0xff] %vm1387_vm9, %v4772_v46  ;;  %1389 = vst.msk [vmem:[#allocation2 + $0x8] sm:$0xff] %vm1387_vm9, %v1342_v56 }
  0xaf   : > { %842 = vrot.lane.b32.xlu0 %v3754_v63, %s4379_s19  ;;  %v720_v15 = vrot.slane %v718_v2, 5  ;;  %v726_v16 = vrot.slane %v724_v3, 5  ;;  %v734_v17 = vshll.u32 %v392_v60, 16  ;;  %v523_v24 = vshrl.u32 %v366_v4, 16  ;;  %v938_v52 = vld [vmem:[%s4424_s16 + $0x9c] sm:$0xe] }
  0xb0   : > { %v730_v23 = vrot.slane %v728_v10, 4  ;;  %v526_v25 = vshll.u32 %v366_v4, 16  ;;  %v532_v26 = vshll.u32 %v367_v6, 16  ;;  %v536_v30 = vshrl.u32 %v367_v6, 16  ;;  %347 = vst.msk [vmem:[#allocation2 + $0x60] sm:$0xff] %vm334_vm6, %v4345_v40  ;;  %v4346_v53 = vld [vmem:[%s4424_s16 + $0x30] sm:$0xff]  }
  0xb1   : > { %3274 = vrot.lane.b32.xlu1 %v4177_v7, %s4384_s24  ;;  %v721_v28 = vor.u32 %v720_v15, %v717_v9  ;;  %v736_v29 = vrot.slane %v734_v17, 5  ;;  %v542_v31 = vshll.u32 %v368_v12, 16  ;;  %v525_v34 = vrot.slane %v523_v24, 4  ;;  %v939_v11 = vld [vmem:[%s4424_s16 + $0xa0] sm:$0xf]  ;;  %339 = vst.msk [vmem:[#allocation2 + $0x20] sm:$0xff] %vm334_vm6, %v4346_v53 }
  0xb2   : > { %v731_v33 = vor.u32 %v730_v23, %v726_v16  ;;  %v528_v35 = vrot.slane %v526_v25, 5  ;;  %v534_v36 = vrot.slane %v532_v26, 5  ;;  %v1903_v39 = vpop.permute.xlu1 %1902  ;;  %v538_v42 = vrot.slane %v536_v30, 4  ;;  %v4969_v57 = vld [vmem:[%s4424_s16 + $0xa4] sm:$0x1]  ;;  %1941 = vst.msk [vmem:[#allocation2 + $0x40] sm:$0xff] %vm1932_vm10, %v4933_v62 }
  0xb3   : > { %3258 = vrot.lane.b32.xlu0 %v4169_v14, %s4384_s24  ;;  %v722_v41 = vrot.slane %v721_v28, 4  ;;  %v544_v45 = vrot.slane %v542_v31, 5  ;;  %v3778_v50 = vrot.slane %v935_v18, 9  ;;  %v1084_v51 = vrot.slane %v936_v19, 5  ;;  %v914_v46 = vld [vmem:[%s4424_s16 + $0x3c] sm:$0xe] }
  0xb4   : > { %v732_v48 = vrot.slane %v731_v33, 4  ;;  %v529_v49 = vor.u32 %v528_v35, %v525_v34  ;;  %v539_v37 = vor.u32 %v538_v42, %v534_v36  ;;  %v1087_v54 = vrot.slane %v937_v27, 5  ;;  %v915_v44 = vld [vmem:[%s4424_s16 + $0x40] sm:$0xf]  ;;  %v916_v13 = vld [vmem:[%s4424_s16 + $0x44] sm:$0x1] }
  0xb5   : > { %v727_v21 = vsel %vm4476_vm5, %v722_v41, %v726_v16  ;;  %v3770_v55 = vrot.slane %v911_v32, 9  ;;  %v1085_v20 = vsel %vm4426_vm2, %v3778_v50, %v1084_v51  ;;  %v1086_v59 = vrot.slane %v1084_v51, 4  ;;  %v3882_v3 = vld [vmem:[%s4424_s16 + $0x9c] sm:$0xf]  ;;  %v3883_v8 = vld [vmem:[%s4424_s16 + $0xa0] sm:$0xf] }
  0xb6   : > { %v1887_v56 = vpop.permute.xlu0 %1886  ;;  %v737_v58 = vsel %vm4476_vm5, %v732_v48, %v736_v29  ;;  %v530_v43 = vrot.slane %v529_v49, 4  ;;  %v2222_v60 = vpop.permute.xlu1 %2221  ;;  %v540_v63 = vrot.slane %v539_v37, 4  ;;  %v1028_v1 = vrot.slane %v912_v38, 5  ;;  %1933 = vst.msk [vmem:[#allocation2] sm:$0xff] %vm1932_vm10, %v4946_v22  ;;  %1942 = vst.msk [vmem:[#allocation2 + $0x48] sm:$0xff] %vm1932_vm10, %v1903_v39  ;;  %v4347_v17 = vld [vmem:[%s4424_s16 + $0x9c] sm:$0xff]  }
  0xb7   : > { %v3763_v61 = vcombine.low %v727_v21, %v737_v58  ;;  %v1031_v2 = vrot.slane %v913_v47, 5  ;;  %v1088_v6 = vsel %vm4426_vm2, %v1086_v59, %v1087_v54  ;;  %v3779_v7 = vrot.slane %v938_v52, 9  ;;  %1934 = vst.msk [vmem:[#allocation2 + $0x8] sm:$0xff] %vm1932_vm10, %v1887_v56  ;;  %v3884_v16 = vld [vmem:[%s4424_s16 + $0xa4] sm:$0x1]  ;;  %v4348_v26 = vld [vmem:[%s4424_s16 + $0x3c] sm:$0xff]  }
  0xb8   : > { %v535_v4 = vsel %vm4476_vm5, %v530_v43, %v534_v36  ;;  %v545_v9 = vsel %vm4476_vm5, %v540_v63, %v544_v45  ;;  %v3794_v10 = vcombine.low %v1085_v20, %v1088_v6  ;;  %v1029_v12 = vsel %vm4426_vm2, %v3770_v55, %v1028_v1  ;;  %v3858_v28 = vld [vmem:[%s4424_s16 + $0x3c] sm:$0xf]  ;;  %348 = vst.msk [vmem:[#allocation2 + $0x68] sm:$0xff] %vm334_vm6, %v4347_v17  ;;  %v3859_v33 = vld [vmem:[%s4424_s16 + $0x40] sm:$0xf] }
  0xb9   : > { %860 = vrot.lane.b32.xlu1 %v3763_v61, %s4379_s19  ;;  %v1030_v14 = vrot.slane %v1028_v1, 4  ;;  %v3755_v18 = vcombine.low %v535_v4, %v545_v9  ;;  %v1091_v19 = vrot.slane %v939_v11, 5  ;;  %v1094_v23 = vrot.slane %v4969_v57, 5  ;;  %2262 = vst.msk [vmem:[#allocation2 + $0x40] sm:$0xff] %vm2253_vm11, %v2222_v60  ;;  %v3860_v52 = vld [vmem:[%s4424_s16 + $0x44] sm:$0x1] }
  0xba   : > { %v2206_v15 = vpop.permute.xlu0 %2205  ;;  %v3771_v24 = vrot.slane %v914_v46, 9  ;;  %v2224_v25 = vpop.permute.xlu1 %2223  ;;  %v1035_v22 = vrot.slane %v915_v44, 5  ;;  %v1038_v27 = vrot.slane %v916_v13, 5  ;;  %v1741_v32 = vshrl.u32 %v3882_v3, 16  ;;  %340 = vst.msk [vmem:[#allocation2 + $0x28] sm:$0xff] %vm334_vm6, %v4348_v26  ;;  %v4322_v55 = vld [vmem:[%s4424_s16 + $0x9c] sm:$0xff]  }
  0xbb   : > { %v1032_v62 = vsel %vm4426_vm2, %v1030_v14, %v1031_v2  ;;  %844 = vrot.lane.b32.xlu0 %v3755_v18, %s4379_s19  ;;  %v1092_v30 = vsel %vm4426_vm2, %v3779_v7, %v1091_v19  ;;  %v1093_v31 = vrot.slane %v1091_v19, 4  ;;  %2254 = vst.msk [vmem:[#allocation2] sm:$0xff] %vm2253_vm11, %v2206_v15  ;;  %2263 = vst.msk [vmem:[#allocation2 + $0x48] sm:$0xff] %vm2253_vm11, %v2224_v25  ;;  %v1744_v38 = vshll.u32 %v3882_v3, 16  ;;  %v3885_v43 = vld [vmem:[%s4424_s16 + $0xa8] sm:$0xf] }
  0xbc   : > { %v3786_v29 = vcombine.low %v1029_v12, %v1032_v62  ;;  %v1036_v34 = vsel %vm4426_vm2, %v3771_v24, %v1035_v22  ;;  %v1037_v35 = vrot.slane %v1035_v22, 4  ;;  %v1750_v39 = vshll.u32 %v3883_v8, 16  ;;  %v3886_v13 = vld [vmem:[%s4424_s16 + $0xac] sm:$0xf]  ;;  %v4323_v3 = vld [vmem:[%s4424_s16 + $0x3c] sm:$0xff]  }
  0xbd   : > { %1182 = vrot.lane.b32.xlu1 %v3794_v10, %s4378_s18  ;;  %v1095_v40 = vsel %vm4426_vm2, %v1093_v31, %v1094_v23  ;;  %v1743_v41 = vrot.slane %v1741_v32, 4  ;;  %v1754_v42 = vshrl.u32 %v3883_v8, 16  ;;  %v1760_v45 = vshll.u32 %v3884_v16, 16  ;;  %v4324_v9 = vld [vmem:[%s4424_s16 + $0xa8] sm:$0xff]   ;;  %v3887_v15 = vld [vmem:[%s4424_s16 + $0xb0] sm:$0x1] }
  0xbe   : > { %v2208_v36 = vpop.permute.xlu0 %2207  ;;  %v2403_v47 = vpop.permute.xlu1 %2402  ;;  %v3795_v48 = vcombine.low %v1092_v30, %v1095_v40  ;;  %v1039_v49 = vsel %vm4426_vm2, %v1037_v35, %v1038_v27  ;;  %v1746_v50 = vrot.slane %v1744_v38, 5  ;;  %v1752_v51 = vrot.slane %v1750_v39, 5  ;;  %v3861_v17 = vld [vmem:[%s4424_s16 + $0x48] sm:$0xf]  ;;  %v3862_v26 = vld [vmem:[%s4424_s16 + $0x4c] sm:$0xf] }
  0xbf   : > { %2255 = vst.msk [vmem:[#allocation2 + $0x8] sm:$0xff] %vm2253_vm11, %v2208_v36  ;;  %1166 = vrot.lane.b32.xlu0 %v3786_v29, %s4378_s18  ;;  %v3787_v53 = vcombine.low %v1036_v34, %v1039_v49  ;;  %v1756_v21 = vrot.slane %v1754_v42, 4  ;;  %v1762_v37 = vrot.slane %v1760_v45, 5  ;;  %v1549_v54 = vshrl.u32 %v3858_v28, 16  ;;  %v3863_v30 = vld [vmem:[%s4424_s16 + $0x50] sm:$0x1] }
  0xc0   : > { %v1747_v11 = vor.u32 %v1746_v50, %v1743_v41  ;;  %v1552_v57 = vshll.u32 %v3858_v28, 16  ;;  %v1558_v46 = vshll.u32 %v3859_v33, 16  ;;  %v1562_v56 = vshrl.u32 %v3859_v33, 16  ;;  %2443 = vst.msk [vmem:[#allocation2 + $0x40] sm:$0xff] %vm2434_vm12, %v2403_v47  ;;  %v3946_v31 = vld [vmem:[%s4424_s16 + $0x9c] sm:$0xe] }
  0xc1   : > { %1184 = vrot.lane.b32.xlu1 %v3795_v48, %s4378_s18  ;;  %v1757_v20 = vor.u32 %v1756_v21, %v1752_v51  ;;  %v1551_v59 = vrot.slane %v1549_v54, 4  ;;  %v1568_v44 = vshll.u32 %v3860_v52, 16  ;;  %v1765_v7 = vshrl.u32 %v3885_v43, 16  ;;  %v4325_v32 = vld [vmem:[%s4424_s16 + $0x48] sm:$0xff]   ;;  %v3947_v38 = vld [vmem:[%s4424_s16 + $0xa0] sm:$0xf] }
  0xc2   : > { %v2387_v58 = vpop.permute.xlu0 %2386  ;;  %v2405_v60 = vpop.permute.xlu1 %2404  ;;  %v1748_v61 = vrot.slane %v1747_v11, 4  ;;  %v1554_v63 = vrot.slane %v1552_v57, 5  ;;  %v1560_v1 = vrot.slane %v1558_v46, 5  ;;  %v1564_v2 = vrot.slane %v1562_v56, 4  ;;  %v3948_v39 = vld [vmem:[%s4424_s16 + $0xa4] sm:$0x1] }
  0xc3   : > { %2435 = vst.msk [vmem:[#allocation2] sm:$0xff] %vm2434_vm12, %v2387_v58  ;;  %2444 = vst.msk [vmem:[#allocation2 + $0x48] sm:$0xff] %vm2434_vm12, %v2405_v60  ;;  %1168 = vrot.lane.b32.xlu0 %v3787_v53, %s4378_s18  ;;  %v1758_v4 = vrot.slane %v1757_v20, 4  ;;  %v1570_v6 = vrot.slane %v1568_v44, 5  ;;  %v1768_v8 = vshll.u32 %v3885_v43, 16  ;;  %v1774_v16 = vshll.u32 %v3886_v13, 16 }
  0xc4   : > { %v1753_v10 = vsel %vm4476_vm5, %v1748_v61, %v1752_v51  ;;  %v1555_v12 = vor.u32 %v1554_v63, %v1551_v59  ;;  %v1565_v14 = vor.u32 %v1564_v2, %v1560_v1  ;;  %v1767_v23 = vrot.slane %v1765_v7, 4  ;;  %v3922_v47 = vld [vmem:[%s4424_s16 + $0x3c] sm:$0xe]  ;;  %v3923_v48 = vld [vmem:[%s4424_s16 + $0x40] sm:$0xf] }
  0xc5   : > { %1363 = vrot.lane.b32.xlu1 %v4322_v55, %s4377_s17  ;;  %v1763_v19 = vsel %vm4476_vm5, %v1758_v4, %v1762_v37  ;;  %v1770_v24 = vrot.slane %v1768_v8, 5  ;;  %v1778_v25 = vshrl.u32 %v3886_v13, 16  ;;  %v1776_v29 = vrot.slane %v1774_v16, 5  ;;  %v3924_v13 = vld [vmem:[%s4424_s16 + $0x44] sm:$0x1] }
  0xc6   : > { %v2389_v18 = vpop.permute.xlu0 %2388  ;;  %v5041_v62 = vpop.permute.xlu1 %2947  ;;  %v3906_v22 = vcombine.low %v1753_v10, %v1763_v19  ;;  %v1556_v27 = vrot.slane %v1555_v12, 4  ;;  %v1566_v28 = vrot.slane %v1565_v14, 4  ;;  %v1784_v35 = vshll.u32 %v3887_v15, 16  ;;  %v3949_v2 = vld [vmem:[%s4424_s16 + $0xa8] sm:$0xe] }
  0xc7   : > { %2436 = vst.msk [vmem:[#allocation2 + $0x8] sm:$0xff] %vm2434_vm12, %v2389_v18  ;;  %1347 = vrot.lane.b32.xlu0 %v4323_v3, %s4377_s17  ;;  %v1771_v33 = vor.u32 %v1770_v24, %v1767_v23  ;;  %v1780_v34 = vrot.slane %v1778_v25, 4  ;;  %v1573_v36 = vshrl.u32 %v3861_v17, 16  ;;  %v1576_v42 = vshll.u32 %v3861_v17, 16  ;;  %v3950_v8 = vld [vmem:[%s4424_s16 + $0xac] sm:$0xf] }
  0xc8   : > { %v1561_v40 = vsel %vm4476_vm5, %v1556_v27, %v1560_v1  ;;  %v1571_v41 = vsel %vm4476_vm5, %v1566_v28, %v1570_v6  ;;  %v1582_v45 = vshll.u32 %v3862_v26, 16  ;;  %v1786_v53 = vrot.slane %v1784_v35, 5  ;;  %v3925_v17 = vld [vmem:[%s4424_s16 + $0x48] sm:$0xe]  ;;  %v3926_v25 = vld [vmem:[%s4424_s16 + $0x4c] sm:$0xf] }
  0xc9   : > { %1365 = vrot.lane.b32.xlu1 %v4324_v9, %s4377_s17  ;;  %v3898_v50 = vcombine.low %v1561_v40, %v1571_v41  ;;  %v1772_v51 = vrot.slane %v1771_v33, 4  ;;  %v1781_v52 = vor.u32 %v1780_v34, %v1776_v29  ;;  %v1575_v37 = vrot.slane %v1573_v36, 4  ;;  %v3951_v9 = vld [vmem:[%s4424_s16 + $0xb0] sm:$0x1]  ;;  %2988 = vst.msk [vmem:[#allocation2 + $0x40] sm:$0xff] %vm2979_vm13, %v5041_v62 }
  0xca   : > { %v2932_v49 = vpop.permute.xlu0 %2931  ;;  %v1578_v54 = vrot.slane %v1576_v42, 5  ;;  %v1584_v55 = vrot.slane %v1582_v45, 5  ;;  %v1586_v11 = vshrl.u32 %v3862_v26, 16  ;;  %v1592_v56 = vshll.u32 %v3863_v30, 16  ;;  %v4074_v30 = vld [vmem:[%s4424_s16 + $0xa8] sm:$0xf] }
  0xcb   : > { %v2950_v21 = vpop.permute.xlu1 %2949  ;;  %1349 = vrot.lane.b32.xlu0 %v4325_v32, %s4377_s17  ;;  %v1777_v57 = vsel %vm4476_vm5, %v1772_v51, %v1776_v29  ;;  %v1782_v46 = vrot.slane %v1781_v52, 4  ;;  %v3970_v58 = vrot.slane %v3946_v31, 9  ;;  %v2131_v59 = vrot.slane %v3947_v38, 5  ;;  %2980 = vst.msk [vmem:[#allocation2] sm:$0xff] %vm2979_vm13, %v2932_v49  ;;  %v3927_v29 = vld [vmem:[%s4424_s16 + $0x50] sm:$0x1] }
  0xcc   : > { %v1579_v43 = vor.u32 %v1578_v54, %v1575_v37  ;;  %v1588_v20 = vrot.slane %v1586_v11, 4  ;;  %v2134_v44 = vrot.slane %v3948_v39, 5  ;;  %v1594_v61 = vrot.slane %v1592_v56, 5  ;;  %2989 = vst.msk [vmem:[#allocation2 + $0x48] sm:$0xff] %vm2979_vm13, %v2950_v21  ;;  %v4075_v35 = vld [vmem:[%s4424_s16 + $0xac] sm:$0xf] }
  0xcd   : > { %1908 = vrot.lane.b32.xlu1 %v3906_v22, %s4380_s20  ;;  %v1787_v60 = vsel %vm4476_vm5, %v1782_v46, %v1786_v53  ;;  %v3962_v63 = vrot.slane %v3922_v47, 9  ;;  %v2075_v1 = vrot.slane %v3923_v48, 5  ;;  %v2132_v7 = vsel %vm4426_vm2, %v3970_v58, %v2131_v59  ;;  %v4076_v41 = vld [vmem:[%s4424_s16 + $0xb0] sm:$0x1]  ;;  %v4050_v48 = vld [vmem:[%s4424_s16 + $0x48] sm:$0xf] }
  0xce   : > { %v3907_v3 = vcombine.low %v1777_v57, %v1787_v60  ;;  %v1580_v4 = vrot.slane %v1579_v43, 4  ;;  %v1589_v6 = vor.u32 %v1588_v20, %v1584_v55  ;;  %v2133_v12 = vrot.slane %v2131_v59, 4  ;;  %v4051_v11 = vld [vmem:[%s4424_s16 + $0x4c] sm:$0xf]  ;;  %v4052_v58 = vld [vmem:[%s4424_s16 + $0x50] sm:$0x1] }
  0xcf   : > { %v2934_v10 = vpop.permute.xlu0 %2933  ;;  %1892 = vrot.lane.b32.xlu0 %v3898_v50, %s4380_s20  ;;  %v5071_v14 = vsel %vm4426_vm2, %v3962_v63, %v2075_v1  ;;  %v2077_v15 = vrot.slane %v2075_v1, 4  ;;  %v2078_v16 = vrot.slane %v3924_v13, 5  ;;  %v3269_v18 = vpop.permute.xlu1 %3268  ;;  %v3971_v24 = vrot.slane %v3949_v2, 9  ;;  %v4326_v59 = vld [vmem:[%s4424_s16 + $0xa8] sm:$0xff]   ;;  %v4077_v63 = vld [vmem:[%s4424_s16 + $0xb4] sm:$0xf] }
  0xd0   : > { %v1585_v19 = vsel %vm4476_vm5, %v1580_v4, %v1584_v55  ;;  %v1590_v23 = vrot.slane %v1589_v6, 4  ;;  %v2135_v26 = vsel %vm4426_vm2, %v2133_v12, %v2134_v44  ;;  %v2138_v27 = vrot.slane %v3950_v8, 5  ;;  %2981 = vst.msk [vmem:[#allocation2 + $0x8] sm:$0xff] %vm2979_vm13, %v2934_v10  ;;  %v4078_v12 = vld [vmem:[%s4424_s16 + $0xb8] sm:$0xf] }
  0xd1   : > { %1910 = vrot.lane.b32.xlu1 %v3907_v3, %s4380_s20  ;;  %v2079_v22 = vsel %vm4426_vm2, %v2077_v15, %v2078_v16  ;;  %v2141_v28 = vrot.slane %v3951_v9, 5  ;;  %v3986_v32 = vcombine.low %v2132_v7, %v2135_v26  ;;  %v3963_v34 = vrot.slane %v3925_v17, 9  ;;  %3309 = vst.msk [vmem:[#allocation2 + $0x40] sm:$0xff] %vm3300_vm14, %v3269_v18  ;;  %v4079_v16 = vld [vmem:[%s4424_s16 + $0xbc] sm:$0x1]  ;;  %v4328_v18 = vld [vmem:[%s4424_s16 + $0xb4] sm:$0xff]  }
  0xd2   : > { %v1595_v31 = vsel %vm4476_vm5, %v1590_v23, %v1594_v61  ;;  %v3978_v33 = vcombine.low %v5071_v14, %v2079_v22  ;;  %v2139_v38 = vsel %vm4426_vm2, %v3971_v24, %v2138_v27  ;;  %v2140_v39 = vrot.slane %v2138_v27, 4 }
  0xd3   : > { %v3253_v62 = vpop.permute.xlu0 %3252  ;;  %v3899_v36 = vcombine.low %v1585_v19, %v1595_v31  ;;  %v2082_v40 = vrot.slane %v3926_v25, 5  ;;  %v2085_v42 = vrot.slane %v3927_v29, 5  ;;  %v2788_v45 = vshrl.u32 %v4074_v30, 16 }
  0xd4   : > { %v2791_v47 = vshll.u32 %v4074_v30, 16  ;;  %v2142_v49 = vsel %vm4426_vm2, %v2140_v39, %v2141_v28  ;;  %3301 = vst.msk [vmem:[#allocation2] sm:$0xff] %vm3300_vm14, %v3253_v62  ;;  %v2797_v53 = vshll.u32 %v4075_v35, 16  ;;  %v2801_v55 = vshrl.u32 %v4075_v35, 16  ;;  %v4327_v28 = vld [vmem:[%s4424_s16 + $0x48] sm:$0xff]  }
  0xd5   : > { %2229 = vrot.lane.b32.xlu1 %v3986_v32, %s4381_s21  ;;  %1894 = vrot.lane.b32.xlu0 %v3899_v36, %s4380_s20  ;;  %v2083_v50 = vsel %vm4426_vm2, %v3963_v34, %v2082_v40  ;;  %v2084_v51 = vrot.slane %v2082_v40, 4  ;;  %v3987_v21 = vcombine.low %v2139_v38, %v2142_v49  ;;  %v2790_v37 = vrot.slane %v2788_v45, 4  ;;  %v4054_v38 = vld [vmem:[%s4424_s16 + $0x58] sm:$0xf]  ;;  %v4055_v45 = vld [vmem:[%s4424_s16 + $0x5c] sm:$0x1] }
  0xd6   : > { %v855_v52 = vpop.permute.xlu1 %854  ;;  %v2793_v54 = vrot.slane %v2791_v47, 5  ;;  %v2799_v46 = vrot.slane %v2797_v53, 5  ;;  %v2807_v56 = vshll.u32 %v4076_v41, 16  ;;  %v2596_v43 = vshrl.u32 %v4050_v48, 16 }
  0xd7   : > { %893 = vst.msk [vmem:[#allocation2 + $0x50] sm:$0xff] %vm882_vm7, %v855_v52  ;;  %v2086_v57 = vsel %vm4426_vm2, %v2084_v51, %v2085_v42  ;;  %v2803_v60 = vrot.slane %v2801_v55, 4  ;;  %v2599_v61 = vshll.u32 %v4050_v48, 16  ;;  %v2605_v3 = vshll.u32 %v4051_v11, 16  ;;  %v4329_v52 = vld [vmem:[%s4424_s16 + $0x54] sm:$0xff]  }
  0xd8   : > { %v3979_v20 = vcombine.low %v2083_v50, %v2086_v57  ;;  %v2794_v13 = vor.u32 %v2793_v54, %v2790_v37  ;;  %v2809_v1 = vrot.slane %v2807_v56, 5  ;;  %v2598_v2 = vrot.slane %v2596_v43, 4  ;;  %v3325_v27 = vld [vmem:[#allocation2 + $0x40] sm:$0xff]  ;;  %v4336_v51 = vld [vmem:[%s5603_s1 + $0x10] ss:$0 sps:$4 sm:$0x33]  }
  0xd9   : > { %2231 = vrot.lane.b32.xlu1 %v3987_v21, %s4381_s21  ;;  %2213 = vrot.lane.b32.xlu0 %v3978_v33, %s4381_s21  ;;  %v2609_v4 = vshrl.u32 %v4051_v11, 16  ;;  %v2804_v8 = vor.u32 %v2803_v60, %v2799_v46  ;;  %v2601_v9 = vrot.slane %v2599_v61, 5  ;;  %v2615_v10 = vshll.u32 %v4052_v58, 16  ;;  %v4053_v33 = vld [vmem:[%s4424_s16 + $0x54] sm:$0xf] }
  0xda   : > { %v839_v44 = vpop.permute.xlu0 %838  ;;  %v3271_v6 = vpop.permute.xlu1 %3270  ;;  %v2795_v7 = vrot.slane %v2794_v13, 4  ;;  %v2607_v14 = vrot.slane %v2605_v3, 5  ;;  %v2812_v17 = vshrl.u32 %v4077_v63, 16  ;;  %v2815_v31 = vshll.u32 %v4077_v63, 16  ;;  %4245 = vmatprep.mubr.msk.bf16.mxu1 %vm3353_vm15, %v3325_v27  ;;  %v4138_v55 = vld [vmem:[%s4424_s16 + $0xa8] sm:$0xe]  ;;  %4267 = vmatprep.subr.msk.bf16.mxu0 %vm3402_vm0, %v4336_v51 }
  0xdb   : > { %885 = vst.msk [vmem:[#allocation2 + $0x10] sm:$0xff] %vm882_vm7, %v839_v44  ;;  %v2611_v15 = vrot.slane %v2609_v4, 4  ;;  %v2805_v23 = vrot.slane %v2804_v8, 4  ;;  %v2602_v24 = vor.u32 %v2601_v9, %v2598_v2  ;;  %v2617_v25 = vrot.slane %v2615_v10, 5  ;;  %v3317_v22 = vld [vmem:[#allocation2] sm:$0xff]  ;;  %4268 = vmatprep.subr.msk.bf16.mxu1 %vm3402_vm0, %v4336_v51 }
  0xdc   : > { %3310 = vst.msk [vmem:[#allocation2 + $0x48] sm:$0xff] %vm3300_vm14, %v3271_v6  ;;  %v2800_v19 = vsel %vm4476_vm5, %v2795_v7, %v2799_v46  ;;  %4229 = vmatprep.mubr.msk.bf16.mxu0 %vm3353_vm15, %v3317_v22  ;;  %v2814_v30 = vrot.slane %v2812_v17, 4  ;;  %v2821_v32 = vshll.u32 %v4078_v12, 16  ;;  %v2825_v35 = vshrl.u32 %v4078_v12, 16  ;;  %v4139_v43 = vld [vmem:[%s4424_s16 + $0xac] sm:$0xf] }
  0xdd   : > { %2410 = vrot.lane.b32.xlu1 %v4326_v59, %s4382_s22  ;;  %2215 = vrot.lane.b32.xlu0 %v3979_v20, %s4381_s21  ;;  %v2612_v29 = vor.u32 %v2611_v15, %v2607_v14  ;;  %v2810_v34 = vsel %vm4476_vm5, %v2805_v23, %v2809_v1  ;;  %v2603_v62 = vrot.slane %v2602_v24, 4  ;;  %v2831_v36 = vshll.u32 %v4079_v16, 16  ;;  %v4140_v20 = vld [vmem:[%s4424_s16 + $0xb0] sm:$0x1]  ;;  %v4114_v61 = vld [vmem:[%s4424_s16 + $0x48] sm:$0xe] }
  0xde   : > { %v3255_v26 = vpop.permute.xlu0 %3254  ;;  %v4098_v39 = vcombine.low %v2800_v19, %v2810_v34  ;;  %v2817_v41 = vrot.slane %v2815_v31, 5  ;;  %v2823_v42 = vrot.slane %v2821_v32, 5  ;;  %v2827_v48 = vrot.slane %v2825_v35, 4  ;;  %v4115_v4 = vld [vmem:[%s4424_s16 + $0x4c] sm:$0xf] }
  0xdf   : > { %3302 = vst.msk [vmem:[#allocation2 + $0x8] sm:$0xff] %vm3300_vm14, %v3255_v26  ;;  %v2613_v40 = vrot.slane %v2612_v29, 4  ;;  %v2608_v47 = vsel %vm4476_vm5, %v2603_v62, %v2607_v14  ;;  %v2833_v49 = vrot.slane %v2831_v36, 5  ;;  %v2620_v50 = vshrl.u32 %v4053_v33, 16  ;;  %v4116_v10 = vld [vmem:[%s4424_s16 + $0x50] sm:$0x1] }
  0xe0   : > { %v2818_v21 = vor.u32 %v2817_v41, %v2814_v30  ;;  %v2623_v37 = vshll.u32 %v4053_v33, 16  ;;  %v2629_v54 = vshll.u32 %v4054_v38, 16  ;;  %v2828_v57 = vor.u32 %v2827_v48, %v2823_v42  ;;  %v394_v19 = vld [vmem:[%s4424_s16 + $0xac] sm:$0xf]  ;;  %v395_v33 = vld [vmem:[%s4424_s16 + $0xb0] sm:$0x1] }
  0xe1   : > { %2412 = vrot.lane.b32.xlu1 %v4328_v18, %s4382_s22  ;;  %2394 = vrot.lane.b32.xlu0 %v4327_v28, %s4382_s22  ;;  %v2618_v53 = vsel %vm4476_vm5, %v2613_v40, %v2617_v25  ;;  %v2622_v46 = vrot.slane %v2620_v50, 4  ;;  %v2633_v56 = vshrl.u32 %v4054_v38, 16  ;;  %v2639_v60 = vshll.u32 %v4055_v45, 16  ;;  %v393_v18 = vld [vmem:[%s4424_s16 + $0xa8] sm:$0xf] }
  0xe2   : > { %v4090_v11 = vcombine.low %v2608_v47, %v2618_v53  ;;  %v2819_v59 = vrot.slane %v2818_v21, 4  ;;  %v2625_v44 = vrot.slane %v2623_v37, 5  ;;  %v2631_v13 = vrot.slane %v2629_v54, 5  ;;  %v369_v34 = vld [vmem:[%s4424_s16 + $0x48] sm:$0xf] }
  0xe3   : > { %v2829_v63 = vrot.slane %v2828_v57, 4  ;;  %v2635_v1 = vrot.slane %v2633_v56, 4  ;;  %v4162_v3 = vrot.slane %v4138_v55, 9  ;;  %v2641_v8 = vrot.slane %v2639_v60, 5  ;;  %v3326_v27 = vld [vmem:[#allocation2 + $0x48] sm:$0xff] }
  0xe4   : > { %v857_v58 = vpop.permute.xlu1 %856  ;;  %v2824_v6 = vsel %vm4476_vm5, %v2819_v59, %v2823_v42  ;;  %v2626_v7 = vor.u32 %v2625_v44, %v2622_v46  ;;  %v3404_v9 = vsel %vm3402_vm0, %v4336_v51, 0  ;;  %v3178_v15 = vrot.slane %v4139_v43, 5  ;;  %v370_v62 = vld [vmem:[%s4424_s16 + $0x4c] sm:$0xf]  ;;  %v371_v40 = vld [vmem:[%s4424_s16 + $0x50] sm:$0x1] }
  0xe5   : > { %894 = vst.msk [vmem:[#allocation2 + $0x58] sm:$0xff] %vm882_vm7, %v857_v58  ;;  %2955 = vrot.lane.b32.xlu1 %v4098_v39, %s4383_s23  ;;  %v841_v2 = vpop.permute.xlu0 %840  ;;  %2396 = vrot.lane.b32.xlu0 %v4329_v52, %s4382_s22  ;;  %v2834_v12 = vsel %vm4476_vm5, %v2829_v63, %v2833_v49  ;;  %v2636_v14 = vor.u32 %v2635_v1, %v2631_v13  ;;  %v3181_v16 = vrot.slane %v4140_v20, 5  ;;  %v4154_v25 = vrot.slane %v4114_v61, 9  ;;  %v4349_v53 = vld [vmem:[%s4424_s16 + $0xa8] sm:$0xff]   ;;  %v4141_v57 = vld [vmem:[%s4424_s16 + $0xb4] sm:$0xe] }
  0xe6   : > { %886 = vst.msk [vmem:[#allocation2 + $0x18] sm:$0xff] %vm882_vm7, %v841_v2  ;;  %4228 = vmatpush3.bf16.msra.mxu0 %v3404_v9  ;;  %v4099_v23 = vcombine.low %v2824_v6, %v2834_v12  ;;  %v2627_v24 = vrot.slane %v2626_v7, 4  ;;  %4266 = vmatpush3.bf16.msra.mxu1 %v3404_v9  ;;  %v3122_v26 = vrot.slane %v4115_v4, 5  ;;  %v3318_v22 = vld [vmem:[#allocation2 + $0x8] sm:$0xff]  ;;  %v3179_v29 = vsel %vm4426_vm2, %v4162_v3, %v3178_v15  ;;  %v4142_v46 = vld [vmem:[%s4424_s16 + $0xb8] sm:$0xf] }
  0xe7   : > { %v2637_v28 = vrot.slane %v2636_v14, 4  ;;  %v3180_v30 = vrot.slane %v3178_v15, 4  ;;  %v3125_v31 = vrot.slane %v4116_v10, 5  ;;  %v739_v39 = vshrl.u32 %v393_v18, 16  ;;  %v4350_v56 = vld [vmem:[%s4424_s16 + $0x48] sm:$0xff]   ;;  %349 = vst.msk [vmem:[#allocation2 + $0x70] sm:$0xff] %vm334_vm6, %v4349_v53 }
  0xe8   : > { %v1179_v17 = vpop.permute.xlu1 %1178  ;;  %v2632_v35 = vsel %vm4476_vm5, %v2627_v24, %v2631_v13  ;;  %v3123_v36 = vsel %vm4426_vm2, %v4154_v25, %v3122_v26  ;;  %v3124_v38 = vrot.slane %v3122_v26, 4  ;;  %v742_v45 = vshll.u32 %v393_v18, 16  ;;  %v4143_v44 = vld [vmem:[%s4424_s16 + $0xbc] sm:$0x1]  ;;  %v4117_v1 = vld [vmem:[%s4424_s16 + $0x54] sm:$0xe] }
  0xe9   : > { %1217 = vst.msk [vmem:[#allocation2 + $0x50] sm:$0xff] %vm1206_vm8, %v1179_v17  ;;  %v1163_v32 = vpop.permute.xlu0 %1162  ;;  %2939 = vrot.lane.b32.xlu0 %v4090_v11, %s4383_s23  ;;  %2957 = vrot.lane.b32.xlu1 %v4099_v23, %s4383_s23  ;;  %v2642_v41 = vsel %vm4476_vm5, %v2637_v28, %v2641_v8  ;;  %v3182_v42 = vsel %vm4426_vm2, %v3180_v30, %v3181_v16  ;;  %v748_v47 = vshll.u32 %v394_v19, 16  ;;  %v741_v52 = vrot.slane %v739_v39, 4  ;;  %v4118_v8 = vld [vmem:[%s4424_s16 + $0x58] sm:$0xf] }
  0xea   : > { %1209 = vst.msk [vmem:[#allocation2 + $0x10] sm:$0xff] %vm1206_vm8, %v1163_v32  ;;  %4230 = vmatmul.mubr.msk.bf16.vlgmr.msra.gmra.mrb[0].mxu0 %vm3353_vm15, %v3318_v22  ;;  %4246 = vmatmul.mubr.msk.bf16.vlgmr.msra.gmra.mrb[0].mxu1 %vm3353_vm15, %v3326_v27  ;;  %v4091_v49 = vcombine.low %v2632_v35, %v2642_v41  ;;  %v4178_v50 = vcombine.low %v3179_v29, %v3182_v42  ;;  %v744_v37 = vrot.slane %v742_v45, 5  ;;  %v752_v55 = vshrl.u32 %v394_v19, 16  ;;  %v4119_v15 = vld [vmem:[%s4424_s16 + $0x5c] sm:$0x1]  ;;  %v4351_v39 = vld [vmem:[%s4424_s16 + $0xb4] sm:$0xff]  }
  0xeb   : > { %v3126_v51 = vsel %vm4426_vm2, %v3124_v38, %v3125_v31  ;;  %v750_v54 = vrot.slane %v748_v47, 5  ;;  %v758_v58 = vshll.u32 %v395_v33, 16  ;;  %v547_v43 = vshrl.u32 %v369_v34, 16  ;;  %341 = vst.msk [vmem:[#allocation2 + $0x30] sm:$0xff] %vm334_vm6, %v4350_v56  ;;  %v396_v24 = vld [vmem:[%s4424_s16 + $0xb4] sm:$0xf] }
  0xec   : > { %v1181_v48 = vpop.permute.xlu1 %1180  ;;  %v4170_v21 = vcombine.low %v3123_v36, %v3126_v51  ;;  %v550_v20 = vshll.u32 %v369_v34, 16  ;;  %v556_v59 = vshll.u32 %v370_v62, 16  ;;  %v745_v13 = vor.u32 %v744_v37, %v741_v52  ;;  %v397_v35 = vld [vmem:[%s4424_s16 + $0xb8] sm:$0xf]  ;;  %v398_v47 = vld [vmem:[%s4424_s16 + $0xbc] sm:$0x1] }
  0xed   : > { %1218 = vst.msk [vmem:[#allocation2 + $0x58] sm:$0xff] %vm1206_vm8, %v1181_v48  ;;  %v1165_v11 = vpop.permute.xlu0 %1164  ;;  %2941 = vrot.lane.b32.xlu0 %v4091_v49, %s4383_s23  ;;  %3276 = vrot.lane.b32.xlu1 %v4178_v50, %s4384_s24  ;;  %v754_v60 = vrot.slane %v752_v55, 4  ;;  %v560_v61 = vshrl.u32 %v370_v62, 16  ;;  %v566_v63 = vshll.u32 %v371_v40, 16  ;;  %v760_v3 = vrot.slane %v758_v58, 5 }
  0xee   : > { %1210 = vst.msk [vmem:[#allocation2 + $0x18] sm:$0xff] %vm1206_vm8, %v1165_v11  ;;  %v549_v4 = vrot.slane %v547_v43, 4  ;;  %v552_v6 = vrot.slane %v550_v20, 5  ;;  %v558_v7 = vrot.slane %v556_v59, 5  ;;  %v746_v9 = vrot.slane %v745_v13, 4 }
  0xef   : > { %v755_v10 = vor.u32 %v754_v60, %v750_v54  ;;  %v562_v12 = vrot.slane %v560_v61, 4  ;;  %v568_v14 = vrot.slane %v566_v63, 5  ;;  %v4163_v18 = vrot.slane %v4141_v57, 9  ;;  %v372_v48 = vld [vmem:[%s4424_s16 + $0x54] sm:$0xf]  ;;  %350 = vst.msk [vmem:[#allocation2 + $0x78] sm:$0xff] %vm334_vm6, %v4351_v39 }
  0xf0   : > { %v1360_v2 = vpop.permute.xlu1 %1359  ;;  %v553_v17 = vor.u32 %v552_v6, %v549_v4  ;;  %v3185_v19 = vrot.slane %v4142_v46, 5  ;;  %v3188_v23 = vrot.slane %v4143_v44, 5  ;;  %v751_v25 = vsel %vm4476_vm5, %v746_v9, %v750_v54  ;;  %v373_v53 = vld [vmem:[%s4424_s16 + $0x58] sm:$0xf]  ;;  %v374_v57 = vld [vmem:[%s4424_s16 + $0x5c] sm:$0x1] }
  0xf1   : > { %1398 = vst.msk [vmem:[#allocation2 + $0x50] sm:$0xff] %vm1387_vm9, %v1360_v2  ;;  %v1344_v16 = vpop.permute.xlu0 %1343  ;;  %3260 = vrot.lane.b32.xlu0 %v4170_v21, %s4384_s24  ;;  %v756_v26 = vrot.slane %v755_v10, 4  ;;  %v563_v22 = vor.u32 %v562_v12, %v558_v7  ;;  %v4155_v27 = vrot.slane %v4117_v1, 9  ;;  %v3129_v32 = vrot.slane %v4118_v8, 5  ;;  %v4352_v46 = vld [vmem:[%s4424_s16 + $0x54] sm:$0xff]  }
  0xf2   : > { %1390 = vst.msk [vmem:[#allocation2 + $0x10] sm:$0xff] %vm1387_vm9, %v1344_v16  ;;  %v554_v29 = vrot.slane %v553_v17, 4  ;;  %v3186_v30 = vsel %vm4426_vm2, %v4163_v18, %v3185_v19  ;;  %v3187_v31 = vrot.slane %v3185_v19, 4  ;;  %v3132_v62 = vrot.slane %v4119_v15, 5  ;;  %v941_v59 = vld [vmem:[%s4424_s16 + $0xa8] sm:$0xe] }
  0xf3   : > { %v761_v33 = vsel %vm4476_vm5, %v756_v26, %v760_v3  ;;  %v564_v34 = vrot.slane %v563_v22, 4  ;;  %v763_v36 = vshrl.u32 %v396_v24, 16  ;;  %v3130_v45 = vsel %vm4426_vm2, %v4155_v27, %v3129_v32  ;;  %v942_v1 = vld [vmem:[%s4424_s16 + $0xac] sm:$0xf]  ;;  %342 = vst.msk [vmem:[#allocation2 + $0x38] sm:$0xff] %vm334_vm6, %v4352_v46 }
  0xf4   : > { %v1362_v28 = vpop.permute.xlu1 %1361  ;;  %v3764_v40 = vcombine.low %v751_v25, %v761_v33  ;;  %v559_v41 = vsel %vm4476_vm5, %v554_v29, %v558_v7  ;;  %v3189_v42 = vsel %vm4426_vm2, %v3187_v31, %v3188_v23  ;;  %v3131_v51 = vrot.slane %v3129_v32, 4  ;;  %v943_v7 = vld [vmem:[%s4424_s16 + $0xb0] sm:$0x1]  ;;  %v917_v15 = vld [vmem:[%s4424_s16 + $0x48] sm:$0xe] }
  0xf5   : > { %1399 = vst.msk [vmem:[#allocation2 + $0x58] sm:$0xff] %vm1387_vm9, %v1362_v28  ;;  %v1346_v38 = vpop.permute.xlu0 %1345  ;;  %v569_v49 = vsel %vm4476_vm5, %v564_v34, %v568_v14  ;;  %v4179_v50 = vcombine.low %v3186_v30, %v3189_v42  ;;  %v765_v52 = vrot.slane %v763_v36, 4  ;;  %v766_v54 = vshll.u32 %v396_v24, 16  ;;  %v918_v16 = vld [vmem:[%s4424_s16 + $0x4c] sm:$0xf] }
  0xf6   : > { %1391 = vst.msk [vmem:[#allocation2 + $0x18] sm:$0xff] %vm1387_vm9, %v1346_v38  ;;  %862 = vrot.lane.b32.xlu1 %v3764_v40, %s4379_s19  ;;  %v3756_v37 = vcombine.low %v559_v41, %v569_v49  ;;  %v772_v55 = vshll.u32 %v397_v35, 16  ;;  %v776_v11 = vshrl.u32 %v397_v35, 16  ;;  %v3133_v56 = vsel %vm4426_vm2, %v3131_v51, %v3132_v62  ;;  %v919_v24 = vld [vmem:[%s4424_s16 + $0x50] sm:$0x1] }
  0xf7   : > { %v782_v58 = vshll.u32 %v398_v47, 16  ;;  %v571_v43 = vshrl.u32 %v372_v48, 16  ;;  %v574_v20 = vshll.u32 %v372_v48, 16  ;;  %v4171_v13 = vcombine.low %v3130_v45, %v3133_v56  ;;  %v944_v25 = vld [vmem:[%s4424_s16 + $0xb4] sm:$0xe] }
  0xf8   : > { %v1905_v21 = vpop.permute.xlu1 %1904  ;;  %846 = vrot.lane.b32.xlu0 %v3756_v37, %s4379_s19  ;;  %v768_v60 = vrot.slane %v766_v54, 5  ;;  %v774_v61 = vrot.slane %v772_v55, 5  ;;  %v778_v63 = vrot.slane %v776_v11, 4  ;;  %v580_v6 = vshll.u32 %v373_v53, 16  ;;  %v945_v29 = vld [vmem:[%s4424_s16 + $0xb8] sm:$0xf] }
  0xf9   : > { %1943 = vst.msk [vmem:[#allocation2 + $0x50] sm:$0xff] %vm1932_vm10, %v1905_v21  ;;  %v1889_v44 = vpop.permute.xlu0 %1888  ;;  %v784_v2 = vrot.slane %v782_v58, 5  ;;  %v573_v3 = vrot.slane %v571_v43, 4  ;;  %v576_v4 = vrot.slane %v574_v20, 5  ;;  %v584_v12 = vshrl.u32 %v373_v53, 16 }
  0xfa   : > { %1935 = vst.msk [vmem:[#allocation2 + $0x10] sm:$0xff] %vm1932_vm10, %v1889_v44  ;;  %3278 = vrot.lane.b32.xlu1 %v4179_v50, %s4384_s24  ;;  %v769_v9 = vor.u32 %v768_v60, %v765_v52  ;;  %v779_v10 = vor.u32 %v778_v63, %v774_v61  ;;  %v590_v14 = vshll.u32 %v374_v57, 16  ;;  %v582_v18 = vrot.slane %v580_v6, 5  ;;  %v946_v30 = vld [vmem:[%s4424_s16 + $0xbc] sm:$0x1] }
  0xfb   : > { %v577_v17 = vor.u32 %v576_v4, %v573_v3  ;;  %v3780_v19 = vrot.slane %v941_v59, 9  ;;  %v1098_v23 = vrot.slane %v942_v1, 5  ;;  %v586_v27 = vrot.slane %v584_v12, 4  ;;  %v920_v62 = vld [vmem:[%s4424_s16 + $0x54] sm:$0xe] }
  0xfc   : > { %v1907_v8 = vpop.permute.xlu1 %1906  ;;  %3262 = vrot.lane.b32.xlu0 %v4171_v13, %s4384_s24  ;;  %v770_v26 = vrot.slane %v769_v9, 4  ;;  %v780_v22 = vrot.slane %v779_v10, 4  ;;  %v592_v28 = vrot.slane %v590_v14, 5  ;;  %v1101_v34 = vrot.slane %v943_v7, 5  ;;  %v921_v35 = vld [vmem:[%s4424_s16 + $0x58] sm:$0xf] }
  0xfd   : > { %1944 = vst.msk [vmem:[#allocation2 + $0x58] sm:$0xff] %vm1932_vm10, %v1907_v8  ;;  %v578_v31 = vrot.slane %v577_v17, 4  ;;  %v1099_v32 = vsel %vm4426_vm2, %v3780_v19, %v1098_v23  ;;  %v1100_v33 = vrot.slane %v1098_v23, 4  ;;  %v587_v41 = vor.u32 %v586_v27, %v582_v18  ;;  %v922_v45 = vld [vmem:[%s4424_s16 + $0x5c] sm:$0x1] }
  0xfe   : > { %v775_v39 = vsel %vm4476_vm5, %v770_v26, %v774_v61  ;;  %v785_v40 = vsel %vm4476_vm5, %v780_v22, %v784_v2  ;;  %v3772_v42 = vrot.slane %v917_v15, 9  ;;  %v1042_v50 = vrot.slane %v918_v16, 5  ;;  %v3888_v51 = vld [vmem:[%s4424_s16 + $0xb4] sm:$0xf]  ;;  %v3889_v54 = vld [vmem:[%s4424_s16 + $0xb8] sm:$0xf] }
  0xff   : > { %v1891_v36 = vpop.permute.xlu0 %1890  ;;  %v3765_v47 = vcombine.low %v775_v39, %v785_v40  ;;  %v583_v48 = vsel %vm4476_vm5, %v578_v31, %v582_v18  ;;  %v1102_v49 = vsel %vm4426_vm2, %v1100_v33, %v1101_v34  ;;  %v588_v52 = vrot.slane %v587_v41, 4  ;;  %v3890_v43 = vld [vmem:[%s4424_s16 + $0xbc] sm:$0x1]  ;;  %v3864_v2 = vld [vmem:[%s4424_s16 + $0x54] sm:$0xf] }
 0x100   : > { %v2226_v38 = vpop.permute.xlu1 %2225  ;;  %1936 = vst.msk [vmem:[#allocation2 + $0x18] sm:$0xff] %vm1932_vm10, %v1891_v36  ;;  %v3796_v53 = vcombine.low %v1099_v32, %v1102_v49  ;;  %v1045_v21 = vrot.slane %v919_v24, 5  ;;  %v3781_v37 = vrot.slane %v944_v25, 9  ;;  %v1043_v55 = vsel %vm4426_vm2, %v3772_v42, %v1042_v50  ;;  %v3865_v3 = vld [vmem:[%s4424_s16 + $0x58] sm:$0xf] }
 0x101   : > { %2264 = vst.msk [vmem:[#allocation2 + $0x50] sm:$0xff] %vm2253_vm11, %v2226_v38  ;;  %864 = vrot.lane.b32.xlu1 %v3765_v47, %s4379_s19  ;;  %v1044_v11 = vrot.slane %v1042_v50, 4  ;;  %v1105_v57 = vrot.slane %v945_v29, 5  ;;  %v1108_v46 = vrot.slane %v946_v30, 5  ;;  %v593_v20 = vsel %vm4476_vm5, %v588_v52, %v592_v28  ;;  %v3866_v24 = vld [vmem:[%s4424_s16 + $0x5c] sm:$0x1] }
 0x102   : > { %v3773_v59 = vrot.slane %v920_v62, 9  ;;  %v1049_v44 = vrot.slane %v921_v35, 5  ;;  %v1052_v13 = vrot.slane %v922_v45, 5  ;;  %v3757_v60 = vcombine.low %v583_v48, %v593_v20  ;;  %v3891_v28 = vld [vmem:[%s4424_s16 + $0xc0] sm:$0xf]  ;;  %v4337_v33 = vld [vmem:[%s4424_s16 + $0xb4] sm:$0xff]  }
 0x103   : > { %v2210_v56 = vpop.permute.xlu0 %2209  ;;  %v1046_v61 = vsel %vm4426_vm2, %v1044_v11, %v1045_v21  ;;  %v1106_v63 = vsel %vm4426_vm2, %v3781_v37, %v1105_v57  ;;  %v1107_v1 = vrot.slane %v1105_v57, 4  ;;  %v1789_v8 = vshrl.u32 %v3888_v51, 16  ;;  %v3892_v39 = vld [vmem:[%s4424_s16 + $0xc4] sm:$0xf]  ;;  %v3893_v52 = vld [vmem:[%s4424_s16 + $0xc8] sm:$0x1] }
 0x104   : > { %v2228_v58 = vpop.permute.xlu1 %2227  ;;  %2256 = vst.msk [vmem:[#allocation2 + $0x10] sm:$0xff] %vm2253_vm11, %v2210_v56  ;;  %v3788_v4 = vcombine.low %v1043_v55, %v1046_v61  ;;  %v1050_v6 = vsel %vm4426_vm2, %v3773_v59, %v1049_v44  ;;  %v1051_v7 = vrot.slane %v1049_v44, 4  ;;  %848 = vrot.lane.b32.xlu0 %v3757_v60, %s4379_s19  ;;  %v1792_v12 = vshll.u32 %v3888_v51, 16  ;;  %v3867_v11 = vld [vmem:[%s4424_s16 + $0x60] sm:$0xf] }
 0x105   : > { %2265 = vst.msk [vmem:[#allocation2 + $0x58] sm:$0xff] %vm2253_vm11, %v2228_v58  ;;  %1186 = vrot.lane.b32.xlu1 %v3796_v53, %s4378_s18  ;;  %v1109_v9 = vsel %vm4426_vm2, %v1107_v1, %v1108_v46  ;;  %v1798_v14 = vshll.u32 %v3889_v54, 16  ;;  %v1802_v15 = vshrl.u32 %v3889_v54, 16  ;;  %v1791_v19 = vrot.slane %v1789_v8, 4  ;;  %v4338_v53 = vld [vmem:[%s4424_s16 + $0x54] sm:$0xff]   ;;  %v4339_v57 = vld [vmem:[%s4424_s16 + $0xc0] sm:$0xff]  }
 0x106   : > { %v3797_v17 = vcombine.low %v1106_v63, %v1109_v9  ;;  %v1053_v18 = vsel %vm4426_vm2, %v1051_v7, %v1052_v13  ;;  %v1808_v23 = vshll.u32 %v3890_v43, 16  ;;  %v1794_v26 = vrot.slane %v1792_v12, 5  ;;  %v3868_v20 = vld [vmem:[%s4424_s16 + $0x64] sm:$0xf]  ;;  %v3869_v1 = vld [vmem:[%s4424_s16 + $0x68] sm:$0x1] }
 0x107   : > { %v2212_v10 = vpop.permute.xlu0 %2211  ;;  %v3789_v25 = vcombine.low %v1050_v6, %v1053_v18  ;;  %v1800_v22 = vrot.slane %v1798_v14, 5  ;;  %v1804_v27 = vrot.slane %v1802_v15, 4  ;;  %v1597_v30 = vshrl.u32 %v3864_v2, 16  ;;  %v3953_v9 = vld [vmem:[%s4424_s16 + $0xb8] sm:$0xf] }
 0x108   : > { %v2407_v16 = vpop.permute.xlu1 %2406  ;;  %2257 = vst.msk [vmem:[#allocation2 + $0x18] sm:$0xff] %vm2253_vm11, %v2212_v10  ;;  %v1810_v29 = vrot.slane %v1808_v23, 5  ;;  %v1600_v31 = vshll.u32 %v3864_v2, 16  ;;  %v1606_v32 = vshll.u32 %v3865_v3, 16  ;;  %1170 = vrot.lane.b32.xlu0 %v3788_v4, %s4378_s18  ;;  %v1795_v34 = vor.u32 %v1794_v26, %v1791_v19  ;;  %v3952_v2 = vld [vmem:[%s4424_s16 + $0xb4] sm:$0xe] }
 0x109   : > { %2445 = vst.msk [vmem:[#allocation2 + $0x50] sm:$0xff] %vm2434_vm12, %v2407_v16  ;;  %1188 = vrot.lane.b32.xlu1 %v3797_v17, %s4378_s18  ;;  %v1805_v62 = vor.u32 %v1804_v27, %v1800_v22  ;;  %v1610_v35 = vshrl.u32 %v3865_v3, 16  ;;  %v1616_v36 = vshll.u32 %v3866_v24, 16  ;;  %v1599_v41 = vrot.slane %v1597_v30, 4  ;;  %v4340_v3 = vld [vmem:[%s4424_s16 + $0x60] sm:$0xff]  }
 0x10a   : > { %v1602_v42 = vrot.slane %v1600_v31, 5  ;;  %v1608_v45 = vrot.slane %v1606_v32, 5  ;;  %v1813_v47 = vshrl.u32 %v3891_v28, 16  ;;  %v1796_v48 = vrot.slane %v1795_v34, 4  ;;  %v3954_v10 = vld [vmem:[%s4424_s16 + $0xbc] sm:$0x1] }
 0x10b   : > { %v2391_v38 = vpop.permute.xlu0 %2390  ;;  %v1806_v49 = vrot.slane %v1805_v62, 4  ;;  %v1612_v50 = vrot.slane %v1610_v35, 4  ;;  %v1618_v51 = vrot.slane %v1616_v36, 5  ;;  %v1816_v54 = vshll.u32 %v3891_v28, 16  ;;  %v3928_v17 = vld [vmem:[%s4424_s16 + $0x54] sm:$0xe] }
 0x10c   : > { %v2409_v40 = vpop.permute.xlu1 %2408  ;;  %2437 = vst.msk [vmem:[#allocation2 + $0x10] sm:$0xff] %vm2434_vm12, %v2391_v38  ;;  %v1603_v21 = vor.u32 %v1602_v42, %v1599_v41  ;;  %v1815_v37 = vrot.slane %v1813_v47, 4  ;;  %v1822_v55 = vshll.u32 %v3892_v39, 16  ;;  %1172 = vrot.lane.b32.xlu0 %v3789_v25, %s4378_s18  ;;  %v1801_v46 = vsel %vm4476_vm5, %v1796_v48, %v1800_v22  ;;  %v3929_v30 = vld [vmem:[%s4424_s16 + $0x58] sm:$0xf] }
 0x10d   : > { %2446 = vst.msk [vmem:[#allocation2 + $0x58] sm:$0xff] %vm2434_vm12, %v2409_v40  ;;  %1367 = vrot.lane.b32.xlu1 %v4337_v33, %s4377_s17  ;;  %v1811_v56 = vsel %vm4476_vm5, %v1806_v49, %v1810_v29  ;;  %v1613_v58 = vor.u32 %v1612_v50, %v1608_v45  ;;  %v1826_v43 = vshrl.u32 %v3892_v39, 16  ;;  %v1818_v61 = vrot.slane %v1816_v54, 5  ;;  %v3930_v62 = vld [vmem:[%s4424_s16 + $0x5c] sm:$0x1] }
 0x10e   : > { %v3908_v13 = vcombine.low %v1801_v46, %v1811_v56  ;;  %v1604_v60 = vrot.slane %v1603_v21, 4  ;;  %v1824_v63 = vrot.slane %v1822_v55, 5  ;;  %v1832_v7 = vshll.u32 %v3893_v52, 16  ;;  %v3955_v40 = vld [vmem:[%s4424_s16 + $0xc0] sm:$0xe] }
 0x10f   : > { %v2393_v59 = vpop.permute.xlu0 %2392  ;;  %v1614_v4 = vrot.slane %v1613_v58, 4  ;;  %v1828_v6 = vrot.slane %v1826_v43, 4  ;;  %v1621_v8 = vshrl.u32 %v3867_v11, 16  ;;  %v1819_v14 = vor.u32 %v1818_v61, %v1815_v37  ;;  %v3956_v41 = vld [vmem:[%s4424_s16 + $0xc4] sm:$0xf] }
 0x110   : > { %v2952_v44 = vpop.permute.xlu1 %2951  ;;  %2438 = vst.msk [vmem:[#allocation2 + $0x18] sm:$0xff] %vm2434_vm12, %v2393_v59  ;;  %v1609_v12 = vsel %vm4476_vm5, %v1604_v60, %v1608_v45  ;;  %v1624_v15 = vshll.u32 %v3867_v11, 16  ;;  %v1630_v16 = vshll.u32 %v3868_v20, 16  ;;  %1351 = vrot.lane.b32.xlu0 %v4338_v53, %s4377_s17  ;;  %v1834_v23 = vrot.slane %v1832_v7, 5  ;;  %v3957_v49 = vld [vmem:[%s4424_s16 + $0xc8] sm:$0x1] }
 0x111   : > { %2990 = vst.msk [vmem:[#allocation2 + $0x50] sm:$0xff] %vm2979_vm13, %v2952_v44  ;;  %1369 = vrot.lane.b32.xlu1 %v4339_v57, %s4377_s17  ;;  %v1619_v18 = vsel %vm4476_vm5, %v1614_v4, %v1618_v51  ;;  %v1829_v19 = vor.u32 %v1828_v6, %v1824_v63  ;;  %v1623_v24 = vrot.slane %v1621_v8, 4  ;;  %v1820_v27 = vrot.slane %v1819_v14, 4  ;;  %v3931_v54 = vld [vmem:[%s4424_s16 + $0x60] sm:$0xe] }
 0x112   : > { %v3900_v22 = vcombine.low %v1609_v12, %v1619_v18  ;;  %v1626_v28 = vrot.slane %v1624_v15, 5  ;;  %v5315_v29 = vrot.slane %v1630_v16, 5  ;;  %v1634_v32 = vshrl.u32 %v3868_v20, 16  ;;  %v3932_v56 = vld [vmem:[%s4424_s16 + $0x64] sm:$0xf] }
 0x113   : > { %v2936_v25 = vpop.permute.xlu0 %2935  ;;  %v1830_v31 = vrot.slane %v1829_v19, 4  ;;  %v1640_v33 = vshll.u32 %v3869_v1, 16  ;;  %v3972_v34 = vrot.slane %v3952_v2, 9  ;;  %v1825_v35 = vsel %vm4476_vm5, %v1820_v27, %v1824_v63  ;;  %v3933_v44 = vld [vmem:[%s4424_s16 + $0x68] sm:$0x1] }
 0x114   : > { %v2954_v26 = vpop.permute.xlu1 %2953  ;;  %2982 = vst.msk [vmem:[#allocation2 + $0x10] sm:$0xff] %vm2979_vm13, %v2936_v25  ;;  %v1627_v36 = vor.u32 %v1626_v28, %v1623_v24  ;;  %v2145_v38 = vrot.slane %v3953_v9, 5  ;;  %v2148_v39 = vrot.slane %v3954_v10, 5  ;;  %1353 = vrot.lane.b32.xlu0 %v4340_v3, %s4377_s17  ;;  %v1636_v45 = vrot.slane %v1634_v32, 4  ;;  %v4081_v3 = vld [vmem:[%s4424_s16 + $0xc4] sm:$0xf] }
 0x115   : > { %2991 = vst.msk [vmem:[#allocation2 + $0x58] sm:$0xff] %vm2979_vm13, %v2954_v26  ;;  %1912 = vrot.lane.b32.xlu1 %v3908_v13, %s4380_s20  ;;  %v1835_v42 = vsel %vm4476_vm5, %v1830_v31, %v1834_v23  ;;  %v1642_v47 = vrot.slane %v1640_v33, 5  ;;  %v3964_v48 = vrot.slane %v3928_v17, 9  ;;  %v2089_v11 = vrot.slane %v3929_v30, 5  ;;  %v4080_v13 = vld [vmem:[%s4424_s16 + $0xc0] sm:$0xf] }
 0x116   : > { %v3909_v52 = vcombine.low %v1825_v35, %v1835_v42  ;;  %v1628_v53 = vrot.slane %v1627_v36, 4  ;;  %v2146_v21 = vsel %vm4426_vm2, %v3972_v34, %v2145_v38  ;;  %v2147_v37 = vrot.slane %v2145_v38, 4  ;;  %v4082_v4 = vld [vmem:[%s4424_s16 + $0xc8] sm:$0x1]  ;;  %v4056_v6 = vld [vmem:[%s4424_s16 + $0x60] sm:$0xf] }
 0x117   : > { %v2938_v50 = vpop.permute.xlu0 %2937  ;;  %v1637_v55 = vor.u32 %v1636_v45, %v5315_v29  ;;  %v2092_v57 = vrot.slane %v3930_v62, 5  ;;  %v3973_v46 = vrot.slane %v3955_v40, 9  ;;  %v2152_v20 = vrot.slane %v3956_v41, 5  ;;  %v4057_v12 = vld [vmem:[%s4424_s16 + $0x64] sm:$0xf] }
 0x118   : > { %v3273_v51 = vpop.permute.xlu1 %3272  ;;  %2983 = vst.msk [vmem:[#allocation2 + $0x18] sm:$0xff] %vm2979_vm13, %v2938_v50  ;;  %v1633_v58 = vsel %vm4476_vm5, %v1628_v53, %v5315_v29  ;;  %v2149_v43 = vsel %vm4426_vm2, %v2147_v37, %v2148_v39  ;;  %v2155_v59 = vrot.slane %v3957_v49, 5  ;;  %1896 = vrot.lane.b32.xlu0 %v3900_v22, %s4380_s20  ;;  %v2090_v63 = vsel %vm4426_vm2, %v3964_v48, %v2089_v11  ;;  %v4058_v29 = vld [vmem:[%s4424_s16 + $0x68] sm:$0x1]  ;;  %v4083_v40 = vld [vmem:[%s4424_s16 + $0xcc] sm:$0xf] }
 0x119   : > { %3311 = vst.msk [vmem:[#allocation2 + $0x50] sm:$0xff] %vm3300_vm14, %v3273_v51  ;;  %1914 = vrot.lane.b32.xlu1 %v3909_v52, %s4380_s20  ;;  %v1638_v60 = vrot.slane %v1637_v55, 4  ;;  %v3988_v61 = vcombine.low %v2146_v21, %v2149_v43  ;;  %v2091_v1 = vrot.slane %v2089_v11, 4  ;;  %v2153_v7 = vsel %vm4426_vm2, %v3973_v46, %v2152_v20  ;;  %v4084_v48 = vld [vmem:[%s4424_s16 + $0xd0] sm:$0xf]  ;;  %v4341_v49 = vld [vmem:[%s4424_s16 + $0xc0] sm:$0xff]  }
 0x11a   : > { %v2154_v8 = vrot.slane %v2152_v20, 4  ;;  %v3965_v9 = vrot.slane %v3931_v54, 9  ;;  %v2096_v10 = vrot.slane %v3932_v56, 5  ;;  %v2099_v16 = vrot.slane %v3933_v44, 5  ;;  %v4085_v43 = vld [vmem:[%s4424_s16 + $0xd4] sm:$0x1] }
 0x11b   : > { %v3257_v2 = vpop.permute.xlu0 %3256  ;;  %v1643_v14 = vsel %vm4476_vm5, %v1638_v60, %v1642_v47  ;;  %v2093_v15 = vsel %vm4426_vm2, %v2091_v1, %v2092_v57  ;;  %v2836_v17 = vshrl.u32 %v4080_v13, 16  ;;  %v2839_v28 = vshll.u32 %v4080_v13, 16  ;;  %v4343_v1 = vld [vmem:[%s4424_s16 + $0xcc] sm:$0xff]  }
 0x11c   : > { %3303 = vst.msk [vmem:[#allocation2 + $0x10] sm:$0xff] %vm3300_vm14, %v3257_v2  ;;  %v3901_v18 = vcombine.low %v1633_v58, %v1643_v14  ;;  %v3980_v19 = vcombine.low %v2090_v63, %v2093_v15  ;;  %v2156_v23 = vsel %vm4426_vm2, %v2154_v8, %v2155_v59  ;;  %v2097_v24 = vsel %vm4426_vm2, %v3965_v9, %v2096_v10  ;;  %v4059_v63 = vld [vmem:[%s4424_s16 + $0x6c] sm:$0xf]  ;;  %v4060_v14 = vld [vmem:[%s4424_s16 + $0x70] sm:$0xf] }
 0x11d   : > { %2233 = vrot.lane.b32.xlu1 %v3988_v61, %s4381_s21  ;;  %v3989_v25 = vcombine.low %v2153_v7, %v2156_v23  ;;  %v2098_v26 = vrot.slane %v2096_v10, 4  ;;  %v2838_v27 = vrot.slane %v2836_v17, 4  ;;  %v2845_v31 = vshll.u32 %v4081_v3, 16  ;;  %v4342_v7 = vld [vmem:[%s4424_s16 + $0x60] sm:$0xff]  }
 0x11e   : > { %1898 = vrot.lane.b32.xlu0 %v3901_v18, %s4380_s20  ;;  %v2849_v32 = vshrl.u32 %v4081_v3, 16  ;;  %v2855_v33 = vshll.u32 %v4082_v4, 16  ;;  %v2644_v34 = vshrl.u32 %v4056_v6, 16  ;;  %v2841_v36 = vrot.slane %v2839_v28, 5  ;;  %v4061_v18 = vld [vmem:[%s4424_s16 + $0x74] sm:$0x1] }
 0x11f   : > { %v859_v22 = vpop.permute.xlu1 %858  ;;  %v2100_v62 = vsel %vm4426_vm2, %v2098_v26, %v2099_v16  ;;  %v2647_v38 = vshll.u32 %v4056_v6, 16  ;;  %v2653_v39 = vshll.u32 %v4057_v12, 16  ;;  %v2847_v42 = vrot.slane %v2845_v31, 5  ;;  %v4144_v23 = vld [vmem:[%s4424_s16 + $0xc0] sm:$0xe] }
 0x120   : > { %v3327_v30 = vld [vmem:[#allocation2 + $0x50] sm:$0xff]  ;;  %895 = vst.msk [vmem:[#allocation2 + $0x60] sm:$0xff] %vm882_vm7, %v859_v22  ;;  %v3981_v41 = vcombine.low %v2097_v24, %v2100_v62  ;;  %v2851_v45 = vrot.slane %v2849_v32, 4  ;;  %v2857_v47 = vrot.slane %v2855_v33, 5  ;;  %v2842_v50 = vor.u32 %v2841_v36, %v2838_v27  ;;  %v4145_v27 = vld [vmem:[%s4424_s16 + $0xc4] sm:$0xf] }
 0x121   : > { %4249 = vmatprep.mubr.msk.bf16.mxu1 %vm3353_vm15, %v3327_v30  ;;  %v843_v35 = vpop.permute.xlu0 %842  ;;  %2235 = vrot.lane.b32.xlu1 %v3989_v25, %s4381_s21  ;;  %v2646_v51 = vrot.slane %v2644_v34, 4  ;;  %v2649_v52 = vrot.slane %v2647_v38, 5  ;;  %v5375_v53 = vrot.slane %v2653_v39, 5  ;;  %v2657_v55 = vshrl.u32 %v4057_v12, 16  ;;  %v4146_v28 = vld [vmem:[%s4424_s16 + $0xc8] sm:$0x1] }
 0x122   : > { %887 = vst.msk [vmem:[#allocation2 + $0x20] sm:$0xff] %vm882_vm7, %v843_v35  ;;  %2217 = vrot.lane.b32.xlu0 %v3980_v19, %s4381_s21  ;;  %v2852_v54 = vor.u32 %v2851_v45, %v2847_v42  ;;  %v2663_v11 = vshll.u32 %v4058_v29, 16  ;;  %v2860_v57 = vshrl.u32 %v4083_v40, 16  ;;  %v2843_v46 = vrot.slane %v2842_v50, 4  ;;  %v4344_v29 = vld [vmem:[%s4424_s16 + $0x6c] sm:$0xff]  }
 0x123   : > { %v3275_v21 = vpop.permute.xlu1 %3274  ;;  %v3319_v37 = vld [vmem:[#allocation2 + $0x10] sm:$0xff]  ;;  %v2650_v56 = vor.u32 %v2649_v52, %v2646_v51  ;;  %v2863_v20 = vshll.u32 %v4083_v40, 16  ;;  %v2869_v59 = vshll.u32 %v4084_v48, 16  ;;  %v2659_v13 = vrot.slane %v2657_v55, 4  ;;  %v4120_v40 = vld [vmem:[%s4424_s16 + $0x60] sm:$0xe] }
 0x124   : > { %3312 = vst.msk [vmem:[#allocation2 + $0x58] sm:$0xff] %vm3300_vm14, %v3275_v21  ;;  %4233 = vmatprep.mubr.msk.bf16.mxu0 %vm3353_vm15, %v3319_v37  ;;  %v2853_v44 = vrot.slane %v2852_v54, 4  ;;  %v2665_v60 = vrot.slane %v2663_v11, 5  ;;  %v2862_v61 = vrot.slane %v2860_v57, 4  ;;  %v2848_v2 = vsel %vm4476_vm5, %v2843_v46, %v2847_v42  ;;  %v4147_v54 = vld [vmem:[%s4424_s16 + $0xcc] sm:$0xe] }
 0x125   : > { %v3259_v58 = vpop.permute.xlu0 %3258  ;;  %2414 = vrot.lane.b32.xlu1 %v4341_v49, %s4382_s22  ;;  %v2651_v3 = vrot.slane %v2650_v56, 4  ;;  %v2865_v4 = vrot.slane %v2863_v20, 5  ;;  %v5387_v6 = vrot.slane %v2869_v59, 5  ;;  %v2660_v9 = vor.u32 %v2659_v13, %v5375_v53  ;;  %v4122_v49 = vld [vmem:[%s4424_s16 + $0x68] sm:$0x1] }
 0x126   : > { %3304 = vst.msk [vmem:[#allocation2 + $0x18] sm:$0xff] %vm3300_vm14, %v3259_v58  ;;  %2219 = vrot.lane.b32.xlu0 %v3981_v41, %s4381_s21  ;;  %v2858_v8 = vsel %vm4476_vm5, %v2853_v44, %v2857_v47  ;;  %v2873_v10 = vshrl.u32 %v4084_v48, 16  ;;  %v2879_v12 = vshll.u32 %v4085_v43, 16  ;;  %v2668_v19 = vshrl.u32 %v4059_v63, 16  ;;  %v4121_v41 = vld [vmem:[%s4424_s16 + $0x64] sm:$0xf] }
 0x127   : > { %v4100_v15 = vcombine.low %v2848_v2, %v2858_v8  ;;  %v2656_v16 = vsel %vm4476_vm5, %v2651_v3, %v5375_v53  ;;  %v2866_v17 = vor.u32 %v2865_v4, %v2862_v61  ;;  %v2661_v24 = vrot.slane %v2660_v9, 4  ;;  %v4148_v58 = vld [vmem:[%s4424_s16 + $0xd0] sm:$0xf]  ;;  %v4149_v13 = vld [vmem:[%s4424_s16 + $0xd4] sm:$0x1] }
 0x128   : > { %v2875_v25 = vrot.slane %v2873_v10, 4  ;;  %v2881_v26 = vrot.slane %v2879_v12, 5  ;;  %v2671_v22 = vshll.u32 %v4059_v63, 16  ;;  %v2670_v31 = vrot.slane %v2668_v19, 4  ;;  %v4124_v8 = vld [vmem:[%s4424_s16 + $0x70] sm:$0xf] }
 0x129   : > { %2416 = vrot.lane.b32.xlu1 %v4343_v1, %s4382_s22  ;;  %v2867_v30 = vrot.slane %v2866_v17, 4  ;;  %v2677_v32 = vshll.u32 %v4060_v14, 16  ;;  %v2681_v33 = vshrl.u32 %v4060_v14, 16  ;;  %v2666_v35 = vsel %vm4476_vm5, %v2661_v24, %v2665_v60 }
 0x12a   : > { %2398 = vrot.lane.b32.xlu0 %v4342_v7, %s4382_s22  ;;  %v2876_v36 = vor.u32 %v2875_v25, %v5387_v6  ;;  %v2673_v38 = vrot.slane %v2671_v22, 5  ;;  %v2687_v39 = vshll.u32 %v4061_v18, 16  ;;  %v4092_v42 = vcombine.low %v2656_v16, %v2666_v35  ;;  %v4123_v7 = vld [vmem:[%s4424_s16 + $0x6c] sm:$0xe] }
 0x12b   : > { %v861_v34 = vpop.permute.xlu1 %860  ;;  %v3328_v62 = vld [vmem:[#allocation2 + $0x58] sm:$0xff]  ;;  %v2872_v45 = vsel %vm4476_vm5, %v2867_v30, %v5387_v6  ;;  %v2679_v47 = vrot.slane %v2677_v32, 5  ;;  %v2683_v48 = vrot.slane %v2681_v33, 4  ;;  %v4164_v37 = vrot.slane %v4144_v23, 9 }
 0x12c   : > { %896 = vst.msk [vmem:[#allocation2 + $0x68] sm:$0xff] %vm882_vm7, %v861_v34  ;;  %4250 = vmatmul.mubr.msk.bf16.gmra.mrb[4].mxu1 %vm3353_vm15, %v3328_v62  ;;  %v2877_v51 = vrot.slane %v2876_v36, 4  ;;  %v2674_v52 = vor.u32 %v2673_v38, %v2670_v31  ;;  %v2689_v53 = vrot.slane %v2687_v39, 5  ;;  %v3192_v11 = vrot.slane %v4145_v27, 5 }
 0x12d   : > { %v3320_v50 = vld [vmem:[#allocation2 + $0x18] sm:$0xff]  ;;  %v845_v21 = vpop.permute.xlu0 %844  ;;  %2959 = vrot.lane.b32.xlu1 %v4100_v15, %s4383_s23  ;;  %v2684_v55 = vor.u32 %v2683_v48, %v2679_v47  ;;  %v3195_v57 = vrot.slane %v4146_v28, 5  ;;  %v4156_v46 = vrot.slane %v4120_v40, 9  ;;  %v3136_v59 = vrot.slane %v4121_v41, 5  ;;  %v4125_v15 = vld [vmem:[%s4424_s16 + $0x74] sm:$0x1] }
 0x12e   : > { %4234 = vmatmul.mubr.msk.bf16.gmra.mrb[4].mxu0 %vm3353_vm15, %v3320_v50  ;;  %888 = vst.msk [vmem:[#allocation2 + $0x28] sm:$0xff] %vm882_vm7, %v845_v21  ;;  %2400 = vrot.lane.b32.xlu0 %v4344_v29, %s4382_s22  ;;  %v2882_v43 = vsel %vm4476_vm5, %v2877_v51, %v2881_v26  ;;  %v2675_v20 = vrot.slane %v2674_v52, 4  ;;  %v3139_v44 = vrot.slane %v4122_v49, 5  ;;  %v3193_v63 = vsel %vm4426_vm2, %v4164_v37, %v3192_v11 }
 0x12f   : > { %v1183_v56 = vpop.permute.xlu1 %1182  ;;  %v4101_v60 = vcombine.low %v2872_v45, %v2882_v43  ;;  %v2685_v61 = vrot.slane %v2684_v55, 4  ;;  %v3194_v1 = vrot.slane %v3192_v11, 4  ;;  %v3138_v3 = vrot.slane %v3136_v59, 4 }
 0x130   : > { %1219 = vst.msk [vmem:[#allocation2 + $0x60] sm:$0xff] %vm1206_vm8, %v1183_v56  ;;  %v2680_v2 = vsel %vm4476_vm5, %v2675_v20, %v2679_v47  ;;  %v4165_v6 = vrot.slane %v4147_v54, 9  ;;  %v3199_v12 = vrot.slane %v4148_v58, 5  ;;  %v3202_v14 = vrot.slane %v4149_v13, 5 }
 0x131   : > { %v1167_v4 = vpop.permute.xlu0 %1166  ;;  %2961 = vrot.lane.b32.xlu1 %v4101_v60, %s4383_s23  ;;  %v2690_v9 = vsel %vm4476_vm5, %v2685_v61, %v2689_v53  ;;  %v3196_v10 = vsel %vm4426_vm2, %v3194_v1, %v3195_v57  ;;  %v3137_v19 = vsel %vm4426_vm2, %v4156_v46, %v3136_v59  ;;  %v3140_v5 = vsel %vm4426_vm2, %v3138_v3, %v3139_v44 }
 0x132   : > { %1211 = vst.msk [vmem:[#allocation2 + $0x20] sm:$0xff] %vm1206_vm8, %v1167_v4  ;;  %2943 = vrot.lane.b32.xlu0 %v4092_v42, %s4383_s23  ;;  %v4093_v17 = vcombine.low %v2680_v2, %v2690_v9  ;;  %v4180_v18 = vcombine.low %v3193_v63, %v3196_v10  ;;  %v3200_v23 = vsel %vm4426_vm2, %v4165_v6, %v3199_v12  ;;  %v3201_v24 = vrot.slane %v3199_v12, 4 }
 0x133   : > { %v1185_v16 = vpop.permute.xlu1 %1184  ;;  %v4157_v25 = vrot.slane %v4123_v7, 9  ;;  %v3143_v26 = vrot.slane %v4124_v8, 5  ;;  %v3146_v22 = vrot.slane %v4125_v15, 5  ;;  %v4172_v31 = vcombine.low %v3137_v19, %v3140_v5 }
 0x134   : > { %1220 = vst.msk [vmem:[#allocation2 + $0x68] sm:$0xff] %vm1206_vm8, %v1185_v16  ;;  %v3203_v28 = vsel %vm4426_vm2, %v3201_v24, %v3202_v14 }
 0x135   : > { %v1169_v27 = vpop.permute.xlu0 %1168  ;;  %3280 = vrot.lane.b32.xlu1 %v4180_v18, %s4384_s24  ;;  %v3145_v29 = vrot.slane %v3143_v26, 4  ;;  %v4181_v32 = vcombine.low %v3200_v23, %v3203_v28  ;;  %v3144_v33 = vsel %vm4426_vm2, %v4157_v25, %v3143_v26 }
 0x136   : > { %1212 = vst.msk [vmem:[#allocation2 + $0x28] sm:$0xff] %vm1206_vm8, %v1169_v27  ;;  %2945 = vrot.lane.b32.xlu0 %v4093_v17, %s4383_s23 }
 0x137   : > { %v1364_v30 = vpop.permute.xlu1 %1363  ;;  %v3147_v34 = vsel %vm4426_vm2, %v3145_v29, %v3146_v22 }
 0x138   : > { %1400 = vst.msk [vmem:[#allocation2 + $0x60] sm:$0xff] %vm1387_vm9, %v1364_v30  ;;  %v4173_v36 = vcombine.low %v3144_v33, %v3147_v34 }
 0x139   : > { %v1348_v62 = vpop.permute.xlu0 %1347  ;;  %3282 = vrot.lane.b32.xlu1 %v4181_v32, %s4384_s24 }
 0x13a   : > { %1392 = vst.msk [vmem:[#allocation2 + $0x20] sm:$0xff] %vm1387_vm9, %v1348_v62  ;;  %3264 = vrot.lane.b32.xlu0 %v4172_v31, %s4384_s24 }
 0x13b   : > { %v1366_v35 = vpop.permute.xlu1 %1365 }
 0x13c   : > { %1401 = vst.msk [vmem:[#allocation2 + $0x68] sm:$0xff] %vm1387_vm9, %v1366_v35 }
 0x13d   : > { %v1350_v38 = vpop.permute.xlu0 %1349 }
 0x13e   : > { %1393 = vst.msk [vmem:[#allocation2 + $0x28] sm:$0xff] %vm1387_vm9, %v1350_v38  ;;  %3266 = vrot.lane.b32.xlu0 %v4173_v36, %s4384_s24 }
 0x13f   : > { %v1909_v39 = vpop.permute.xlu1 %1908 }
 0x140   : > { %1945 = vst.msk [vmem:[#allocation2 + $0x60] sm:$0xff] %vm1932_vm10, %v1909_v39 }
 0x141   : > { %v1893_v0 = vpop.permute.xlu0 %1892 }
 0x142   : > { %1937 = vst.msk [vmem:[#allocation2 + $0x20] sm:$0xff] %vm1932_vm10, %v1893_v0 }
 0x143   : > { %v1911_v40 = vpop.permute.xlu1 %1910 }
 0x144   : > { %1946 = vst.msk [vmem:[#allocation2 + $0x68] sm:$0xff] %vm1932_vm10, %v1911_v40 }
 0x147   : > { %v2230_v41 = vpop.permute.xlu1 %2229  ;;  %v1895_v42 = vpop.permute.xlu0 %1894 }
 0x148   : > { %2266 = vst.msk [vmem:[#allocation2 + $0x60] sm:$0xff] %vm2253_vm11, %v2230_v41 }
 0x149   : > { %1938 = vst.msk [vmem:[#allocation2 + $0x28] sm:$0xff] %vm1932_vm10, %v1895_v42 }
 0x14b   : > { %v2232_v45 = vpop.permute.xlu1 %2231  ;;  %v2214_v47 = vpop.permute.xlu0 %2213 }
 0x14c   : > { %2267 = vst.msk [vmem:[#allocation2 + $0x68] sm:$0xff] %vm2253_vm11, %v2232_v45  ;;  %2258 = vst.msk [vmem:[#allocation2 + $0x20] sm:$0xff] %vm2253_vm11, %v2214_v47 }
 0x14f   : > { %v2411_v48 = vpop.permute.xlu1 %2410  ;;  %v2216_v49 = vpop.permute.xlu0 %2215 }
 0x150   : > { %2447 = vst.msk [vmem:[#allocation2 + $0x60] sm:$0xff] %vm2434_vm12, %v2411_v48 }
 0x151   : > { %2259 = vst.msk [vmem:[#allocation2 + $0x28] sm:$0xff] %vm2253_vm11, %v2216_v49 }
 0x153   : > { %v2413_v50 = vpop.permute.xlu1 %2412  ;;  %v2395_v51 = vpop.permute.xlu0 %2394 }
 0x154   : > { %2448 = vst.msk [vmem:[#allocation2 + $0x68] sm:$0xff] %vm2434_vm12, %v2413_v50  ;;  %2439 = vst.msk [vmem:[#allocation2 + $0x20] sm:$0xff] %vm2434_vm12, %v2395_v51 }
 0x157   : > { %v2956_v52 = vpop.permute.xlu1 %2955  ;;  %v2397_v53 = vpop.permute.xlu0 %2396 }
 0x158   : > { %2992 = vst.msk [vmem:[#allocation2 + $0x60] sm:$0xff] %vm2979_vm13, %v2956_v52 }
 0x159   : > { %2440 = vst.msk [vmem:[#allocation2 + $0x28] sm:$0xff] %vm2434_vm12, %v2397_v53 }
 0x15b   : > { %v2940_v21 = vpop.permute.xlu0 %2939  ;;  %v2958_v37 = vpop.permute.xlu1 %2957 }
 0x15c   : > { %2984 = vst.msk [vmem:[#allocation2 + $0x20] sm:$0xff] %vm2979_vm13, %v2940_v21  ;;  %2993 = vst.msk [vmem:[#allocation2 + $0x68] sm:$0xff] %vm2979_vm13, %v2958_v37 }
 0x15f   : > { %v2942_v54 = vpop.permute.xlu0 %2941  ;;  %v3277_v55 = vpop.permute.xlu1 %3276 }
 0x160   : > { %2985 = vst.msk [vmem:[#allocation2 + $0x28] sm:$0xff] %vm2979_vm13, %v2942_v54 }
 0x161   : > { %3313 = vst.msk [vmem:[#allocation2 + $0x60] sm:$0xff] %vm3300_vm14, %v3277_v55 }
 0x163   : > { %v3261_v11 = vpop.permute.xlu0 %3260 }
 0x164   : > { %3305 = vst.msk [vmem:[#allocation2 + $0x20] sm:$0xff] %vm3300_vm14, %v3261_v11 }
 0x168   : > { %v3329_v57 = vld [vmem:[#allocation2 + $0x60] sm:$0xff]  ;;  %v863_v46 = vpop.permute.xlu1 %862 }
 0x169   : > { %4253 = vmatprep.mubr.msk.bf16.mxu1 %vm3353_vm15, %v3329_v57  ;;  %897 = vst.msk [vmem:[#allocation2 + $0x70] sm:$0xff] %vm882_vm7, %v863_v46 }
 0x16a   : > { %v847_v56 = vpop.permute.xlu0 %846 }
 0x16b   : > { %v3321_v58 = vld [vmem:[#allocation2 + $0x20] sm:$0xff]  ;;  %889 = vst.msk [vmem:[#allocation2 + $0x30] sm:$0xff] %vm882_vm7, %v847_v56 }
 0x16c   : > { %4237 = vmatprep.mubr.msk.bf16.mxu0 %vm3353_vm15, %v3321_v58  ;;  %v3279_v43 = vpop.permute.xlu1 %3278 }
 0x16d   : > { %3314 = vst.msk [vmem:[#allocation2 + $0x68] sm:$0xff] %vm3300_vm14, %v3279_v43 }
 0x16e   : > { %v3263_v20 = vpop.permute.xlu0 %3262 }
 0x16f   : > { %3306 = vst.msk [vmem:[#allocation2 + $0x28] sm:$0xff] %vm3300_vm14, %v3263_v20 }
 0x173   : > { %v865_v59 = vpop.permute.xlu1 %864 }
 0x174   : > { %898 = vst.msk [vmem:[#allocation2 + $0x78] sm:$0xff] %vm882_vm7, %v865_v59  ;;  %v3330_v44 = vld [vmem:[#allocation2 + $0x68] sm:$0xff] }
 0x175   : > { %4254 = vmatmul.mubr.msk.bf16.gmra.mrb[8].mxu1 %vm3353_vm15, %v3330_v44 }
 0x176   : > { %v3322_v13 = vld [vmem:[#allocation2 + $0x28] sm:$0xff]  ;;  %v849_v60 = vpop.permute.xlu0 %848 }
 0x177   : > { %v1187_v61 = vpop.permute.xlu1 %1186  ;;  %4238 = vmatmul.mubr.msk.bf16.gmra.mrb[8].mxu0 %vm3353_vm15, %v3322_v13  ;;  %890 = vst.msk [vmem:[#allocation2 + $0x38] sm:$0xff] %vm882_vm7, %v849_v60 }
 0x178   : > { %1221 = vst.msk [vmem:[#allocation2 + $0x70] sm:$0xff] %vm1206_vm8, %v1187_v61 }
 0x17a   : > { %v1171_v63 = vpop.permute.xlu0 %1170 }
 0x17b   : > { %v1189_v1 = vpop.permute.xlu1 %1188  ;;  %1213 = vst.msk [vmem:[#allocation2 + $0x30] sm:$0xff] %vm1206_vm8, %v1171_v63 }
 0x17c   : > { %1222 = vst.msk [vmem:[#allocation2 + $0x78] sm:$0xff] %vm1206_vm8, %v1189_v1 }
 0x17e   : > { %v1173_v2 = vpop.permute.xlu0 %1172 }
 0x17f   : > { %v1368_v3 = vpop.permute.xlu1 %1367  ;;  %1214 = vst.msk [vmem:[#allocation2 + $0x38] sm:$0xff] %vm1206_vm8, %v1173_v2 }
 0x180   : > { %1402 = vst.msk [vmem:[#allocation2 + $0x70] sm:$0xff] %vm1387_vm9, %v1368_v3 }
 0x182   : > { %v1352_v4 = vpop.permute.xlu0 %1351 }
 0x183   : > { %v1370_v6 = vpop.permute.xlu1 %1369  ;;  %1394 = vst.msk [vmem:[#allocation2 + $0x30] sm:$0xff] %vm1387_vm9, %v1352_v4 }
 0x184   : > { %1403 = vst.msk [vmem:[#allocation2 + $0x78] sm:$0xff] %vm1387_vm9, %v1370_v6 }
 0x186   : > { %v1354_v7 = vpop.permute.xlu0 %1353 }
 0x187   : > { %v1913_v8 = vpop.permute.xlu1 %1912  ;;  %1395 = vst.msk [vmem:[#allocation2 + $0x38] sm:$0xff] %vm1387_vm9, %v1354_v7 }
 0x188   : > { %1947 = vst.msk [vmem:[#allocation2 + $0x70] sm:$0xff] %vm1932_vm10, %v1913_v8 }
 0x18a   : > { %v1897_v9 = vpop.permute.xlu0 %1896 }
 0x18b   : > { %v1915_v10 = vpop.permute.xlu1 %1914  ;;  %1939 = vst.msk [vmem:[#allocation2 + $0x30] sm:$0xff] %vm1932_vm10, %v1897_v9 }
 0x18c   : > { %1948 = vst.msk [vmem:[#allocation2 + $0x78] sm:$0xff] %vm1932_vm10, %v1915_v10 }
 0x18f   : > { %v2234_v12 = vpop.permute.xlu1 %2233 }
 0x190   : > { %v1899_v14 = vpop.permute.xlu0 %1898  ;;  %2268 = vst.msk [vmem:[#allocation2 + $0x70] sm:$0xff] %vm2253_vm11, %v2234_v12 }
 0x191   : > { %1940 = vst.msk [vmem:[#allocation2 + $0x38] sm:$0xff] %vm1932_vm10, %v1899_v14 }
 0x193   : > { %v2236_v15 = vpop.permute.xlu1 %2235 }
 0x194   : > { %v2218_v16 = vpop.permute.xlu0 %2217  ;;  %2269 = vst.msk [vmem:[#allocation2 + $0x78] sm:$0xff] %vm2253_vm11, %v2236_v15 }
 0x195   : > { %2260 = vst.msk [vmem:[#allocation2 + $0x30] sm:$0xff] %vm2253_vm11, %v2218_v16 }
 0x197   : > { %v2415_v17 = vpop.permute.xlu1 %2414 }
 0x198   : > { %v2220_v18 = vpop.permute.xlu0 %2219  ;;  %2449 = vst.msk [vmem:[#allocation2 + $0x70] sm:$0xff] %vm2434_vm12, %v2415_v17 }
 0x199   : > { %2261 = vst.msk [vmem:[#allocation2 + $0x38] sm:$0xff] %vm2253_vm11, %v2220_v18 }
 0x19b   : > { %v2417_v19 = vpop.permute.xlu1 %2416 }
 0x19c   : > { %v2399_v5 = vpop.permute.xlu0 %2398  ;;  %2450 = vst.msk [vmem:[#allocation2 + $0x78] sm:$0xff] %vm2434_vm12, %v2417_v19 }
 0x19d   : > { %2441 = vst.msk [vmem:[#allocation2 + $0x30] sm:$0xff] %vm2434_vm12, %v2399_v5 }
 0x19f   : > { %v2960_v23 = vpop.permute.xlu1 %2959 }
 0x1a0   : > { %v2401_v24 = vpop.permute.xlu0 %2400  ;;  %2994 = vst.msk [vmem:[#allocation2 + $0x70] sm:$0xff] %vm2979_vm13, %v2960_v23 }
 0x1a1   : > { %2442 = vst.msk [vmem:[#allocation2 + $0x38] sm:$0xff] %vm2434_vm12, %v2401_v24 }
 0x1a3   : > { %v2962_v25 = vpop.permute.xlu1 %2961 }
 0x1a4   : > { %v2944_v26 = vpop.permute.xlu0 %2943  ;;  %2995 = vst.msk [vmem:[#allocation2 + $0x78] sm:$0xff] %vm2979_vm13, %v2962_v25 }
 0x1a5   : > { %2986 = vst.msk [vmem:[#allocation2 + $0x30] sm:$0xff] %vm2979_vm13, %v2944_v26 }
 0x1a7   : > { %v3281_v22 = vpop.permute.xlu1 %3280 }
 0x1a8   : > { %v2946_v27 = vpop.permute.xlu0 %2945  ;;  %3315 = vst.msk [vmem:[#allocation2 + $0x70] sm:$0xff] %vm3300_vm14, %v3281_v22 }
 0x1a9   : > { %2987 = vst.msk [vmem:[#allocation2 + $0x38] sm:$0xff] %vm2979_vm13, %v2946_v27 }
 0x1ab   : > { %v3283_v28 = vpop.permute.xlu1 %3282 }
 0x1ac   : > { %v3265_v29 = vpop.permute.xlu0 %3264  ;;  %3316 = vst.msk [vmem:[#allocation2 + $0x78] sm:$0xff] %vm3300_vm14, %v3283_v28 }
 0x1ad   : > { %3307 = vst.msk [vmem:[#allocation2 + $0x30] sm:$0xff] %vm3300_vm14, %v3265_v29 }
 0x1af   : > { %v3331_v30 = vld [vmem:[#allocation2 + $0x70] sm:$0xff] }
 0x1b0   : > { %v3267_v31 = vpop.permute.xlu0 %3266  ;;  %4257 = vmatprep.mubr.msk.bf16.mxu1 %vm3353_vm15, %v3331_v30 }
 0x1b1   : > { %3308 = vst.msk [vmem:[#allocation2 + $0x38] sm:$0xff] %vm3300_vm14, %v3267_v31 }
 0x1b3   : > { %v3332_v32 = vld [vmem:[#allocation2 + $0x78] sm:$0xff] }
 0x1b4   : > { %v3323_v33 = vld [vmem:[#allocation2 + $0x30] sm:$0xff]  ;;  %4258 = vmatmul.mubr.msk.bf16.gmra.mrb[12].mxu1 %vm3353_vm15, %v3332_v32 }
 0x1b5   : > { %4241 = vmatprep.mubr.msk.bf16.mxu0 %vm3353_vm15, %v3323_v33 }
 0x1b8   : > { %v3324_v34 = vld [vmem:[#allocation2 + $0x38] sm:$0xff] }
 0x1b9   : > { %4242 = vmatmul.mubr.msk.bf16.gmra.mrb[12].mxu0 %vm3353_vm15, %v3324_v34 }
 0x1bd   : > { %v4231_v62 = vpop.f32.mrb[0].mxu0  ;;  %v4247_v35 = vpop.f32.mrb[0].mxu1 }
 0x1be   : > { %3570 = vst.msk [vmem:[%s5527_s6 + $0x10] sm:$0xff] %vm3567_vm1, %v4231_v62  ;;  %3586 = vst.msk [vmem:[%s5527_s6 + $0x90] sm:$0xff] %vm3567_vm1, %v4247_v35  ;;  %v3440_v36 = vpop.f32.mrb[1].mxu0  ;;  %v3504_v38 = vpop.f32.mrb[1].mxu1 }
 0x1bf   : > { %3568 = vst.msk [vmem:[%s5527_s6] sm:$0xff] %vm3567_vm1, %v3440_v36  ;;  %3584 = vst.msk [vmem:[%s5527_s6 + $0x80] sm:$0xff] %vm3567_vm1, %v3504_v38  ;;  %v4232_v39 = vpop.f32.mrb[2].mxu0  ;;  %v4248_v0 = vpop.f32.mrb[2].mxu1 }
 0x1c0   : > { %3571 = vst.msk [vmem:[%s5527_s6 + $0x18] sm:$0xff] %vm3567_vm1, %v4232_v39  ;;  %3587 = vst.msk [vmem:[%s5527_s6 + $0x98] sm:$0xff] %vm3567_vm1, %v4248_v0  ;;  %v3443_v40 = vpop.f32.mrb[3].mxu0  ;;  %v3507_v41 = vpop.f32.mrb[3].mxu1 }
 0x1c1   : > { %3569 = vst.msk [vmem:[%s5527_s6 + $0x8] sm:$0xff] %vm3567_vm1, %v3443_v40  ;;  %3585 = vst.msk [vmem:[%s5527_s6 + $0x88] sm:$0xff] %vm3567_vm1, %v3507_v41 }
 0x1ff   : > { %v4251_v42 = vpop.f32.mrb[4].mxu1 }
 0x200   : > { %3590 = vst.msk [vmem:[%s5527_s6 + $0xb0] sm:$0xff] %vm3567_vm1, %v4251_v42  ;;  %v3520_v45 = vpop.f32.mrb[5].mxu1 }
 0x201   : > { %v4235_v47 = vpop.f32.mrb[4].mxu0  ;;  %3588 = vst.msk [vmem:[%s5527_s6 + $0xa0] sm:$0xff] %vm3567_vm1, %v3520_v45  ;;  %v4252_v48 = vpop.f32.mrb[6].mxu1 }
 0x202   : > { %3574 = vst.msk [vmem:[%s5527_s6 + $0x30] sm:$0xff] %vm3567_vm1, %v4235_v47  ;;  %v3456_v49 = vpop.f32.mrb[5].mxu0  ;;  %3591 = vst.msk [vmem:[%s5527_s6 + $0xb8] sm:$0xff] %vm3567_vm1, %v4252_v48  ;;  %v3523_v50 = vpop.f32.mrb[7].mxu1 }
 0x203   : > { %3572 = vst.msk [vmem:[%s5527_s6 + $0x20] sm:$0xff] %vm3567_vm1, %v3456_v49  ;;  %v4236_v51 = vpop.f32.mrb[6].mxu0  ;;  %3589 = vst.msk [vmem:[%s5527_s6 + $0xa8] sm:$0xff] %vm3567_vm1, %v3523_v50 }
 0x204   : > { %3575 = vst.msk [vmem:[%s5527_s6 + $0x38] sm:$0xff] %vm3567_vm1, %v4236_v51  ;;  %v3459_v52 = vpop.f32.mrb[7].mxu0 }
 0x205   : > { %3573 = vst.msk [vmem:[%s5527_s6 + $0x28] sm:$0xff] %vm3567_vm1, %v3459_v52 }
 0x248   : > { %v4255_v53 = vpop.f32.mrb[8].mxu1 }
 0x249   : > { %3594 = vst.msk [vmem:[%s5527_s6 + $0xd0] sm:$0xff] %vm3567_vm1, %v4255_v53  ;;  %v3536_v21 = vpop.f32.mrb[9].mxu1 }
 0x24a   : > { %v4239_v37 = vpop.f32.mrb[8].mxu0  ;;  %3592 = vst.msk [vmem:[%s5527_s6 + $0xc0] sm:$0xff] %vm3567_vm1, %v3536_v21  ;;  %v4256_v54 = vpop.f32.mrb[10].mxu1 }
 0x24b   : > { %3578 = vst.msk [vmem:[%s5527_s6 + $0x50] sm:$0xff] %vm3567_vm1, %v4239_v37  ;;  %v3472_v55 = vpop.f32.mrb[9].mxu0  ;;  %3595 = vst.msk [vmem:[%s5527_s6 + $0xd8] sm:$0xff] %vm3567_vm1, %v4256_v54  ;;  %v3539_v11 = vpop.f32.mrb[11].mxu1 }
 0x24c   : > { %3576 = vst.msk [vmem:[%s5527_s6 + $0x40] sm:$0xff] %vm3567_vm1, %v3472_v55  ;;  %v4240_v57 = vpop.f32.mrb[10].mxu0  ;;  %3593 = vst.msk [vmem:[%s5527_s6 + $0xc8] sm:$0xff] %vm3567_vm1, %v3539_v11 }
 0x24d   : > { %3579 = vst.msk [vmem:[%s5527_s6 + $0x58] sm:$0xff] %vm3567_vm1, %v4240_v57  ;;  %v3475_v46 = vpop.f32.mrb[11].mxu0 }
 0x24e   : > { %3577 = vst.msk [vmem:[%s5527_s6 + $0x48] sm:$0xff] %vm3567_vm1, %v3475_v46 }
 0x287   : > { %v4259_v56 = vpop.f32.mrb[12].mxu1 }
 0x288   : > { %3598 = vst.msk [vmem:[%s5527_s6 + $0xf0] sm:$0xff] %vm3567_vm1, %v4259_v56  ;;  %v3552_v58 = vpop.f32.mrb[13].mxu1 }
 0x289   : > { %3596 = vst.msk [vmem:[%s5527_s6 + $0xe0] sm:$0xff] %vm3567_vm1, %v3552_v58  ;;  %v4260_v43 = vpop.f32.mrb[14].mxu1 }
 0x28a   : > { %3599 = vst.msk [vmem:[%s5527_s6 + $0xf8] sm:$0xff] %vm3567_vm1, %v4260_v43  ;;  %v3555_v20 = vpop.f32.mrb[15].mxu1 }
 0x28b   : > { %3597 = vst.msk [vmem:[%s5527_s6 + $0xe8] sm:$0xff] %vm3567_vm1, %v3555_v20 }
 0x28c   : > { %v4243_v59 = vpop.f32.mrb[12].mxu0 }
 0x28d   : > { %3582 = vst.msk [vmem:[%s5527_s6 + $0x70] sm:$0xff] %vm3567_vm1, %v4243_v59  ;;  %v3488_v44 = vpop.f32.mrb[13].mxu0 }
 0x28e   : > { %3580 = vst.msk [vmem:[%s5527_s6 + $0x60] sm:$0xff] %vm3567_vm1, %v3488_v44  ;;  %v4244_v13 = vpop.f32.mrb[14].mxu0 }
 0x28f   : > { %3583 = vst.msk [vmem:[%s5527_s6 + $0x78] sm:$0xff] %vm3567_vm1, %v4244_v13  ;;  %v3491_v60 = vpop.f32.mrb[15].mxu0 }
 0x290   : > { %3581 = vst.msk [vmem:[%s5527_s6 + $0x68] sm:$0xff] %vm3567_vm1, %v3491_v60 }
 0x291 PF: > { %s12_s11 = sadd.s32 1, %s4375_s11   ;;  %s5609_s9 = smov %s4371_s10 }
 0x292   : > { %p9_p5 = scmp.ge.s32.totalorder %s12_s11, 4   ;;  %s5610_s10 = smov %s5612_s12 }
 0x294   :  { %11 = sbr.rel (!%p9_p5) target bundleno = 2 (0x2), region = 64 }

</bundles_post_ra>
